<compile_context>
chip_gen: v7x
topology: tpu7x:2x2x1
jax: 0.10.0
libtpu: 0.0.40
codegen_flags: <defaults>
</compile_context>

<pallas_src>
import functools
import numpy as np

import jax
import jax.numpy as jnp
from jax import lax
from jax.experimental import pallas as pl
from jax.experimental.pallas import tpu as pltpu

EPS = 1e-5  # nn.BatchNorm2d default eps


# --------------------------------------------------------------------------
# Pallas kernel: fused (conv3x3 + BN + ReLU) x 2 for one (batch, H-tile).
# BN (eval mode) + conv bias are pre-folded: conv weight already carries the
# per-channel scale, t*_ref carries the shift.
# TODO(synk): training-mode BatchNorm (batch stats + running-stat update) is
#             not reproduced; eval-mode folded running statistics only.
# --------------------------------------------------------------------------
def _double_conv_kernel(TH, W, CI, COp, cdtype,
                        x_ref, w1_ref, t1_ref, w2_ref, t2_ref,
                        o_ref, pad_ref):
    f32 = jnp.float32
    i = pl.program_id(1)          # H-tile index
    R1 = TH + 2                   # conv1 rows computed per tile (incl. halo)

    # input block: (1, TH+4, W+2, CI)  (2-row / 1-col zero-padded, with halo)
    x = x_ref[0]

    # ---- conv1: im2col -> single MXU matmul, contraction = 9*CI ----
    cols = []
    for dx in range(3):                       # only 3 sublane-shifted slabs
        slab = x[:, dx:dx + W, :]             # (TH+4, W, CI)
        for dy in range(3):                   # major-dim slices: cheap
            cols.append(slab[dy:dy + R1].reshape(R1 * W, CI))
    patches = jnp.concatenate(cols, axis=-1)  # (R1*W, 9*CI)
    acc = jnp.dot(patches, w1_ref[...], preferred_element_type=f32)
    y1 = jnp.maximum(acc + t1_ref[...], 0.0)  # bias+BN folded into w1/t1

    # ---- stage conv1 output for conv2 (zero only the 1-wide W border) ----
    pad_ref[:, 1:W + 1, :] = y1.reshape(R1, W, COp).astype(cdtype)
    zcol = jnp.zeros((R1, COp), cdtype)
    pad_ref[:, 0, :] = zcol
    pad_ref[:, W + 1, :] = zcol

    @pl.when(i == 0)                                  # top image boundary
    def _():
        pad_ref[0, :, :] = jnp.zeros((W + 2, COp), cdtype)

    @pl.when(i == pl.num_programs(1) - 1)             # bottom image boundary
    def _():
        pad_ref[R1 - 1, :, :] = jnp.zeros((W + 2, COp), cdtype)

    # ---- conv2: im2col -> single MXU matmul, contraction = 9*COp ----
    p = pad_ref[...]                                  # (R1, W+2, COp)
    cols2 = []
    for dx in range(3):
        slab = p[:, dx:dx + W, :]                     # (R1, W, COp)
        for dy in range(3):
            cols2.append(slab[dy:dy + TH].reshape(TH * W, COp))
    patches2 = jnp.concatenate(cols2, axis=-1)        # (TH*W, 9*COp)
    acc2 = jnp.dot(patches2, w2_ref[...], preferred_element_type=f32)
    y2 = jnp.maximum(acc2 + t2_ref[...], 0.0)
    o_ref[0] = y2.reshape(TH, W, COp).astype(o_ref.dtype)


def _fold(w, b, g, be, m, v, cin_pad, cout_pad, cdtype):
    """Fold conv bias + eval-mode BN into weight (scale) and shift; pad
    channels; reorder OIHW -> (kw, kh, ci, co) to match the kernel im2col."""
    CO, CIN = w.shape[0], w.shape[1]
    scale = g / jnp.sqrt(v + EPS)                              # (CO,)
    shift = be + (b - m) * scale                               # (CO,)
    w_eff = w * scale[:, None, None, None]
    w_eff = jnp.pad(w_eff, ((0, cout_pad - CO), (0, cin_pad - CIN),
                            (0, 0), (0, 0)))
    w_r = jnp.transpose(w_eff, (3, 2, 1, 0)).reshape(9 * cin_pad, cout_pad)
    shift = jnp.pad(shift, (0, cout_pad - CO)).reshape(1, cout_pad)
    return w_r.astype(cdtype), shift.astype(jnp.float32)


def _pick_tile_h(H, W, CI, COp, itemsize):
    """Largest H-tile whose working set fits a conservative VMEM budget
    (safe for v7x's 64 MiB VMEM; v5e/v6e have 128 MiB)."""
    budget = 24 * 1024 * 1024
    divisors = [d for d in range(H, 0, -1) if H % d == 0]
    for th in divisors:
        r1 = th + 2
        need = (2 * (th + 4) * (W + 2) * CI * itemsize       # dbl-buffered input
                + r1 * (W + 2) * COp * itemsize              # conv1 scratch
                + r1 * W * 9 * CI * itemsize                 # conv1 im2col
                + th * W * 9 * COp * itemsize                # conv2 im2col
                + 2 * th * W * COp * 4                       # dbl-buffered output
                + 9 * (CI + COp) * COp * itemsize)           # weights
        if need <= budget:
            return th
    # TODO(synk): very large channel counts additionally need K (channel) tiling.
    return divisors[-1]


def double_conv_pallas(x_nchw, p, compute_dtype=jnp.bfloat16, tile_h=None):
    """(conv3x3 -> BN -> ReLU) x 2 via Pallas. Input/output are NCHW (f32 out)."""
    B, CI, H, W = x_nchw.shape
    CO = p['w2'].shape[0]
    COp = max(128, ((CO + 127) // 128) * 128)     # lane-dense output channels
    cdtype = jnp.dtype(compute_dtype)

    TH = tile_h if tile_h is not None else _pick_tile_h(H, W, CI, COp,
                                                        cdtype.itemsize)
    assert H % TH == 0, f"tile_h={TH} must divide H={H}"
    nT = H // TH

    w1, t1 = _fold(p['w1'], p['b1'], p['g1'], p['be1'], p['m1'], p['v1'],
                   CI, COp, cdtype)
    w2, t2 = _fold(p['w2'], p['b2'], p['g2'], p['be2'], p['m2'], p['v2'],
                   COp, COp, cdtype)

    # NCHW -> NHWC, spatial pad (2 rows / 1 col each side), H-tiles with halo.
    # TODO(synk): halo rows are materialized wrapper-side; an overlapping-window
    #             (element-indexed) BlockSpec would avoid this extra HBM copy.
    x = jnp.transpose(x_nchw, (0, 2, 3, 1))
    xpad = jnp.pad(x, ((0, 0), (2, 2), (1, 1), (0, 0)))
    if nT == 1:
        xt = xpad[:, None]
    else:
        xt = jnp.stack([xpad[:, i * TH:i * TH + TH + 4] for i in range(nT)],
                       axis=1)
    xt = xt.reshape(B * nT, TH + 4, W + 2, CI).astype(cdtype)

    kernel = functools.partial(_double_conv_kernel, TH, W, CI, COp, cdtype)

    flops = int(2 * B * H * W * 9 * (CI + COp) * COp)
    bytes_acc = int(xt.size * cdtype.itemsize + B * H * W * COp * 4
                    + (w1.size + w2.size) * cdtype.itemsize)

    out = pl.pallas_call(
        kernel,
        out_shape=jax.ShapeDtypeStruct((B, H, W, COp), jnp.float32),
        grid=(B, nT),
        in_specs=[
            pl.BlockSpec((1, TH + 4, W + 2, CI),
                         lambda b, i: (b * nT + i, 0, 0, 0)),
            pl.BlockSpec((9 * CI, COp), lambda b, i: (0, 0)),
            pl.BlockSpec((1, COp), lambda b, i: (0, 0)),
            pl.BlockSpec((9 * COp, COp), lambda b, i: (0, 0)),
            pl.BlockSpec((1, COp), lambda b, i: (0, 0)),
        ],
        out_specs=pl.BlockSpec((1, TH, W, COp), lambda b, i: (b, i, 0, 0)),
        scratch_shapes=[pltpu.VMEM((TH + 2, W + 2, COp), cdtype)],
        compiler_params=pltpu.CompilerParams(
            dimension_semantics=("parallel", "parallel"),
            vmem_limit_bytes=48 * 1024 * 1024),
        cost_estimate=pl.CostEstimate(flops=flops, transcendentals=0,
                                      bytes_accessed=bytes_acc),
    )(xt, w1, t1, w2, t2)

    out = out[..., :CO]                               # drop channel padding
    return jnp.transpose(out, (0, 3, 1, 2))           # NCHW, float32


# --------------------------------------------------------------------------
# Plain-JAX glue (exact semantics of nn.Upsample(align_corners=True), F.pad),
# kept inside the same jit as the pallas_call so XLA fuses it.
# --------------------------------------------------------------------------
def bilinear_upsample_x2_align_corners(x):
    B, C, h, w = x.shape
    H, W = 2 * h, 2 * w

    def coords(n_in, n_out):
        if n_out == 1 or n_in == 1:
            z = jnp.zeros((n_out,), jnp.int32)
            return z, z, jnp.zeros((n_out,), jnp.float32)
        pos = jnp.arange(n_out, dtype=jnp.float32) * (n_in - 1) / (n_out - 1)
        i0 = jnp.clip(jnp.floor(pos).astype(jnp.int32), 0, n_in - 1)
        i1 = jnp.clip(i0 + 1, 0, n_in - 1)
        return i0, i1, pos - i0.astype(jnp.float32)

    r0, r1, rf = coords(h, H)
    c0, c1, cf = coords(w, W)
    xr = (x[:, :, r0, :] * (1.0 - rf)[None, None, :, None]
          + x[:, :, r1, :] * rf[None, None, :, None])
    out = (xr[:, :, :, c0] * (1.0 - cf)[None, None, None, :]
           + xr[:, :, :, c1] * cf[None, None, None, :])
    return out


def pad_or_crop_last2(x, wl, wr, ht, hb):
    """Equivalent of F.pad(x, (wl, wr, ht, hb)) on NCHW (negative = crop)."""
    if wl < 0:
        x = x[:, :, :, -wl:]
    if wr < 0:
        x = x[:, :, :, :x.shape[3] + wr]
    if ht < 0:
        x = x[:, :, -ht:, :]
    if hb < 0:
        x = x[:, :, :x.shape[2] + hb, :]
    return jnp.pad(x, ((0, 0), (0, 0),
                       (max(ht, 0), max(hb, 0)),
                       (max(wl, 0), max(wr, 0))))


@functools.partial(jax.jit, static_argnames=("compute_dtype", "tile_h"))
def up_forward(x1, x2, params, compute_dtype=jnp.bfloat16, tile_h=None):
    """Forward pass of `up(in_ch, out_ch, bilinear=True)` (NCHW in/out)."""
    x1u = bilinear_upsample_x2_align_corners(x1)
    # Faithfully reproduces the original code's diffX/diffY axis usage.
    diffX = x1u.shape[2] - x2.shape[2]
    diffY = x1u.shape[3] - x2.shape[3]
    x2p = pad_or_crop_last2(x2, diffX // 2, int(diffX / 2),
                            diffY // 2, int(diffY / 2))
    x = jnp.concatenate([x2p, x1u], axis=1)           # channel concat
    return double_conv_pallas(x, params, compute_dtype, tile_h)


# --------------------------------------------------------------------------
# Pure-JAX reference (correctness check only)
# --------------------------------------------------------------------------
def ref_forward(x1, x2, p):
    x1u = bilinear_upsample_x2_align_corners(x1)
    diffX = x1u.shape[2] - x2.shape[2]
    diffY = x1u.shape[3] - x2.shape[3]
    x2p = pad_or_crop_last2(x2, diffX // 2, int(diffX / 2),
                            diffY // 2, int(diffY / 2))
    x = jnp.concatenate([x2p, x1u], axis=1)

    def conv_bn_relu(x, w, b, g, be, m, v):
        y = lax.conv_general_dilated(
            x, w, (1, 1), ((1, 1), (1, 1)),
            dimension_numbers=('NCHW', 'OIHW', 'NCHW'))
        y = y + b[None, :, None, None]
        y = (y - m[None, :, None, None]) / jnp.sqrt(v + EPS)[None, :, None, None]
        y = y * g[None, :, None, None] + be[None, :, None, None]
        return jnp.maximum(y, 0.0)

    x = conv_bn_relu(x, p['w1'], p['b1'], p['g1'], p['be1'], p['m1'], p['v1'])
    x = conv_bn_relu(x, p['w2'], p['b2'], p['g2'], p['be2'], p['m2'], p['v2'])
    return x


if __name__ == "__main__":
    key = jax.random.PRNGKey(0)
    k = jax.random.split(key, 12)

    B, in_ch, out_ch = 2, 8, 4
    # x1: lower-resolution feature map (gets upsampled x2); x2: skip tensor.
    x1 = jax.random.normal(k[0], (B, in_ch // 2, 8, 8), jnp.float32)
    x2 = jax.random.normal(k[1], (B, in_ch // 2, 16, 16), jnp.float32)

    def conv_init(kk, co, ci):
        bound = 1.0 / (ci * 9) ** 0.5
        kw, kb = jax.random.split(kk)
        w = jax.random.uniform(kw, (co, ci, 3, 3), jnp.float32, -bound, bound)
        b = jax.random.uniform(kb, (co,), jnp.float32, -bound, bound)
        return w, b

    w1, b1 = conv_init(k[2], out_ch, in_ch)
    w2, b2 = conv_init(k[3], out_ch, out_ch)
    params = dict(
        w1=w1, b1=b1,
        g1=jax.random.uniform(k[4], (out_ch,), jnp.float32, 0.5, 1.5),
        be1=0.1 * jax.random.normal(k[5], (out_ch,), jnp.float32),
        m1=0.1 * jax.random.normal(k[6], (out_ch,), jnp.float32),
        v1=jax.random.uniform(k[7], (out_ch,), jnp.float32, 0.5, 1.5),
        w2=w2, b2=b2,
        g2=jax.random.uniform(k[8], (out_ch,), jnp.float32, 0.5, 1.5),
        be2=0.1 * jax.random.normal(k[9], (out_ch,), jnp.float32),
        m2=0.1 * jax.random.normal(k[10], (out_ch,), jnp.float32),
        v2=jax.random.uniform(k[11], (out_ch,), jnp.float32, 0.5, 1.5),
    )

    ref = jax.block_until_ready(ref_forward(x1, x2, params))

    # 1) f32 MXU path, untiled: tight correctness check.
    out_f32 = jax.block_until_ready(
        up_forward(x1, x2, params, compute_dtype=jnp.float32, tile_h=None))
    assert out_f32.shape == (B, out_ch, 16, 16), out_f32.shape
    np.testing.assert_allclose(np.asarray(out_f32), np.asarray(ref),
                               rtol=2e-4, atol=2e-4)

    # 2) perf path: bf16 MXU inputs/weights (f32 accumulate), H-tiled (halo
    #    logic exercised with 2 tiles). Tolerance reflects bf16 rounding.
    out_bf16 = jax.block_until_ready(
        up_forward(x1, x2, params, compute_dtype=jnp.bfloat16, tile_h=8))
    assert out_bf16.shape == (B, out_ch, 16, 16), out_bf16.shape
    np.testing.assert_allclose(np.asarray(out_bf16), np.asarray(ref),
                               rtol=5e-2, atol=5e-2)

    print("KERNEL_OK")
</pallas_src>

<mosaic_0001>
module attributes {stable_mosaic.version = 11 : i64} {
  func.func @_double_conv_kernel(%arg0: i32, %arg1: i32, %arg2: memref<1x20x18x8xf32, #tpu.memory_space<vmem>>, %arg3: memref<72x128xf32, #tpu.memory_space<vmem>>, %arg4: memref<1x128xf32, #tpu.memory_space<vmem>>, %arg5: memref<1152x128xf32, #tpu.memory_space<vmem>>, %arg6: memref<1x128xf32, #tpu.memory_space<vmem>>, %arg7: memref<1x16x16x128xf32, #tpu.memory_space<vmem>>, %arg8: memref<18x18x128xf32, #tpu.memory_space<vmem>>) attributes {dimension_semantics = [#tpu.dimension_semantics<parallel>, #tpu.dimension_semantics<parallel>], iteration_bounds = array<i64: 2, 1>, scalar_prefetch = 0 : i64, scratch_operands = 1 : i64, tpu.core_type = #tpu.core_type<tc>, window_params = [{transform_indices = @transform_0, window_bounds = array<i64: 1, 20, 18, 8>}, {pipeline_mode = #tpu.pipeline_mode<synchronous>, transform_indices = @transform_1, window_bounds = array<i64: 72, 128>}, {pipeline_mode = #tpu.pipeline_mode<synchronous>, transform_indices = @transform_2, window_bounds = array<i64: 1, 128>}, {pipeline_mode = #tpu.pipeline_mode<synchronous>, transform_indices = @transform_3, window_bounds = array<i64: 1152, 128>}, {pipeline_mode = #tpu.pipeline_mode<synchronous>, transform_indices = @transform_4, window_bounds = array<i64: 1, 128>}, {transform_indices = @transform_5, window_bounds = array<i64: 1, 16, 16, 128>}]} {
    %c0 = arith.constant 0 : index
    %c0_0 = arith.constant 0 : index
    %c0_1 = arith.constant 0 : index
    %c0_2 = arith.constant 0 : index
    %0 = vector.load %arg2[%c0, %c0_0, %c0_1, %c0_2] : memref<1x20x18x8xf32, #tpu.memory_space<vmem>>, vector<1x20x18x8xf32>
    %1 = vector.shape_cast %0 : vector<1x20x18x8xf32> to vector<20x18x8xf32>
    %2 = vector.extract_strided_slice %1 {offsets = [0, 0, 0], sizes = [20, 16, 8], strides = [1, 1, 1]} : vector<20x18x8xf32> to vector<20x16x8xf32>
    %3 = vector.extract_strided_slice %2 {offsets = [0, 0, 0], sizes = [18, 16, 8], strides = [1, 1, 1]} : vector<20x16x8xf32> to vector<18x16x8xf32>
    %4 = vector.shape_cast %3 : vector<18x16x8xf32> to vector<288x8xf32>
    %5 = vector.extract_strided_slice %2 {offsets = [1, 0, 0], sizes = [18, 16, 8], strides = [1, 1, 1]} : vector<20x16x8xf32> to vector<18x16x8xf32>
    %6 = vector.shape_cast %5 : vector<18x16x8xf32> to vector<288x8xf32>
    %7 = vector.extract_strided_slice %2 {offsets = [2, 0, 0], sizes = [18, 16, 8], strides = [1, 1, 1]} : vector<20x16x8xf32> to vector<18x16x8xf32>
    %8 = vector.shape_cast %7 : vector<18x16x8xf32> to vector<288x8xf32>
    %9 = vector.extract_strided_slice %1 {offsets = [0, 1, 0], sizes = [20, 16, 8], strides = [1, 1, 1]} : vector<20x18x8xf32> to vector<20x16x8xf32>
    %10 = vector.extract_strided_slice %9 {offsets = [0, 0, 0], sizes = [18, 16, 8], strides = [1, 1, 1]} : vector<20x16x8xf32> to vector<18x16x8xf32>
    %11 = vector.shape_cast %10 : vector<18x16x8xf32> to vector<288x8xf32>
    %12 = vector.extract_strided_slice %9 {offsets = [1, 0, 0], sizes = [18, 16, 8], strides = [1, 1, 1]} : vector<20x16x8xf32> to vector<18x16x8xf32>
    %13 = vector.shape_cast %12 : vector<18x16x8xf32> to vector<288x8xf32>
    %14 = vector.extract_strided_slice %9 {offsets = [2, 0, 0], sizes = [18, 16, 8], strides = [1, 1, 1]} : vector<20x16x8xf32> to vector<18x16x8xf32>
    %15 = vector.shape_cast %14 : vector<18x16x8xf32> to vector<288x8xf32>
    %16 = vector.extract_strided_slice %1 {offsets = [0, 2, 0], sizes = [20, 16, 8], strides = [1, 1, 1]} : vector<20x18x8xf32> to vector<20x16x8xf32>
    %17 = vector.extract_strided_slice %16 {offsets = [0, 0, 0], sizes = [18, 16, 8], strides = [1, 1, 1]} : vector<20x16x8xf32> to vector<18x16x8xf32>
    %18 = vector.shape_cast %17 : vector<18x16x8xf32> to vector<288x8xf32>
    %19 = vector.extract_strided_slice %16 {offsets = [1, 0, 0], sizes = [18, 16, 8], strides = [1, 1, 1]} : vector<20x16x8xf32> to vector<18x16x8xf32>
    %20 = vector.shape_cast %19 : vector<18x16x8xf32> to vector<288x8xf32>
    %21 = vector.extract_strided_slice %16 {offsets = [2, 0, 0], sizes = [18, 16, 8], strides = [1, 1, 1]} : vector<20x16x8xf32> to vector<18x16x8xf32>
    %22 = vector.shape_cast %21 : vector<18x16x8xf32> to vector<288x8xf32>
    %23 = tpu.concatenate %4, %6, %8, %11, %13, %15, %18, %20, %22 in 1 : vector<288x8xf32>, vector<288x8xf32>, vector<288x8xf32>, vector<288x8xf32>, vector<288x8xf32>, vector<288x8xf32>, vector<288x8xf32>, vector<288x8xf32>, vector<288x8xf32> -> vector<288x72xf32>
    %c0_3 = arith.constant 0 : index
    %c0_4 = arith.constant 0 : index
    %24 = vector.load %arg3[%c0_3, %c0_4] : memref<72x128xf32, #tpu.memory_space<vmem>>, vector<72x128xf32>
    %cst = arith.constant dense<0.000000e+00> : vector<288x128xf32>
    %25 = tpu.matmul %23, %24, %cst {dimension_numbers = #tpu.dot_dimension_numbers<[1], [0], [0], [1], [0, 0, 1, 1], [], []>} : vector<288x72xf32>, vector<72x128xf32>, vector<288x128xf32> -> vector<288x128xf32>
    %c0_5 = arith.constant 0 : index
    %c0_6 = arith.constant 0 : index
    %26 = vector.load %arg4[%c0_5, %c0_6] : memref<1x128xf32, #tpu.memory_space<vmem>>, vector<1x128xf32>
    %27 = vector.broadcast %26 : vector<1x128xf32> to vector<288x128xf32>
    %28 = arith.addf %25, %27 : vector<288x128xf32>
    %cst_7 = arith.constant 0.000000e+00 : f32
    %29 = vector.broadcast %cst_7 : f32 to vector<288x128xf32>
    %30 = arith.maximumf %28, %29 : vector<288x128xf32>
    %31 = vector.shape_cast %30 : vector<288x128xf32> to vector<18x16x128xf32>
    %c0_8 = arith.constant 0 : index
    %c1 = arith.constant 1 : index
    %c0_9 = arith.constant 0 : index
    %32 = vector.load %arg8[%c0_8, %c1, %c0_9] : memref<18x18x128xf32, #tpu.memory_space<vmem>>, vector<18x16x128xf32>
    tpu.vector_store %arg8[%c0_8, %c1, %c0_9], %31 {strides = array<i32>} : memref<18x18x128xf32, #tpu.memory_space<vmem>>, vector<18x16x128xf32>,
    %cst_10 = arith.constant 0.000000e+00 : f32
    %33 = vector.broadcast %cst_10 : f32 to vector<18x128xf32>
    %c0_11 = arith.constant 0 : index
    %c0_12 = arith.constant 0 : index
    %c0_13 = arith.constant 0 : index
    %34 = vector.load %arg8[%c0_11, %c0_12, %c0_13] : memref<18x18x128xf32, #tpu.memory_space<vmem>>, vector<18x1x128xf32>
    %35 = vector.shape_cast %34 : vector<18x1x128xf32> to vector<18x128xf32>
    %36 = vector.shape_cast %33 : vector<18x128xf32> to vector<18x1x128xf32>
    tpu.vector_store %arg8[%c0_11, %c0_12, %c0_13], %36 {strides = array<i32>} : memref<18x18x128xf32, #tpu.memory_space<vmem>>, vector<18x1x128xf32>,
    %c0_14 = arith.constant 0 : index
    %c17 = arith.constant 17 : index
    %c0_15 = arith.constant 0 : index
    %37 = vector.load %arg8[%c0_14, %c17, %c0_15] : memref<18x18x128xf32, #tpu.memory_space<vmem>>, vector<18x1x128xf32>
    %38 = vector.shape_cast %37 : vector<18x1x128xf32> to vector<18x128xf32>
    %39 = vector.shape_cast %33 : vector<18x128xf32> to vector<18x1x128xf32>
    tpu.vector_store %arg8[%c0_14, %c17, %c0_15], %39 {strides = array<i32>} : memref<18x18x128xf32, #tpu.memory_space<vmem>>, vector<18x1x128xf32>,
    %c0_i32 = arith.constant 0 : i32
    %40 = arith.cmpi eq, %arg1, %c0_i32 : i32
    %41 = arith.extui %40 : i1 to i32
    %c0_i32_16 = arith.constant 0 : i32
    %42 = arith.cmpi ne, %41, %c0_i32_16 : i32
    scf.if %42 {
      %cst_32 = arith.constant 0.000000e+00 : f32
      %80 = vector.broadcast %cst_32 : f32 to vector<18x128xf32>
      %c0_33 = arith.constant 0 : index
      %c0_34 = arith.constant 0 : index
      %c0_35 = arith.constant 0 : index
      %81 = vector.load %arg8[%c0_33, %c0_34, %c0_35] : memref<18x18x128xf32, #tpu.memory_space<vmem>>, vector<1x18x128xf32>
      %82 = vector.shape_cast %81 : vector<1x18x128xf32> to vector<18x128xf32>
      %83 = vector.shape_cast %80 : vector<18x128xf32> to vector<1x18x128xf32>
      tpu.vector_store %arg8[%c0_33, %c0_34, %c0_35], %83 {strides = array<i32>} : memref<18x18x128xf32, #tpu.memory_space<vmem>>, vector<1x18x128xf32>,
    } else {
    }
    %c0_i32_17 = arith.constant 0 : i32
    %43 = arith.cmpi eq, %arg1, %c0_i32_17 : i32
    %44 = arith.extui %43 : i1 to i32
    %c0_i32_18 = arith.constant 0 : i32
    %45 = arith.cmpi ne, %44, %c0_i32_18 : i32
    scf.if %45 {
      %cst_32 = arith.constant 0.000000e+00 : f32
      %80 = vector.broadcast %cst_32 : f32 to vector<18x128xf32>
      %c17_33 = arith.constant 17 : index
      %c0_34 = arith.constant 0 : index
      %c0_35 = arith.constant 0 : index
      %81 = vector.load %arg8[%c17_33, %c0_34, %c0_35] : memref<18x18x128xf32, #tpu.memory_space<vmem>>, vector<1x18x128xf32>
      %82 = vector.shape_cast %81 : vector<1x18x128xf32> to vector<18x128xf32>
      %83 = vector.shape_cast %80 : vector<18x128xf32> to vector<1x18x128xf32>
      tpu.vector_store %arg8[%c17_33, %c0_34, %c0_35], %83 {strides = array<i32>} : memref<18x18x128xf32, #tpu.memory_space<vmem>>, vector<1x18x128xf32>,
    } else {
    }
    %c0_19 = arith.constant 0 : index
    %c0_20 = arith.constant 0 : index
    %c0_21 = arith.constant 0 : index
    %46 = vector.load %arg8[%c0_19, %c0_20, %c0_21] : memref<18x18x128xf32, #tpu.memory_space<vmem>>, vector<18x18x128xf32>
    %47 = vector.extract_strided_slice %46 {offsets = [0, 0, 0], sizes = [18, 16, 128], strides = [1, 1, 1]} : vector<18x18x128xf32> to vector<18x16x128xf32>
    %48 = vector.extract_strided_slice %47 {offsets = [0, 0, 0], sizes = [16, 16, 128], strides = [1, 1, 1]} : vector<18x16x128xf32> to vector<16x16x128xf32>
    %49 = vector.shape_cast %48 : vector<16x16x128xf32> to vector<256x128xf32>
    %50 = vector.extract_strided_slice %47 {offsets = [1, 0, 0], sizes = [16, 16, 128], strides = [1, 1, 1]} : vector<18x16x128xf32> to vector<16x16x128xf32>
    %51 = vector.shape_cast %50 : vector<16x16x128xf32> to vector<256x128xf32>
    %52 = vector.extract_strided_slice %47 {offsets = [2, 0, 0], sizes = [16, 16, 128], strides = [1, 1, 1]} : vector<18x16x128xf32> to vector<16x16x128xf32>
    %53 = vector.shape_cast %52 : vector<16x16x128xf32> to vector<256x128xf32>
    %54 = vector.extract_strided_slice %46 {offsets = [0, 1, 0], sizes = [18, 16, 128], strides = [1, 1, 1]} : vector<18x18x128xf32> to vector<18x16x128xf32>
    %55 = vector.extract_strided_slice %54 {offsets = [0, 0, 0], sizes = [16, 16, 128], strides = [1, 1, 1]} : vector<18x16x128xf32> to vector<16x16x128xf32>
    %56 = vector.shape_cast %55 : vector<16x16x128xf32> to vector<256x128xf32>
    %57 = vector.extract_strided_slice %54 {offsets = [1, 0, 0], sizes = [16, 16, 128], strides = [1, 1, 1]} : vector<18x16x128xf32> to vector<16x16x128xf32>
    %58 = vector.shape_cast %57 : vector<16x16x128xf32> to vector<256x128xf32>
    %59 = vector.extract_strided_slice %54 {offsets = [2, 0, 0], sizes = [16, 16, 128], strides = [1, 1, 1]} : vector<18x16x128xf32> to vector<16x16x128xf32>
    %60 = vector.shape_cast %59 : vector<16x16x128xf32> to vector<256x128xf32>
    %61 = vector.extract_strided_slice %46 {offsets = [0, 2, 0], sizes = [18, 16, 128], strides = [1, 1, 1]} : vector<18x18x128xf32> to vector<18x16x128xf32>
    %62 = vector.extract_strided_slice %61 {offsets = [0, 0, 0], sizes = [16, 16, 128], strides = [1, 1, 1]} : vector<18x16x128xf32> to vector<16x16x128xf32>
    %63 = vector.shape_cast %62 : vector<16x16x128xf32> to vector<256x128xf32>
    %64 = vector.extract_strided_slice %61 {offsets = [1, 0, 0], sizes = [16, 16, 128], strides = [1, 1, 1]} : vector<18x16x128xf32> to vector<16x16x128xf32>
    %65 = vector.shape_cast %64 : vector<16x16x128xf32> to vector<256x128xf32>
    %66 = vector.extract_strided_slice %61 {offsets = [2, 0, 0], sizes = [16, 16, 128], strides = [1, 1, 1]} : vector<18x16x128xf32> to vector<16x16x128xf32>
    %67 = vector.shape_cast %66 : vector<16x16x128xf32> to vector<256x128xf32>
    %68 = tpu.concatenate %49, %51, %53, %56, %58, %60, %63, %65, %67 in 1 : vector<256x128xf32>, vector<256x128xf32>, vector<256x128xf32>, vector<256x128xf32>, vector<256x128xf32>, vector<256x128xf32>, vector<256x128xf32>, vector<256x128xf32>, vector<256x128xf32> -> vector<256x1152xf32>
    %c0_22 = arith.constant 0 : index
    %c0_23 = arith.constant 0 : index
    %69 = vector.load %arg5[%c0_22, %c0_23] : memref<1152x128xf32, #tpu.memory_space<vmem>>, vector<1152x128xf32>
    %cst_24 = arith.constant dense<0.000000e+00> : vector<256x128xf32>
    %70 = tpu.matmul %68, %69, %cst_24 {dimension_numbers = #tpu.dot_dimension_numbers<[1], [0], [0], [1], [0, 0, 1, 1], [], []>} : vector<256x1152xf32>, vector<1152x128xf32>, vector<256x128xf32> -> vector<256x128xf32>
    %c0_25 = arith.constant 0 : index
    %c0_26 = arith.constant 0 : index
    %71 = vector.load %arg6[%c0_25, %c0_26] : memref<1x128xf32, #tpu.memory_space<vmem>>, vector<1x128xf32>
    %72 = vector.broadcast %71 : vector<1x128xf32> to vector<256x128xf32>
    %73 = arith.addf %70, %72 : vector<256x128xf32>
    %cst_27 = arith.constant 0.000000e+00 : f32
    %74 = vector.broadcast %cst_27 : f32 to vector<256x128xf32>
    %75 = arith.maximumf %73, %74 : vector<256x128xf32>
    %76 = vector.shape_cast %75 : vector<256x128xf32> to vector<16x16x128xf32>
    %c0_28 = arith.constant 0 : index
    %c0_29 = arith.constant 0 : index
    %c0_30 = arith.constant 0 : index
    %c0_31 = arith.constant 0 : index
    %77 = vector.load %arg7[%c0_28, %c0_29, %c0_30, %c0_31] : memref<1x16x16x128xf32, #tpu.memory_space<vmem>>, vector<1x16x16x128xf32>
    %78 = vector.shape_cast %77 : vector<1x16x16x128xf32> to vector<16x16x128xf32>
    %79 = vector.shape_cast %76 : vector<16x16x128xf32> to vector<1x16x16x128xf32>
    tpu.vector_store %arg7[%c0_28, %c0_29, %c0_30, %c0_31], %79 {strides = array<i32>} : memref<1x16x16x128xf32, #tpu.memory_space<vmem>>, vector<1x16x16x128xf32>,
    return
  }
  func.func @transform_0(%arg0: i32, %arg1: i32) -> (i32, i32, i32, i32) {
    %c1_i32 = arith.constant 1 : i32
    %0 = arith.muli %arg0, %c1_i32 : i32
    %1 = arith.addi %0, %arg1 : i32
    %c0_i32 = arith.constant 0 : i32
    %c0_i32_0 = arith.constant 0 : i32
    %c0_i32_1 = arith.constant 0 : i32
    %c0_i32_2 = arith.constant 0 : i32
    return %1, %c0_i32, %c0_i32_0, %c0_i32_1 : i32, i32, i32, i32
  }
  func.func @transform_1(%arg0: i32, %arg1: i32) -> (i32, i32) {
    %c0_i32 = arith.constant 0 : i32
    %c0_i32_0 = arith.constant 0 : i32
    %c0_i32_1 = arith.constant 0 : i32
    return %c0_i32, %c0_i32_0 : i32, i32
  }
  func.func @transform_2(%arg0: i32, %arg1: i32) -> (i32, i32) {
    %c0_i32 = arith.constant 0 : i32
    %c0_i32_0 = arith.constant 0 : i32
    %c0_i32_1 = arith.constant 0 : i32
    return %c0_i32, %c0_i32_0 : i32, i32
  }
  func.func @transform_3(%arg0: i32, %arg1: i32) -> (i32, i32) {
    %c0_i32 = arith.constant 0 : i32
    %c0_i32_0 = arith.constant 0 : i32
    %c0_i32_1 = arith.constant 0 : i32
    return %c0_i32, %c0_i32_0 : i32, i32
  }
  func.func @transform_4(%arg0: i32, %arg1: i32) -> (i32, i32) {
    %c0_i32 = arith.constant 0 : i32
    %c0_i32_0 = arith.constant 0 : i32
    %c0_i32_1 = arith.constant 0 : i32
    return %c0_i32, %c0_i32_0 : i32, i32
  }
  func.func @transform_5(%arg0: i32, %arg1: i32) -> (i32, i32, i32, i32) {
    %c0_i32 = arith.constant 0 : i32
    %c0_i32_0 = arith.constant 0 : i32
    %c0_i32_1 = arith.constant 0 : i32
    return %arg0, %arg1, %c0_i32, %c0_i32_0 : i32, i32, i32, i32
  }
}

</mosaic_0001>

<bundles_post_ra>
// kernel: up_forward.1
= control target key start
LH: loop header
LB: loop body
LE: loop exit
PB: predicated region body
PF: predicated region fallthrough
CT: control target
= control target key end

     0   :  { %s4901_s18 = smov 0   ;;  %s4903_s19 = smov 0   ;;  %s7927_s0 = inlined_call_operand.vmem [shape: f32[2,20,18,8], index: 0, kind: input, shape index: {}]   ;;  %s7928_s1 = inlined_call_operand.vmem [shape: f32[72,128], index: 1, kind: input, shape index: {}]   ;;  %s7929_s2 = inlined_call_operand.vmem [shape: f32[1,128], index: 2, kind: input, shape index: {}]   ;;  %s7930_s3 = inlined_call_operand.vmem [shape: f32[1152,128], index: 3, kind: input, shape index: {}]   ;;  %s7931_s4 = inlined_call_operand.vmem [shape: f32[1,128], index: 4, kind: input, shape index: {}]   ;;  %s7932_s5 = inlined_call_operand.vmem [shape: f32[2,16,16,128], index: 5, kind: output, shape index: {}]  }
   0x1   :  { %s4905_s20 = smov 0  }
   0x2 LB: > { %s27_s21 = sadd.s32 1, %s4855_s19  ;;  %p4019_p0 = scmp.ge.s32.totalorder %s4859_s20, 1  ;;  %s4859_s20 = sphi %s4905_s20, %s15_s20   ;;  %s4855_s19 = sphi %s4903_s19, %s8020_s19   ;;  %s4851_s18 = sphi %s4901_s18, %s8019_s18  }
   0x3   : > { %p29_p1 = scmp.ge.s32.totalorder %s27_s21, 2  ;;  %p205_p2 = scmp.lt.s32.totalorder %s4859_s20, 3 }
   0x5   : > { %s8022_s21 = smov (%p29_p1, %s27_s21), 0  ;;  %p206_p3 = pnand %p4019_p0, %p205_p2 }
   0x7   : > { %209 = sbr.rel (%p206_p3) target bundleno = 1317 (0x525), region = 40 }
   0xe   : > { %p240_p4 = scmp.lt.s32.totalorder %s4851_s18, 1  ;;  %s4861_s26 = smov 16   ;;  %vm371_vm0 = vcmask 1046528   ;;  %v1739_v22 = vld [vmem:[%s7928_s1] sm:$0xff]  ;;  %v1740_v23 = vld [vmem:[%s7928_s1 + $0x8] sm:$0xff]  ;;  %vm478_vm1 = vcmask 1045504  }
   0xf   : > { %s4862_s27 = smov 8   ;;  %s4863_s28 = smov 24   ;;  %v4309_v24 = vpack.c.bf16 %v1740_v23, %v1739_v22  ;;  %v1741_v29 = vld [vmem:[%s7928_s1 + $0x10] sm:$0xff]  ;;  %v1742_v30 = vld [vmem:[%s7928_s1 + $0x18] sm:$0xff]  ;;  %v1743_v34 = vld [vmem:[%s7928_s1 + $0x20] sm:$0xff]  ;;  %vm1443_vm2 = vcmask 64512  }
  0x10   : > { %s8024_s18 = smov (!%p240_p4, %s4851_s18), 1  ;;  %s4864_s29 = smov 32   ;;  %v4313_v31 = vpack.c.bf16 %v1742_v30, %v1741_v29  ;;  %v1744_v35 = vld [vmem:[%s7928_s1 + $0x28] sm:$0xff]  ;;  %v1745_v41 = vld [vmem:[%s7928_s1 + $0x30] sm:$0xff]  ;;  %v1746_v42 = vld [vmem:[%s7928_s1 + $0x38] sm:$0xff]  ;;  %vm1480_vm3 = vcmask 130048  }
  0x11   : > { %s4753_s22 = smul.u32 480, %s8024_s18  ;;  %s4865_s9 = smov 40   ;;  %4310 = vmatprep.subr.bf16.mxu0 %v4309_v24  ;;  %v4317_v36 = vpack.c.bf16 %v1744_v35, %v1743_v34  ;;  %v4321_v45 = vpack.c.bf16 %v1746_v42, %v1745_v41  ;;  %v1747_v46 = vld [vmem:[%s7928_s1 + $0x40] sm:$0xff]  ;;  %vm1517_vm4 = vcmask 195584   ;;  %vm1554_vm5 = vcmask 261120  }
  0x12   : > { %4312 = vmatpush3.bf16.msra.mxu0 %v4309_v24  ;;  %s4867_s7 = smov 56   ;;  %s4868_s11 = smov 64   ;;  %vm1591_vm6 = vcmask 326656   ;;  %vm1628_vm7 = vcmask 392192   ;;  %vm1665_vm8 = vcmask 457728   ;;  %vm1702_vm9 = vcmask 523264  }
  0x13   : > { %s4925_s25 = scalar_lea.vmem %s7927_s0, %s4753_s22  ;;  %4314 = vmatprep.subr.bf16.mxu0 %v4313_v31  ;;  %s4866_s22 = smov 48   ;;  %vm1755_vm10 = vcmask 588800  }
  0x14   : > { %v4928_v0 = vld [vmem:[%s4925_s25 + $0x30] sm:$0xff]  ;;  %v4931_v1 = vld [vmem:[%s4925_s25 + $0x18] sm:$0xff]  ;;  %v4941_v3 = vld [vmem:[%s4925_s25 + $0x8] sm:$0xff] }
  0x15   : > { %687 = vrot.lane.b32.xlu1 %v4928_v0, %s4861_s26  ;;  %579 = vrot.lane.b32.xlu0 %v4931_v1, %s4862_s27  ;;  %v4938_v2 = vld [vmem:[%s4925_s25 + $0x38] sm:$0xff]  ;;  %v4944_v4 = vld [vmem:[%s4925_s25 + $0x20] sm:$0xff]  ;;  %v373_v6 = vrot.slane %v4941_v3, 1  ;;  %v377_v12 = vrot.slane %v4931_v1, 1  ;;  %v382_v16 = vrot.slane %v4928_v0, 1  ;;  %v480_v27 = vrot.slane %v4941_v3, 2 }
  0x16   : > { %v4947_v5 = vld [vmem:[%s4925_s25 + $0x10] sm:$0x3]  ;;  %v4951_v7 = vld [vmem:[%s4925_s25] sm:$0xff]  ;;  %v378_v13 = vrot.slane %v4944_v4, 1  ;;  %v4964_v14 = vld [vmem:[%s4925_s25 + $0x28] sm:$0x3]  ;;  %4316 = vmatpush3.bf16.msra.mxu0 %v4313_v31 }
  0x17   : > { %v375_v8 = vrot.slane %v4947_v5, 1  ;;  %v372_v9 = vrot.slane %v4951_v7, 1  ;;  %v383_v17 = vrot.slane %v4938_v2, 1  ;;  %v380_v18 = vrot.slane %v4964_v14, 1  ;;  %v4980_v21 = vld [vmem:[%s4925_s25 + $0x40] sm:$0x3]  ;;  %4318 = vmatprep.subr.bf16.mxu0 %v4317_v36 }
  0x18   : > { %v379_v15 = vsel %vm371_vm0, %v377_v12, %v378_v13  ;;  %v4992_v25 = vld [vmem:[%s4925_s25 + $0x48] sm:$0xff]  ;;  %v479_v26 = vrot.slane %v4951_v7, 2  ;;  %v385_v28 = vrot.slane %v4980_v21, 1  ;;  %v5021_v37 = vld [vmem:[%s4925_s25 + $0x50] sm:$0xff]  ;;  %v484_v38 = vrot.slane %v4931_v1, 2  ;;  %v5065_v58 = vld [vmem:[%s4925_s25 + $0x60] sm:$0xff] }
  0x19   : > { %689 = vrot.lane.b32.xlu1 %v4938_v2, %s4861_s26  ;;  %581 = vrot.lane.b32.xlu0 %v4944_v4, %s4862_s27  ;;  %v376_v10 = vsel %vm371_vm0, %v373_v6, %v375_v8  ;;  %v374_v11 = vsel %vm371_vm0, %v372_v9, %v373_v6  ;;  %v4976_v19 = vsel %vm371_vm0, %v382_v16, %v383_v17  ;;  %v485_v39 = vrot.slane %v4944_v4, 2  ;;  %v268_v57 = vld [vmem:[%s4925_s25 + $0x58] sm:$0x3]  ;;  %v5075_v61 = vld [vmem:[%s4925_s25 + $0x68] sm:$0xff] }
  0x1a   : > { %v381_v20 = vsel %vm371_vm0, %v378_v13, %v380_v18  ;;  %v481_v32 = vsel %vm478_vm1, %v479_v26, %v480_v27  ;;  %v5009_v33 = vsel %vm371_vm0, %v383_v17, %v385_v28  ;;  %v482_v40 = vrot.slane %v4947_v5, 2  ;;  %4320 = vmatpush3.bf16.msra.mxu0 %v4317_v36  ;;  %v271_v9 = vld [vmem:[%s4925_s25 + $0x70] sm:$0x3]  ;;  %v274_v22 = vld [vmem:[%s4925_s25 + $0x88] sm:$0x3] }
  0x1b   : > { %v486_v43 = vsel %vm478_vm1, %v484_v38, %v485_v39  ;;  %4322 = vmatprep.subr.bf16.mxu0 %v4321_v45  ;;  %v489_v47 = vrot.slane %v4928_v0, 2  ;;  %v490_v48 = vrot.slane %v4938_v2, 2  ;;  %v487_v49 = vrot.slane %v4964_v14, 2 }
  0x1c   : > { %v483_v44 = vsel %vm478_vm1, %v480_v27, %v482_v40  ;;  %v492_v52 = vrot.slane %v4980_v21, 2  ;;  %v387_v53 = vrot.slane %v4992_v25, 1  ;;  %v388_v54 = vrot.slane %v5021_v37, 1  ;;  %v5128_v21 = vld [vmem:[%s4925_s25 + $0x78] sm:$0xff] }
  0x1d   : > { %797 = vrot.lane.b32.xlu1 %v376_v10, %s4863_s28  ;;  %795 = vrot.lane.b32.xlu0 %v374_v11, %s4863_s28  ;;  %v491_v50 = vsel %vm478_vm1, %v489_v47, %v490_v48  ;;  %v488_v51 = vsel %vm478_vm1, %v485_v39, %v487_v49  ;;  %v390_v59 = vrot.slane %v268_v57, 1  ;;  %v494_v62 = vrot.slane %v4992_v25, 2  ;;  %v277_v49 = vld [vmem:[%s4925_s25 + $0xa0] sm:$0x3] }
  0x1e   : > { %4324 = vmatpush3.bf16.msra.mxu0 %v4321_v45  ;;  %v493_v55 = vsel %vm478_vm1, %v490_v48, %v492_v52  ;;  %v389_v56 = vsel %vm371_vm0, %v387_v53, %v388_v54  ;;  %v495_v63 = vrot.slane %v5021_v37, 2  ;;  %v392_v6 = vrot.slane %v5065_v58, 1 }
  0x1f   : > { %4173 = vmatprep.subr.mxu0 %v1747_v46  ;;  %v391_v60 = vsel %vm371_vm0, %v388_v54, %v390_v59  ;;  %v393_v8 = vrot.slane %v5075_v61, 1  ;;  %v395_v11 = vrot.slane %v271_v9, 1  ;;  %v497_v12 = vrot.slane %v268_v57, 2 }
  0x20   : > { %v496_v5 = vsel %vm478_vm1, %v494_v62, %v495_v63  ;;  %v500_v16 = vrot.slane %v5075_v61, 2  ;;  %v502_v18 = vrot.slane %v271_v9, 2  ;;  %v400_v24 = vrot.slane %v274_v22, 1 }
  0x21   : > { %583 = vrot.lane.b32.xlu1 %v4928_v0, %s4862_s27  ;;  %903 = vrot.lane.b32.xlu0 %v379_v15, %s4864_s29  ;;  %v5095_v10 = vsel %vm371_vm0, %v392_v6, %v393_v8  ;;  %v396_v13 = vsel %vm371_vm0, %v393_v8, %v395_v11  ;;  %v498_v14 = vsel %vm478_vm1, %v495_v63, %v497_v12  ;;  %v397_v26 = vrot.slane %v5128_v21, 1 }
  0x22   : > { %4174 = vmatpush3.msra.mxu0 %v1747_v46  ;;  %v504_v31 = vrot.slane %v5128_v21, 2  ;;  %v507_v36 = vrot.slane %v274_v22, 2 }
  0x25   : > { %1011 = vrot.lane.b32.xlu1 %v4976_v19, %s4865_s9  ;;  %905 = vrot.lane.b32.xlu0 %v381_v20, %s4864_s29 }
  0x29   : > { %691 = vrot.lane.b32.xlu1 %v4992_v25, %s4861_s26  ;;  %585 = vrot.lane.b32.xlu0 %v4938_v2, %s4862_s27 }
  0x2d   : > { %1119 = vrot.lane.b32.xlu1 %v481_v32, %s4866_s22  ;;  %1013 = vrot.lane.b32.xlu0 %v5009_v33, %s4865_s9 }
  0x31   : > { %799 = vrot.lane.b32.xlu1 %v379_v15, %s4863_s28  ;;  %693 = vrot.lane.b32.xlu0 %v5021_v37, %s4861_s26  ;;  %v499_v15 = vrot.slane %v5065_v58, 2 }
  0x33   : > { %v5111_v17 = vsel %vm478_vm1, %v499_v15, %v500_v16  ;;  %v512_v15 = vrot.slane %v277_v49, 2 }
  0x35   : > { %1227 = vrot.lane.b32.xlu1 %v486_v43, %s4867_s7  ;;  %1121 = vrot.lane.b32.xlu0 %v483_v44, %s4866_s22  ;;  %v275_v44 = vld [vmem:[%s4925_s25 + $0x90] sm:$0xff] }
  0x36   : > { %v402_v52 = vrot.slane %v275_v44, 1  ;;  %v509_v6 = vrot.slane %v275_v44, 2 }
  0x39   : > { %907 = vrot.lane.b32.xlu1 %v4976_v19, %s4864_s29  ;;  %801 = vrot.lane.b32.xlu0 %v381_v20, %s4863_s28  ;;  %v5125_v20 = vld [vmem:[%s4925_s25 + $0x80] sm:$0xff] }
  0x3a   : > { %v398_v23 = vrot.slane %v5125_v20, 1  ;;  %v505_v32 = vrot.slane %v5125_v20, 2 }
  0x3c   : > { %v5143_v27 = vsel %vm371_vm0, %v398_v23, %v400_v24  ;;  %v5146_v28 = vsel %vm371_vm0, %v397_v26, %v398_v23  ;;  %v5165_v35 = vsel %vm478_vm1, %v504_v31, %v505_v32  ;;  %v5174_v40 = vsel %vm478_vm1, %v505_v32, %v507_v36 }
  0x3d   : > { %1335 = vrot.lane.b32.xlu1 %v491_v50, %s4868_s11  ;;  %1229 = vrot.lane.b32.xlu0 %v488_v51, %s4867_s7 }
  0x41   : > { %909 = vrot.lane.b32.xlu1 %v5009_v33, %s4864_s29  ;;  %587 = vrot.lane.b32.xlu0 %v4992_v25, %s4862_s27 }
  0x45   : > { %1337 = vrot.lane.b32.xlu1 %v493_v55, %s4868_s11  ;;  %1015 = vrot.lane.b32.xlu0 %v389_v56, %s4865_s9 }
  0x49   : > { %695 = vrot.lane.b32.xlu1 %v5065_v58, %s4861_s26  ;;  %589 = vrot.lane.b32.xlu0 %v5021_v37, %s4862_s27 }
  0x4d   : > { %1123 = vrot.lane.b32.xlu1 %v486_v43, %s4866_s22  ;;  %1017 = vrot.lane.b32.xlu0 %v391_v60, %s4865_s9  ;;  %v5183_v43 = vld [vmem:[%s4925_s25 + $0x98] sm:$0xff] }
  0x4e   : > { %v510_v8 = vrot.slane %v5183_v43, 2 }
  0x51   : > { %803 = vrot.lane.b32.xlu1 %v4976_v19, %s4863_s28  ;;  %697 = vrot.lane.b32.xlu0 %v5075_v61, %s4861_s26  ;;  %v5118_v19 = vsel %vm478_vm1, %v500_v16, %v502_v18 }
  0x55   : > { %1231 = vrot.lane.b32.xlu1 %v491_v50, %s4867_s7  ;;  %1125 = vrot.lane.b32.xlu0 %v488_v51, %s4866_s22  ;;  %v405_v51 = vrot.slane %v277_v49, 1 }
  0x59   : > { %911 = vrot.lane.b32.xlu1 %v389_v56, %s4864_s29  ;;  %805 = vrot.lane.b32.xlu0 %v5009_v33, %s4863_s28 }
  0x5d   : > { %1339 = vrot.lane.b32.xlu1 %v496_v5, %s4868_s11  ;;  %1233 = vrot.lane.b32.xlu0 %v493_v55, %s4867_s7 }
  0x61   : > { %1019 = vrot.lane.b32.xlu1 %v5095_v10, %s4865_s9  ;;  %913 = vrot.lane.b32.xlu0 %v391_v60, %s4864_s29 }
  0x65   : > { %1021 = vrot.lane.b32.xlu1 %v396_v13, %s4865_s9  ;;  %1341 = vrot.lane.b32.xlu0 %v498_v14, %s4868_s11 }
  0x69   : > { %1129 = vrot.lane.b32.xlu1 %v493_v55, %s4866_s22  ;;  %1127 = vrot.lane.b32.xlu0 %v491_v50, %s4866_s22  ;;  %v403_v50 = vrot.slane %v5183_v43, 1 }
  0x6b   : > { %v5203_v55 = vsel %vm371_vm0, %v403_v50, %v405_v51 }
  0x6d   : > { %1237 = vrot.lane.b32.xlu1 %v498_v14, %s4867_s7  ;;  %1235 = vrot.lane.b32.xlu0 %v496_v5, %s4867_s7 }
  0x71   : > { %591 = vrot.lane.b32.xlu1 %v5065_v58, %s4862_s27  ;;  %1343 = vrot.lane.b32.xlu0 %v5111_v17, %s4868_s11 }
  0x75   : > { %593 = vrot.lane.b32.xlu1 %v5075_v61, %s4862_s27  ;;  %1345 = vrot.lane.b32.xlu0 %v5118_v19, %s4868_s11 }
  0x79   : > { %701 = vrot.lane.b32.xlu1 %v5125_v20, %s4861_s26  ;;  %699 = vrot.lane.b32.xlu0 %v5128_v21, %s4861_s26 }
  0x7d   : > { %809 = vrot.lane.b32.xlu1 %v391_v60, %s4863_s28  ;;  %807 = vrot.lane.b32.xlu0 %v389_v56, %s4863_s28  ;;  %v5206_v56 = vsel %vm371_vm0, %v402_v52, %v403_v50 }
  0x81   : > { %917 = vrot.lane.b32.xlu1 %v396_v13, %s4864_s29  ;;  %915 = vrot.lane.b32.xlu0 %v5095_v10, %s4864_s29 }
  0x85   : > { %1025 = vrot.lane.b32.xlu1 %v5143_v27, %s4865_s9  ;;  %1023 = vrot.lane.b32.xlu0 %v5146_v28, %s4865_s9 }
  0x87   : > { %v688_v29 = vpop.permute.xlu1 %687  ;;  %v580_v30 = vpop.permute.xlu0 %579 }
  0x88   : > { %v1444_v60 = vsel %vm1443_vm2, %v4951_v7, %v580_v30 }
  0x89   : > { %1133 = vrot.lane.b32.xlu1 %v498_v14, %s4866_s22  ;;  %1131 = vrot.lane.b32.xlu0 %v496_v5, %s4866_s22  ;;  %v1481_v5 = vsel %vm1480_vm3, %v1444_v60, %v688_v29  ;;  %v5237_v14 = vsel %vm478_vm1, %v509_v6, %v510_v8 }
  0x8b   : > { %v5156_v33 = vpop.permute.xlu1 %689  ;;  %v5158_v34 = vpop.permute.xlu0 %581 }
  0x8c   : > { %v1445_v16 = vsel %vm1443_vm2, %v4941_v3, %v5158_v34  ;;  %v5251_v3 = vsel %vm478_vm1, %v510_v8, %v512_v15  ;;  %v5268_v34 = vld [vmem:[%s4925_s25 + $0xa8] sm:$0xff] }
  0x8d   : > { %1241 = vrot.lane.b32.xlu1 %v5118_v19, %s4867_s7  ;;  %1239 = vrot.lane.b32.xlu0 %v5111_v17, %s4867_s7  ;;  %v1482_v23 = vsel %vm1480_vm3, %v1445_v16, %v5156_v33  ;;  %v279_v33 = vld [vmem:[%s4925_s25 + $0xb0] sm:$0xff]  ;;  %v407_v50 = vrot.slane %v5268_v34, 1  ;;  %v514_v6 = vrot.slane %v5268_v34, 2 }
  0x8e   : > { %v515_v8 = vrot.slane %v279_v33, 2 }
  0x8f   : > { %v5167_v38 = vpop.permute.xlu1 %797  ;;  %v796_v39 = vpop.permute.xlu0 %795 }
  0x90   : > { %v1518_v9 = vsel %vm1517_vm4, %v1481_v5, %v796_v39  ;;  %v1519_v24 = vsel %vm1517_vm4, %v1482_v23, %v5167_v38 }
  0x91   : > { %595 = vrot.lane.b32.xlu1 %v5128_v21, %s4862_s27  ;;  %1347 = vrot.lane.b32.xlu0 %v5165_v35, %s4868_s11 }
  0x93   : > { %v5176_v41 = vpop.permute.xlu1 %583  ;;  %v904_v42 = vpop.permute.xlu0 %903 }
  0x94   : > { %v1555_v11 = vsel %vm1554_vm5, %v1518_v9, %v904_v42  ;;  %v1446_v60 = vsel %vm1443_vm2, %v4931_v1, %v5176_v41 }
  0x95   : > { %597 = vrot.lane.b32.xlu1 %v5125_v20, %s4862_s27  ;;  %1349 = vrot.lane.b32.xlu0 %v5174_v40, %s4868_s11 }
  0x97   : > { %v1012_v45 = vpop.permute.xlu1 %1011  ;;  %v906_v46 = vpop.permute.xlu0 %905 }
  0x98   : > { %v1592_v12 = vsel %vm1591_vm6, %v1555_v11, %v1012_v45  ;;  %v1556_v30 = vsel %vm1554_vm5, %v1519_v24, %v906_v46  ;;  %v280_v45 = vld [vmem:[%s4925_s25 + $0xb8] sm:$0x3]  ;;  %v408_v46 = vrot.slane %v279_v33, 1  ;;  %v5350_v24 = vld [vmem:[%s4925_s25 + $0xc8] sm:$0xff] }
  0x99   : > { %705 = vrot.lane.b32.xlu1 %v5183_v43, %s4861_s26  ;;  %703 = vrot.lane.b32.xlu0 %v275_v44, %s4861_s26  ;;  %v410_v49 = vrot.slane %v280_v45, 1 }
  0x9b   : > { %v5189_v47 = vpop.permute.xlu1 %691  ;;  %v5191_v48 = vpop.permute.xlu0 %585 }
  0x9c   : > { %v1483_v5 = vsel %vm1480_vm3, %v1446_v60, %v5189_v47  ;;  %v517_v47 = vrot.slane %v280_v45, 2  ;;  %v1447_v16 = vsel %vm1443_vm2, %v4944_v4, %v5191_v48  ;;  %v413_v45 = vrot.slane %v5350_v24, 1 }
  0x9d   : > { %813 = vrot.lane.b32.xlu1 %v396_v13, %s4863_s28  ;;  %811 = vrot.lane.b32.xlu0 %v5095_v10, %s4863_s28 }
  0x9f   : > { %v1120_v53 = vpop.permute.xlu1 %1119  ;;  %v1014_v54 = vpop.permute.xlu0 %1013 }
  0xa0   : > { %v1629_v13 = vsel %vm1628_vm7, %v1592_v12, %v1120_v53  ;;  %v1593_v31 = vsel %vm1591_vm6, %v1556_v30, %v1014_v54  ;;  %v5291_v53 = vsel %vm371_vm0, %v408_v46, %v410_v49  ;;  %v281_v30 = vld [vmem:[%s4925_s25 + $0xc0] sm:$0xff] }
  0xa1   : > { %921 = vrot.lane.b32.xlu1 %v5143_v27, %s4864_s29  ;;  %919 = vrot.lane.b32.xlu0 %v5146_v28, %s4864_s29  ;;  %v412_v49 = vrot.slane %v281_v30, 1 }
  0xa3   : > { %v5208_v57 = vpop.permute.xlu1 %799  ;;  %v5210_v59 = vpop.permute.xlu0 %693 }
  0xa4   : > { %v1520_v9 = vsel %vm1517_vm4, %v1483_v5, %v5208_v57 }
  0xa5   : > { %1029 = vrot.lane.b32.xlu1 %v5203_v55, %s4865_s9  ;;  %1027 = vrot.lane.b32.xlu0 %v5206_v56, %s4865_s9 }
  0xa7   : > { %v1228_v62 = vpop.permute.xlu1 %1227  ;;  %v1122_v63 = vpop.permute.xlu0 %1121 }
  0xa8   : > { %v1630_v32 = vsel %vm1628_vm7, %v1593_v31, %v1122_v63 }
  0xa9   : > { %1137 = vrot.lane.b32.xlu1 %v5118_v19, %s4866_s22  ;;  %1135 = vrot.lane.b32.xlu0 %v5111_v17, %s4866_s22  ;;  %v1666_v17 = vsel %vm1665_vm8, %v1629_v13, %v1228_v62 }
  0xab   : > { %v5225_v7 = vpop.permute.xlu1 %907  ;;  %v5227_v10 = vpop.permute.xlu0 %801 }
  0xac   : > { %v1557_v1 = vsel %vm1554_vm5, %v1520_v9, %v5225_v7 }
  0xad   : > { %1245 = vrot.lane.b32.xlu1 %v5174_v40, %s4867_s7  ;;  %1243 = vrot.lane.b32.xlu0 %v5165_v35, %s4867_s7 }
  0xaf   : > { %v1336_v18 = vpop.permute.xlu1 %1335  ;;  %v1230_v19 = vpop.permute.xlu0 %1229 }
  0xb0   : > { %v1703_v22 = vsel %vm1702_vm9, %v1666_v17, %v1336_v18  ;;  %v1667_v36 = vsel %vm1665_vm8, %v1630_v32, %v1230_v19  ;;  %v1484_v17 = vsel %vm1480_vm3, %v1447_v16, %v5210_v59  ;;  %v5338_v18 = vsel %vm478_vm1, %v515_v8, %v517_v47 }
  0xb1   : > { %599 = vrot.lane.b32.xlu1 %v275_v44, %s4862_s27  ;;  %1351 = vrot.lane.b32.xlu0 %v5237_v14, %s4868_s11  ;;  %v1521_v19 = vsel %vm1517_vm4, %v1484_v17, %v5227_v10 }
  0xb2   : > { %4175 = vmatprep.mubr.msk.f32.mxu0 %vm1755_vm10, %v1703_v22 }
  0xb3   : > { %v5255_v26 = vpop.permute.xlu1 %909  ;;  %v5257_v29 = vpop.permute.xlu0 %587 }
  0xb4   : > { %v1558_v4 = vsel %vm1554_vm5, %v1521_v19, %v5255_v26  ;;  %v5426_v19 = vld [vmem:[%s4925_s25 + $0xe0] sm:$0xff] }
  0xb5   : > { %601 = vrot.lane.b32.xlu1 %v5183_v43, %s4862_s27  ;;  %1353 = vrot.lane.b32.xlu0 %v5251_v3, %s4868_s11 }
  0xb7   : > { %v1338_v38 = vpop.permute.xlu1 %1337  ;;  %v1016_v39 = vpop.permute.xlu0 %1015 }
  0xb8   : > { %v1704_v42 = vsel %vm1702_vm9, %v1667_v36, %v1338_v38  ;;  %v1594_v41 = vsel %vm1591_vm6, %v1557_v1, %v1016_v39  ;;  %v283_v38 = vld [vmem:[%s4925_s25 + $0xd0] sm:$0x3]  ;;  %v1448_v39 = vsel %vm1443_vm2, %v4928_v0, %v5257_v29 }
  0xb9   : > { %709 = vrot.lane.b32.xlu1 %v279_v33, %s4861_s26  ;;  %707 = vrot.lane.b32.xlu0 %v5268_v34, %s4861_s26 }
  0xba   : > { %4176 = vmatmul.mubr.msk.f32.vlgmr.msra.gmra.mrb[0].mxu0 %vm1755_vm10, %v1704_v42 }
  0xbb   : > { %v5276_v43 = vpop.permute.xlu1 %695  ;;  %v5278_v44 = vpop.permute.xlu0 %589 }
  0xbc   : > { %v1485_v42 = vsel %vm1480_vm3, %v1448_v39, %v5276_v43  ;;  %v1449_v0 = vsel %vm1443_vm2, %v4938_v2, %v5278_v44 }
  0xbd   : > { %817 = vrot.lane.b32.xlu1 %v5143_v27, %s4863_s28  ;;  %815 = vrot.lane.b32.xlu0 %v5146_v28, %s4863_s28  ;;  %v5294_v27 = vsel %vm371_vm0, %v407_v50, %v408_v46  ;;  %v415_v46 = vrot.slane %v283_v38, 1 }
  0xbf   : > { %v1124_v51 = vpop.permute.xlu1 %1123  ;;  %v1018_v52 = vpop.permute.xlu0 %1017  ;;  %v5384_v43 = vsel %vm371_vm0, %v413_v45, %v415_v46 }
  0xc0   : > { %v1595_v48 = vsel %vm1591_vm6, %v1558_v4, %v1018_v52 }
  0xc1   : > { %925 = vrot.lane.b32.xlu1 %v5203_v55, %s4864_s29  ;;  %923 = vrot.lane.b32.xlu0 %v5206_v56, %s4864_s29 }
  0xc3   : > { %v804_v54 = vpop.permute.xlu1 %803  ;;  %v5296_v28 = vpop.permute.xlu0 %697 }
  0xc4   : > { %v1522_v50 = vsel %vm1517_vm4, %v1485_v42, %v804_v54  ;;  %v5387_v54 = vsel %vm371_vm0, %v412_v49, %v413_v45 }
  0xc5   : > { %1033 = vrot.lane.b32.xlu1 %v5291_v53, %s4865_s9  ;;  %1031 = vrot.lane.b32.xlu0 %v5294_v27, %s4865_s9 }
  0xc7   : > { %v1232_v62 = vpop.permute.xlu1 %1231  ;;  %v1126_v63 = vpop.permute.xlu0 %1125 }
  0xc8   : > { %v1632_v59 = vsel %vm1628_vm7, %v1595_v48, %v1126_v63 }
  0xc9   : > { %1141 = vrot.lane.b32.xlu1 %v5174_v40, %s4866_s22  ;;  %1139 = vrot.lane.b32.xlu0 %v5165_v35, %s4866_s22  ;;  %v1631_v35 = vsel %vm1628_vm7, %v1594_v41, %v1124_v51  ;;  %v5323_v40 = vsel %vm478_vm1, %v514_v6, %v515_v8  ;;  %v519_v41 = vrot.slane %v281_v30, 2 }
  0xca   : > { %v1668_v57 = vsel %vm1665_vm8, %v1631_v35, %v1232_v62  ;;  %v520_v35 = vrot.slane %v5350_v24, 2 }
  0xcb   : > { %v912_v11 = vpop.permute.xlu1 %911  ;;  %v806_v12 = vpop.permute.xlu0 %805 }
  0xcc   : > { %v1559_v60 = vsel %vm1554_vm5, %v1522_v50, %v912_v11 }
  0xcd   : > { %1249 = vrot.lane.b32.xlu1 %v5251_v3, %s4867_s7  ;;  %1247 = vrot.lane.b32.xlu0 %v5237_v14, %s4867_s7 }
  0xcf   : > { %v1340_v13 = vpop.permute.xlu1 %1339  ;;  %v1234_v15 = vpop.permute.xlu0 %1233 }
  0xd0   : > { %v1705_v7 = vsel %vm1702_vm9, %v1668_v57, %v1340_v13  ;;  %v1669_v10 = vsel %vm1665_vm8, %v1632_v59, %v1234_v15  ;;  %v522_v13 = vrot.slane %v283_v38, 2 }
  0xd1   : > { %603 = vrot.lane.b32.xlu1 %v5268_v34, %s4862_s27  ;;  %1355 = vrot.lane.b32.xlu0 %v5323_v40, %s4868_s11 }
  0xd2   : > { %4178 = vmatprep.mubr.msk.f32.mxu0 %vm1755_vm10, %v1705_v7  ;;  %v5419_v7 = vsel %vm478_vm1, %v520_v35, %v522_v13  ;;  %v2625_v13 = vld [vmem:[%s7930_s3 + $0x128] sm:$0xff] }
  0xd3   : > { %v1020_v22 = vpop.permute.xlu1 %1019  ;;  %v914_v23 = vpop.permute.xlu0 %913 }
  0xd5   : > { %605 = vrot.lane.b32.xlu1 %v279_v33, %s4862_s27  ;;  %1357 = vrot.lane.b32.xlu0 %v5338_v18, %s4868_s11 }
  0xd7   : > { %v1022_v31 = vpop.permute.xlu1 %1021  ;;  %v1342_v32 = vpop.permute.xlu0 %1341 }
  0xd8   : > { %v1706_v36 = vsel %vm1702_vm9, %v1669_v10, %v1342_v32  ;;  %v418_v32 = vrot.slane %v5426_v19, 1 }
  0xd9   : > { %713 = vrot.lane.b32.xlu1 %v5350_v24, %s4861_s26  ;;  %711 = vrot.lane.b32.xlu0 %v281_v30, %s4861_s26 }
  0xda   : > { %4179 = vmatmul.mubr.msk.f32.gmra.mrb[2].mxu0 %vm1755_vm10, %v1706_v36 }
  0xdb   : > { %v1130_v26 = vpop.permute.xlu1 %1129  ;;  %v1128_v33 = vpop.permute.xlu0 %1127 }
  0xdd   : > { %821 = vrot.lane.b32.xlu1 %v5203_v55, %s4863_s28  ;;  %819 = vrot.lane.b32.xlu0 %v5206_v56, %s4863_s28  ;;  %v1596_v55 = vsel %vm1591_vm6, %v1559_v60, %v1020_v22  ;;  %v1486_v56 = vsel %vm1480_vm3, %v1449_v0, %v5296_v28  ;;  %v5429_v22 = vld [vmem:[%s4925_s25 + $0xd8] sm:$0xff] }
  0xde   : > { %v1633_v29 = vsel %vm1628_vm7, %v1596_v55, %v1128_v33  ;;  %v1523_v2 = vsel %vm1517_vm4, %v1486_v56, %v806_v12 }
  0xdf   : > { %v1238_v51 = vpop.permute.xlu1 %1237  ;;  %v1236_v52 = vpop.permute.xlu0 %1235  ;;  %v1560_v5 = vsel %vm1554_vm5, %v1523_v2, %v914_v23 }
  0xe0   : > { %v1670_v44 = vsel %vm1665_vm8, %v1633_v29, %v1236_v52  ;;  %v1597_v28 = vsel %vm1591_vm6, %v1560_v5, %v1022_v31  ;;  %v524_v5 = vrot.slane %v5429_v22, 2 }
  0xe1   : > { %929 = vrot.lane.b32.xlu1 %v5291_v53, %s4864_s29  ;;  %927 = vrot.lane.b32.xlu0 %v5294_v27, %s4864_s29  ;;  %v1634_v8 = vsel %vm1628_vm7, %v1597_v28, %v1130_v26 }
  0xe2   : > { %v1671_v9 = vsel %vm1665_vm8, %v1634_v8, %v1238_v51 }
  0xe3   : > { %v592_v62 = vpop.permute.xlu1 %591  ;;  %v1344_v63 = vpop.permute.xlu0 %1343 }
  0xe4   : > { %v1707_v6 = vsel %vm1702_vm9, %v1670_v44, %v1344_v63  ;;  %v1450_v48 = vsel %vm1443_vm2, %v4992_v25, %v592_v62  ;;  %v417_v25 = vrot.slane %v5429_v22, 1  ;;  %v2620_v62 = vld [vmem:[%s7930_s3 + $0x100] sm:$0xff]  ;;  %v2621_v63 = vld [vmem:[%s7930_s3 + $0x108] sm:$0xff] }
  0xe5   : > { %1037 = vrot.lane.b32.xlu1 %v5384_v43, %s4865_s9  ;;  %1035 = vrot.lane.b32.xlu0 %v5387_v54, %s4865_s9  ;;  %v4374_v28 = vpack.c.bf16 %v2621_v63, %v2620_v62 }
  0xe6   : > { %4181 = vmatprep.mubr.msk.f32.mxu0 %vm1755_vm10, %v1707_v6  ;;  %v5463_v45 = vsel %vm371_vm0, %v417_v25, %v418_v32  ;;  %v525_v6 = vrot.slane %v5426_v19, 2 }
  0xe7   : > { %v594_v11 = vpop.permute.xlu1 %593  ;;  %v1346_v12 = vpop.permute.xlu0 %1345 }
  0xe8   : > { %v1708_v1 = vsel %vm1702_vm9, %v1671_v9, %v1346_v12  ;;  %v1451_v10 = vsel %vm1443_vm2, %v5021_v37, %v594_v11  ;;  %v2622_v9 = vld [vmem:[%s7930_s3 + $0x110] sm:$0xff]  ;;  %v5509_v11 = vsel %vm478_vm1, %v524_v5, %v525_v6 }
  0xe9   : > { %1145 = vrot.lane.b32.xlu1 %v5251_v3, %s4866_s22  ;;  %1143 = vrot.lane.b32.xlu0 %v5237_v14, %s4866_s22  ;;  %v5413_v3 = vsel %vm478_vm1, %v519_v41, %v520_v35 }
  0xea   : > { %4182 = vmatmul.mubr.msk.f32.gmra.mrb[4].mxu0 %vm1755_vm10, %v1708_v1  ;;  %v2623_v1 = vld [vmem:[%s7930_s3 + $0x118] sm:$0xff] }
  0xeb   : > { %v702_v47 = vpop.permute.xlu1 %701  ;;  %v700_v57 = vpop.permute.xlu0 %699 }
  0xec   : > { %v1487_v31 = vsel %vm1480_vm3, %v1450_v48, %v700_v57  ;;  %v1488_v37 = vsel %vm1480_vm3, %v1451_v10, %v702_v47  ;;  %v4377_v47 = vpack.c.bf16 %v2623_v1, %v2622_v9  ;;  %v2624_v57 = vld [vmem:[%s7930_s3 + $0x120] sm:$0xff]  ;;  %v5584_v48 = vld [vmem:[%s4925_s25 + $0xf8] sm:$0xff] }
  0xed   : > { %1253 = vrot.lane.b32.xlu1 %v5338_v18, %s4867_s7  ;;  %1251 = vrot.lane.b32.xlu0 %v5323_v40, %s4867_s7  ;;  %v2628_v10 = vld [vmem:[%s7930_s3 + $0x140] sm:$0xff]  ;;  %v2635_v9 = vld [vmem:[%s7930_s3 + $0x178] sm:$0xff] }
  0xef   : > { %v810_v14 = vpop.permute.xlu1 %809  ;;  %v808_v15 = vpop.permute.xlu0 %807 }
  0xf0   : > { %v1524_v26 = vsel %vm1517_vm4, %v1487_v31, %v808_v15  ;;  %v1525_v46 = vsel %vm1517_vm4, %v1488_v37, %v810_v14  ;;  %v4380_v15 = vpack.c.bf16 %v2625_v13, %v2624_v57  ;;  %v2629_v31 = vld [vmem:[%s7930_s3 + $0x148] sm:$0xff]  ;;  %v423_v37 = vrot.slane %v5584_v48, 1  ;;  %v2636_v13 = vld [vmem:[%s7930_s3 + $0x180] sm:$0xff] }
  0xf1   : > { %607 = vrot.lane.b32.xlu1 %v281_v30, %s4862_s27  ;;  %1359 = vrot.lane.b32.xlu0 %v5413_v3, %s4868_s11  ;;  %v5438_v30 = vld [vmem:[%s4925_s25 + $0xe8] sm:$0x3] }
  0xf2   : > { %v420_v36 = vrot.slane %v5438_v30, 1  ;;  %v527_v12 = vrot.slane %v5438_v30, 2 }
  0xf3   : > { %v918_v16 = vpop.permute.xlu1 %917  ;;  %v916_v17 = vpop.permute.xlu0 %915 }
  0xf4   : > { %v1561_v39 = vsel %vm1554_vm5, %v1524_v26, %v916_v17  ;;  %v5460_v42 = vsel %vm371_vm0, %v418_v32, %v420_v36  ;;  %v1562_v52 = vsel %vm1554_vm5, %v1525_v46, %v918_v16  ;;  %v5531_v14 = vsel %vm478_vm1, %v525_v6, %v527_v12  ;;  %v5604_v26 = vld [vmem:[%s4925_s25 + $0x100] sm:$0x3] }
  0xf5   : > { %609 = vrot.lane.b32.xlu1 %v5350_v24, %s4862_s27  ;;  %1361 = vrot.lane.b32.xlu0 %v5419_v7, %s4868_s11 }
  0xf7   : > { %v1026_v23 = vpop.permute.xlu1 %1025  ;;  %v1024_v4 = vpop.permute.xlu0 %1023 }
  0xf8   : > { %v1599_v0 = vsel %vm1591_vm6, %v1562_v52, %v1026_v23  ;;  %v2626_v23 = vld [vmem:[%s7930_s3 + $0x130] sm:$0xff] }
  0xf9   : > { %717 = vrot.lane.b32.xlu1 %v5426_v19, %s4861_s26  ;;  %715 = vrot.lane.b32.xlu0 %v5429_v22, %s4861_s26 }
  0xfb   : > { %v1134_v59 = vpop.permute.xlu1 %1133  ;;  %v1132_v24 = vpop.permute.xlu0 %1131 }
  0xfc   : > { %v1636_v55 = vsel %vm1628_vm7, %v1599_v0, %v1134_v59  ;;  %v5587_v59 = vld [vmem:[%s4925_s25 + $0xf0] sm:$0xff]  ;;  %v2633_v0 = vld [vmem:[%s7930_s3 + $0x168] sm:$0xff] }
  0xfd   : > { %825 = vrot.lane.b32.xlu1 %v5291_v53, %s4863_s28  ;;  %823 = vrot.lane.b32.xlu0 %v5294_v27, %s4863_s28  ;;  %v1598_v53 = vsel %vm1591_vm6, %v1561_v39, %v1024_v4  ;;  %v2627_v4 = vld [vmem:[%s7930_s3 + $0x138] sm:$0xff] }
  0xfe   : > { %v1635_v27 = vsel %vm1628_vm7, %v1598_v53, %v1132_v24  ;;  %v4383_v24 = vpack.c.bf16 %v2627_v4, %v2626_v23  ;;  %v2631_v39 = vld [vmem:[%s7930_s3 + $0x158] sm:$0xff] }
  0xff   : > { %v1242_v33 = vpop.permute.xlu1 %1241  ;;  %v1240_v38 = vpop.permute.xlu0 %1239 }
 0x100   : > { %v1672_v49 = vsel %vm1665_vm8, %v1635_v27, %v1240_v38  ;;  %v1673_v56 = vsel %vm1665_vm8, %v1636_v55, %v1242_v33  ;;  %v4386_v33 = vpack.c.bf16 %v2629_v31, %v2628_v10 }
 0x101   : > { %933 = vrot.lane.b32.xlu1 %v5384_v43, %s4864_s29  ;;  %931 = vrot.lane.b32.xlu0 %v5387_v54, %s4864_s29 }
 0x103   : > { %v5467_v50 = vpop.permute.xlu1 %595  ;;  %v1348_v51 = vpop.permute.xlu0 %1347 }
 0x104   : > { %v1709_v60 = vsel %vm1702_vm9, %v1672_v49, %v1348_v51  ;;  %v1452_v32 = vsel %vm1443_vm2, %v5065_v58, %v5467_v50  ;;  %v2630_v58 = vld [vmem:[%s7930_s3 + $0x150] sm:$0xff] }
 0x105   : > { %1041 = vrot.lane.b32.xlu1 %v5460_v42, %s4865_s9  ;;  %1039 = vrot.lane.b32.xlu0 %v5463_v45, %s4865_s9  ;;  %v4389_v27 = vpack.c.bf16 %v2631_v39, %v2630_v58  ;;  %v2642_v58 = vld [vmem:[%s7930_s3 + $0x1b0] sm:$0xff]  ;;  %v2643_v39 = vld [vmem:[%s7930_s3 + $0x1b8] sm:$0xff] }
 0x106   : > { %4184 = vmatprep.mubr.msk.f32.mxu0 %vm1755_vm10, %v1709_v60  ;;  %v2632_v60 = vld [vmem:[%s7930_s3 + $0x160] sm:$0xff] }
 0x107   : > { %v5479_v29 = vpop.permute.xlu1 %597  ;;  %v1350_v2 = vpop.permute.xlu0 %1349 }
 0x108   : > { %v1710_v44 = vsel %vm1702_vm9, %v1673_v56, %v1350_v2  ;;  %v1453_v38 = vsel %vm1443_vm2, %v5075_v61, %v5479_v29  ;;  %v425_v61 = vrot.slane %v5604_v26, 1  ;;  %v4392_v2 = vpack.c.bf16 %v2633_v0, %v2632_v60  ;;  %v5751_v60 = vld [vmem:[%s4925_s25 + $0x118] sm:$0x3] }
 0x109   : > { %1149 = vrot.lane.b32.xlu1 %v5338_v18, %s4866_s22  ;;  %1147 = vrot.lane.b32.xlu0 %v5323_v40, %s4866_s22  ;;  %v7934_v40 = vmov 0.0|0.0  }
 0x10a   : > { %4185 = vmatmul.mubr.msk.f32.gmra.mrb[6].mxu0 %vm1755_vm10, %v1710_v44  ;;  %4373 = vmatprep.subr.bf16.mxu1 %v7934_v40  ;;  %v5645_v56 = vsel %vm371_vm0, %v423_v37, %v425_v61  ;;  %v5734_v61 = vld [vmem:[%s4925_s25 + $0x108] sm:$0xff] }
 0x10b   : > { %v5495_v8 = vpop.permute.xlu1 %705  ;;  %v5497_v18 = vpop.permute.xlu0 %703  ;;  %4325 = vmatprep.subr.bf16.mxu0 %v7934_v40  ;;  %4375 = vmatpush1.bf16.msra.mxu1 %v4374_v28 }
 0x10c   : > { %4376 = vmatprep.subr.bf16.mxu1 %v7934_v40  ;;  %v1489_v53 = vsel %vm1480_vm3, %v1452_v32, %v5497_v18  ;;  %v1490_v50 = vsel %vm1480_vm3, %v1453_v38, %v5495_v8  ;;  %v2634_v18 = vld [vmem:[%s7930_s3 + $0x170] sm:$0xff] }
 0x10d   : > { %1257 = vrot.lane.b32.xlu1 %v5419_v7, %s4867_s7  ;;  %1255 = vrot.lane.b32.xlu0 %v5413_v3, %s4867_s7  ;;  %v4395_v1 = vpack.c.bf16 %v2635_v9, %v2634_v18  ;;  %v2648_v9 = vld [vmem:[%s7930_s3 + $0x1e0] sm:$0xff] }
 0x10f   : > { %v5516_v41 = vpop.permute.xlu1 %813  ;;  %v5518_v35 = vpop.permute.xlu0 %811  ;;  %4378 = vmatpush1.bf16.msra.mxu1 %v4377_v47 }
 0x110   : > { %4379 = vmatprep.subr.bf16.mxu1 %v7934_v40  ;;  %v1527_v44 = vsel %vm1517_vm4, %v1490_v50, %v5516_v41 }
 0x111   : > { %611 = vrot.lane.b32.xlu1 %v5429_v22, %s4862_s27  ;;  %1363 = vrot.lane.b32.xlu0 %v5509_v11, %s4868_s11  ;;  %v4870_v22 = vmov 0.0  }
 0x112   : > { %2199 = vst [vmem:[#allocation2 + $0x11] sm:$0x1] %v4870_v22  ;;  %2181 = vst [vmem:[#allocation2] sm:$0x1] %v4870_v22 }
 0x113   : > { %v5533_v16 = vpop.permute.xlu1 %921  ;;  %v5535_v17 = vpop.permute.xlu0 %919  ;;  %2182 = vst [vmem:[#allocation2 + $0x18] sm:$0x1] %v4870_v22  ;;  %2183 = vst [vmem:[#allocation2 + $0x30] sm:$0x1] %v4870_v22  ;;  %4381 = vmatpush1.bf16.msra.mxu1 %v4380_v15  ;;  %v2637_v15 = vld [vmem:[%s7930_s3 + $0x188] sm:$0xff] }
 0x114   : > { %2184 = vst [vmem:[#allocation2 + $0x48] sm:$0x1] %v4870_v22  ;;  %2185 = vst [vmem:[#allocation2 + $0x60] sm:$0x1] %v4870_v22  ;;  %4382 = vmatprep.subr.bf16.mxu1 %v7934_v40  ;;  %v1564_v6 = vsel %vm1554_vm5, %v1527_v44, %v5533_v16  ;;  %v529_v16 = vrot.slane %v5587_v59, 2  ;;  %v4398_v23 = vpack.c.bf16 %v2637_v15, %v2636_v13  ;;  %v2647_v44 = vld [vmem:[%s7930_s3 + $0x1d8] sm:$0xff] }
 0x115   : > { %2186 = vst [vmem:[#allocation2 + $0x78] sm:$0x1] %v4870_v22  ;;  %2187 = vst [vmem:[#allocation2 + $0x90] sm:$0x1] %v4870_v22  ;;  %613 = vrot.lane.b32.xlu1 %v5426_v19, %s4862_s27  ;;  %1365 = vrot.lane.b32.xlu0 %v5531_v14, %s4868_s11 }
 0x116   : > { %2188 = vst [vmem:[#allocation2 + $0xa8] sm:$0x1] %v4870_v22  ;;  %2189 = vst [vmem:[#allocation2 + $0xc0] sm:$0x1] %v4870_v22 }
 0x117   : > { %2190 = vst [vmem:[#allocation2 + $0xd8] sm:$0x1] %v4870_v22  ;;  %2191 = vst [vmem:[#allocation2 + $0xf0] sm:$0x1] %v4870_v22  ;;  %v1030_v30 = vpop.permute.xlu1 %1029  ;;  %v1028_v19 = vpop.permute.xlu0 %1027  ;;  %4384 = vmatpush1.bf16.msra.mxu1 %v4383_v24  ;;  %v2639_v24 = vld [vmem:[%s7930_s3 + $0x198] sm:$0xff] }
 0x118   : > { %2192 = vst [vmem:[#allocation2 + $0x108] sm:$0x1] %v4870_v22  ;;  %2193 = vst [vmem:[#allocation2 + $0x120] sm:$0x1] %v4870_v22  ;;  %4385 = vmatprep.subr.bf16.mxu1 %v7934_v40  ;;  %v1601_v8 = vsel %vm1591_vm6, %v1564_v6, %v1030_v30 }
 0x119   : > { %2194 = vst [vmem:[#allocation2 + $0x138] sm:$0x1] %v4870_v22  ;;  %2195 = vst [vmem:[#allocation2 + $0x150] sm:$0x1] %v4870_v22  ;;  %721 = vrot.lane.b32.xlu1 %v5584_v48, %s4861_s26  ;;  %719 = vrot.lane.b32.xlu0 %v5587_v59, %s4861_s26 }
 0x11a   : > { %2196 = vst [vmem:[#allocation2 + $0x168] sm:$0x1] %v4870_v22  ;;  %2197 = vst [vmem:[#allocation2 + $0x180] sm:$0x1] %v4870_v22 }
 0x11b   : > { %2200 = vst [vmem:[#allocation2 + $0x29] sm:$0x1] %v4870_v22  ;;  %2201 = vst [vmem:[#allocation2 + $0x41] sm:$0x1] %v4870_v22  ;;  %v1138_v36 = vpop.permute.xlu1 %1137  ;;  %v1136_v25 = vpop.permute.xlu0 %1135  ;;  %4387 = vmatpush1.bf16.msra.mxu1 %v4386_v33 }
 0x11c   : > { %2202 = vst [vmem:[#allocation2 + $0x59] sm:$0x1] %v4870_v22  ;;  %2203 = vst [vmem:[#allocation2 + $0x71] sm:$0x1] %v4870_v22  ;;  %4388 = vmatprep.subr.bf16.mxu1 %v7934_v40  ;;  %v1638_v12 = vsel %vm1628_vm7, %v1601_v8, %v1138_v36  ;;  %v2640_v36 = vld [vmem:[%s7930_s3 + $0x1a0] sm:$0xff] }
 0x11d   : > { %2204 = vst [vmem:[#allocation2 + $0x89] sm:$0x1] %v4870_v22  ;;  %2205 = vst [vmem:[#allocation2 + $0xa1] sm:$0x1] %v4870_v22  ;;  %829 = vrot.lane.b32.xlu1 %v5384_v43, %s4863_s28  ;;  %827 = vrot.lane.b32.xlu0 %v5387_v54, %s4863_s28  ;;  %v422_v43 = vrot.slane %v5587_v59, 1  ;;  %v1526_v54 = vsel %vm1517_vm4, %v1489_v53, %v5518_v35  ;;  %v5731_v53 = vld [vmem:[%s4925_s25 + $0x110] sm:$0xff] }
 0x11e   : > { %2206 = vst [vmem:[#allocation2 + $0xb9] sm:$0x1] %v4870_v22  ;;  %2207 = vst [vmem:[#allocation2 + $0xd1] sm:$0x1] %v4870_v22  ;;  %v1563_v51 = vsel %vm1554_vm5, %v1526_v54, %v5535_v17  ;;  %v530_v17 = vrot.slane %v5584_v48, 2 }
 0x11f   : > { %2208 = vst [vmem:[#allocation2 + $0xe9] sm:$0x1] %v4870_v22  ;;  %2209 = vst [vmem:[#allocation2 + $0x101] sm:$0x1] %v4870_v22  ;;  %v1246_v46 = vpop.permute.xlu1 %1245  ;;  %v1244_v49 = vpop.permute.xlu0 %1243  ;;  %v1600_v52 = vsel %vm1591_vm6, %v1563_v51, %v1028_v19  ;;  %v5648_v29 = vsel %vm371_vm0, %v422_v43, %v423_v37  ;;  %4390 = vmatpush1.bf16.msra.mxu1 %v4389_v27  ;;  %v532_v19 = vrot.slane %v5604_v26, 2 }
 0x120   : > { %2210 = vst [vmem:[#allocation2 + $0x119] sm:$0x1] %v4870_v22  ;;  %2211 = vst [vmem:[#allocation2 + $0x131] sm:$0x1] %v4870_v22  ;;  %v1637_v55 = vsel %vm1628_vm7, %v1600_v52, %v1136_v25  ;;  %4391 = vmatprep.subr.bf16.mxu1 %v7934_v40  ;;  %v1675_v41 = vsel %vm1665_vm8, %v1638_v12, %v1246_v46  ;;  %v5700_v30 = vsel %vm478_vm1, %v529_v16, %v530_v17  ;;  %v2641_v25 = vld [vmem:[%s7930_s3 + $0x1a8] sm:$0xff]  ;;  %v2644_v46 = vld [vmem:[%s7930_s3 + $0x1c0] sm:$0xff] }
 0x121   : > { %2212 = vst [vmem:[#allocation2 + $0x149] sm:$0x1] %v4870_v22  ;;  %2213 = vst [vmem:[#allocation2 + $0x161] sm:$0x1] %v4870_v22  ;;  %937 = vrot.lane.b32.xlu1 %v5460_v42, %s4864_s29  ;;  %935 = vrot.lane.b32.xlu0 %v5463_v45, %s4864_s29  ;;  %v1674_v62 = vsel %vm1665_vm8, %v1637_v55, %v1244_v49  ;;  %v5717_v26 = vsel %vm478_vm1, %v530_v17, %v532_v19  ;;  %v2645_v49 = vld [vmem:[%s7930_s3 + $0x1c8] sm:$0xff] }
 0x122   : > { %2214 = vst [vmem:[#allocation2 + $0x179] sm:$0x1] %v4870_v22  ;;  %2215 = vst [vmem:[#allocation2 + $0x191] sm:$0x1] %v4870_v22  ;;  %v4404_v33 = vpack.c.bf16 %v2641_v25, %v2640_v36  ;;  %v4407_v43 = vpack.c.bf16 %v2643_v39, %v2642_v58  ;;  %v4410_v0 = vpack.c.bf16 %v2645_v49, %v2644_v46  ;;  %v2649_v12 = vld [vmem:[%s7930_s3 + $0x1e8] sm:$0xff]  ;;  %v5814_v36 = vrot.slane %v4870_v22, 1 }
 0x123   : > { %2216 = vst [vmem:[#allocation2 + $0x1a9] sm:$0x1] %v4870_v22  ;;  %v5653_v63 = vpop.permute.xlu1 %599  ;;  %v1352_v5 = vpop.permute.xlu0 %1351  ;;  %4393 = vmatpush1.bf16.msra.mxu1 %v4392_v2  ;;  %v428_v2 = vrot.slane %v5731_v53, 1  ;;  %v5846_v49 = vld [vmem:[%s4925_s25 + $0x128] sm:$0xff] }
 0x124   : > { %v1711_v28 = vsel %vm1702_vm9, %v1674_v62, %v1352_v5  ;;  %4394 = vmatprep.subr.bf16.mxu1 %v7934_v40  ;;  %v1454_v50 = vsel %vm1443_vm2, %v5128_v21, %v5653_v63  ;;  %v2646_v21 = vld [vmem:[%s7930_s3 + $0x1d0] sm:$0xff]  ;;  %v427_v63 = vrot.slane %v5734_v61, 1  ;;  %3028 = vmatprep.mubr.f32.mxu1 %v5814_v36 }
 0x125   : > { %1045 = vrot.lane.b32.xlu1 %v5645_v56, %s4865_s9  ;;  %1043 = vrot.lane.b32.xlu0 %v5648_v29, %s4865_s9 }
 0x126   : > { %4187 = vmatprep.mubr.msk.f32.mxu0 %vm1755_vm10, %v1711_v28 }
 0x127   : > { %v602_v35 = vpop.permute.xlu1 %601  ;;  %v1354_v47 = vpop.permute.xlu0 %1353  ;;  %4396 = vmatpush1.bf16.msra.mxu1 %v4395_v1 }
 0x128   : > { %v1712_v57 = vsel %vm1702_vm9, %v1675_v41, %v1354_v47  ;;  %4397 = vmatprep.subr.bf16.mxu1 %v7934_v40  ;;  %v1455_v55 = vsel %vm1443_vm2, %v5125_v20, %v602_v35  ;;  %v430_v20 = vrot.slane %v5751_v60, 1  ;;  %v5790_v35 = vsel %vm371_vm0, %v427_v63, %v428_v2 }
 0x129   : > { %1153 = vrot.lane.b32.xlu1 %v5419_v7, %s4866_s22  ;;  %1151 = vrot.lane.b32.xlu0 %v5413_v3, %s4866_s22  ;;  %v2638_v3 = vld [vmem:[%s7930_s3 + $0x190] sm:$0xff]  ;;  %v4416_v47 = vpack.c.bf16 %v2649_v12, %v2648_v9  ;;  %v433_v63 = vrot.slane %v5846_v49, 1 }
 0x12a   : > { %4188 = vmatmul.mubr.msk.f32.gmra.mrb[8].mxu0 %vm1755_vm10, %v1712_v57  ;;  %v4401_v10 = vpack.c.bf16 %v2639_v24, %v2638_v3  ;;  %v5787_v41 = vsel %vm371_vm0, %v428_v2, %v430_v20  ;;  %v2651_v3 = vld [vmem:[%s7930_s3 + $0x1f8] sm:$0xff] }
 0x12b   : > { %v710_v7 = vpop.permute.xlu1 %709  ;;  %v708_v4 = vpop.permute.xlu0 %707  ;;  %4399 = vmatpush1.bf16.msra.mxu1 %v4398_v23 }
 0x12c   : > { %4400 = vmatprep.subr.bf16.mxu1 %v7934_v40  ;;  %v1491_v62 = vsel %vm1480_vm3, %v1454_v50, %v708_v4  ;;  %v1492_v28 = vsel %vm1480_vm3, %v1455_v55, %v710_v7  ;;  %v2650_v4 = vld [vmem:[%s7930_s3 + $0x1f0] sm:$0xff]  ;;  %v5849_v50 = vld [vmem:[%s4925_s25 + $0x120] sm:$0xff] }
 0x12d   : > { %1261 = vrot.lane.b32.xlu1 %v5531_v14, %s4867_s7  ;;  %1259 = vrot.lane.b32.xlu0 %v5509_v11, %s4867_s7  ;;  %v4419_v19 = vpack.c.bf16 %v2651_v3, %v2650_v4 }
 0x12f   : > { %v5703_v31 = vpop.permute.xlu1 %817  ;;  %v816_v32 = vpop.permute.xlu0 %815  ;;  %4402 = vmatpush1.bf16.msra.mxu1 %v4401_v10 }
 0x130   : > { %4403 = vmatprep.subr.bf16.mxu1 %v7934_v40  ;;  %v1529_v57 = vsel %vm1517_vm4, %v1492_v28, %v5703_v31 }
 0x131   : > { %615 = vrot.lane.b32.xlu1 %v5587_v59, %s4862_s27  ;;  %1367 = vrot.lane.b32.xlu0 %v5700_v30, %s4868_s11 }
 0x133   : > { %v926_v38 = vpop.permute.xlu1 %925  ;;  %v924_v37 = vpop.permute.xlu0 %923  ;;  %4405 = vmatpush1.bf16.msra.mxu1 %v4404_v33  ;;  %v534_v33 = vrot.slane %v5734_v61, 2 }
 0x134   : > { %4406 = vmatprep.subr.bf16.mxu1 %v7934_v40  ;;  %v1566_v17 = vsel %vm1554_vm5, %v1529_v57, %v926_v38  ;;  %v535_v38 = vrot.slane %v5731_v53, 2 }
 0x135   : > { %617 = vrot.lane.b32.xlu1 %v5584_v48, %s4862_s27  ;;  %1369 = vrot.lane.b32.xlu0 %v5717_v26, %s4868_s11 }
 0x137   : > { %v1034_v27 = vpop.permute.xlu1 %1033  ;;  %v1032_v54 = vpop.permute.xlu0 %1031  ;;  %4408 = vmatpush1.bf16.msra.mxu1 %v4407_v43 }
 0x138   : > { %4409 = vmatprep.subr.bf16.mxu1 %v7934_v40  ;;  %v1603_v7 = vsel %vm1591_vm6, %v1566_v17, %v1034_v27 }
 0x139   : > { %725 = vrot.lane.b32.xlu1 %v5731_v53, %s4861_s26  ;;  %723 = vrot.lane.b32.xlu0 %v5734_v61, %s4861_s26 }
 0x13b   : > { %v1142_v51 = vpop.permute.xlu1 %1141  ;;  %v1140_v52 = vpop.permute.xlu0 %1139  ;;  %4411 = vmatpush1.bf16.msra.mxu1 %v4410_v0 }
 0x13c   : > { %4412 = vmatprep.subr.bf16.mxu1 %v7934_v40  ;;  %v1640_v24 = vsel %vm1628_vm7, %v1603_v7, %v1142_v51 }
 0x13d   : > { %833 = vrot.lane.b32.xlu1 %v5460_v42, %s4863_s28  ;;  %831 = vrot.lane.b32.xlu0 %v5463_v45, %s4863_s28  ;;  %v4413_v42 = vpack.c.bf16 %v2647_v44, %v2646_v21  ;;  %v1528_v45 = vsel %vm1517_vm4, %v1491_v62, %v816_v32  ;;  %v295_v21 = vld [vmem:[%s4925_s25 + $0x130] sm:$0x3]  ;;  %v4789_v44 = vld [vmem:[%s4925_s25 + $0x98] sm:$0xff] }
 0x13e   : > { %v1565_v8 = vsel %vm1554_vm5, %v1528_v45, %v924_v37  ;;  %v432_v45 = vrot.slane %v5849_v50, 1 }
 0x13f   : > { %v1250_v5 = vpop.permute.xlu1 %1249  ;;  %v1248_v6 = vpop.permute.xlu0 %1247  ;;  %v1602_v18 = vsel %vm1591_vm6, %v1565_v8, %v1032_v54  ;;  %4414 = vmatpush1.bf16.msra.mxu1 %v4413_v42  ;;  %v435_v42 = vrot.slane %v295_v21, 1 }
 0x140   : > { %v1639_v1 = vsel %vm1628_vm7, %v1602_v18, %v1140_v52  ;;  %4415 = vmatprep.subr.bf16.mxu1 %v7934_v40  ;;  %v1677_v10 = vsel %vm1665_vm8, %v1640_v24, %v1250_v5  ;;  %v5880_v12 = vsel %vm371_vm0, %v432_v45, %v433_v63 }
 0x141   : > { %941 = vrot.lane.b32.xlu1 %v5645_v56, %s4864_s29  ;;  %939 = vrot.lane.b32.xlu0 %v5648_v29, %s4864_s29  ;;  %v1676_v13 = vsel %vm1665_vm8, %v1639_v1, %v1248_v6  ;;  %v5877_v9 = vsel %vm371_vm0, %v433_v63, %v435_v42 }
 0x143   : > { %v604_v15 = vpop.permute.xlu1 %603  ;;  %v1356_v16 = vpop.permute.xlu0 %1355  ;;  %4417 = vmatpush1.bf16.msra.mxu1 %v4416_v47 }
 0x144   : > { %v1713_v23 = vsel %vm1702_vm9, %v1676_v13, %v1356_v16  ;;  %4418 = vmatprep.subr.bf16.mxu1 %v7934_v40 }
 0x145   : > { %1049 = vrot.lane.b32.xlu1 %v5787_v41, %s4865_s9  ;;  %1047 = vrot.lane.b32.xlu0 %v5790_v35, %s4865_s9 }
 0x146   : > { %4190 = vmatprep.mubr.msk.f32.mxu0 %vm1755_vm10, %v1713_v23 }
 0x147   : > { %v606_v31 = vpop.permute.xlu1 %605  ;;  %v1358_v32 = vpop.permute.xlu0 %1357  ;;  %4420 = vmatpush1.bf16.msra.mxu1 %v4419_v19  ;;  %v539_v19 = vrot.slane %v5849_v50, 2 }
 0x148   : > { %v1714_v25 = vsel %vm1702_vm9, %v1677_v10, %v1358_v32  ;;  %4421 = vmatprep.subr.bf16.mxu1 %v7934_v40  ;;  %v1457_v62 = vsel %vm1443_vm2, %v4789_v44, %v606_v31  ;;  %v540_v10 = vrot.slane %v5846_v49, 2 }
 0x149   : > { %1157 = vrot.lane.b32.xlu1 %v5531_v14, %s4866_s22  ;;  %1155 = vrot.lane.b32.xlu0 %v5509_v11, %s4866_s22  ;;  %v5831_v11 = vsel %vm478_vm1, %v534_v33, %v535_v38  ;;  %v537_v14 = vrot.slane %v5751_v60, 2  ;;  %v4788_v60 = vld [vmem:[%s4925_s25 + $0x90] sm:$0xff] }
 0x14a   : > { %4191 = vmatmul.mubr.msk.f32.gmra.mrb[10].mxu0 %vm1755_vm10, %v1714_v25  ;;  %v1456_v0 = vsel %vm1443_vm2, %v4788_v60, %v604_v15  ;;  %v298_v60 = vld [vmem:[%s4925_s25 + $0x148] sm:$0x3] }
 0x14b   : > { %v714_v37 = vpop.permute.xlu1 %713  ;;  %v712_v58 = vpop.permute.xlu0 %711  ;;  %v5839_v27 = vsel %vm478_vm1, %v535_v38, %v537_v14  ;;  %v5921_v14 = vld [vmem:[%s4925_s25 + $0x140] sm:$0xff]  ;;  %v440_v44 = vrot.slane %v298_v60, 1 }
 0x14c   : > { %v1493_v20 = vsel %vm1480_vm3, %v1456_v0, %v712_v58  ;;  %v1494_v8 = vsel %vm1480_vm3, %v1457_v62, %v714_v37  ;;  %v4790_v0 = vld [vmem:[%s4925_s25 + $0xb0] sm:$0xff] }
 0x14d   : > { %1265 = vrot.lane.b32.xlu1 %v5717_v26, %s4867_s7  ;;  %1263 = vrot.lane.b32.xlu0 %v5700_v30, %s4867_s7 }
 0x14f   : > { %v822_v39 = vpop.permute.xlu1 %821  ;;  %v820_v43 = vpop.permute.xlu0 %819 }
 0x150   : > { %v1530_v5 = vsel %vm1517_vm4, %v1493_v20, %v820_v43  ;;  %v1531_v1 = vsel %vm1517_vm4, %v1494_v8, %v822_v39  ;;  %v296_v39 = vld [vmem:[%s4925_s25 + $0x138] sm:$0xff] }
 0x151   : > { %619 = vrot.lane.b32.xlu1 %v5734_v61, %s4862_s27  ;;  %1371 = vrot.lane.b32.xlu0 %v5831_v11, %s4868_s11  ;;  %v437_v62 = vrot.slane %v296_v39, 1 }
 0x153   : > { %v930_v54 = vpop.permute.xlu1 %929  ;;  %v928_v46 = vpop.permute.xlu0 %927 }
 0x154   : > { %v1567_v18 = vsel %vm1554_vm5, %v1530_v5, %v928_v46  ;;  %v1568_v15 = vsel %vm1554_vm5, %v1531_v1, %v930_v54 }
 0x155   : > { %621 = vrot.lane.b32.xlu1 %v5731_v53, %s4862_s27  ;;  %1373 = vrot.lane.b32.xlu0 %v5839_v27, %s4868_s11 }
 0x157   : > { %v1038_v51 = vpop.permute.xlu1 %1037  ;;  %v1036_v52 = vpop.permute.xlu0 %1035 }
 0x158   : > { %v1605_v17 = vsel %vm1591_vm6, %v1568_v15, %v1038_v51 }
 0x159   : > { %729 = vrot.lane.b32.xlu1 %v5846_v49, %s4861_s26  ;;  %727 = vrot.lane.b32.xlu0 %v5849_v50, %s4861_s26 }
 0x15b   : > { %v1146_v55 = vpop.permute.xlu1 %1145  ;;  %v1144_v2 = vpop.permute.xlu0 %1143 }
 0x15c   : > { %v1642_v23 = vsel %vm1628_vm7, %v1605_v17, %v1146_v55 }
 0x15d   : > { %837 = vrot.lane.b32.xlu1 %v5645_v56, %s4863_s28  ;;  %835 = vrot.lane.b32.xlu0 %v5648_v29, %s4863_s28  ;;  %v1604_v56 = vsel %vm1591_vm6, %v1567_v18, %v1036_v52 }
 0x15e   : > { %v1641_v29 = vsel %vm1628_vm7, %v1604_v56, %v1144_v2 }
 0x15f   : > { %v1254_v6 = vpop.permute.xlu1 %1253  ;;  %v1252_v28 = vpop.permute.xlu0 %1251 }
 0x160   : > { %v1678_v47 = vsel %vm1665_vm8, %v1641_v29, %v1252_v28  ;;  %v1679_v7 = vsel %vm1665_vm8, %v1642_v23, %v1254_v6  ;;  %v544_v23 = vrot.slane %v296_v39, 2 }
 0x161   : > { %945 = vrot.lane.b32.xlu1 %v5787_v41, %s4864_s29  ;;  %943 = vrot.lane.b32.xlu0 %v5790_v35, %s4864_s29 }
 0x163   : > { %v608_v57 = vpop.permute.xlu1 %607  ;;  %v1360_v13 = vpop.permute.xlu0 %1359 }
 0x164   : > { %v1715_v16 = vsel %vm1702_vm9, %v1678_v47, %v1360_v13  ;;  %v1458_v46 = vsel %vm1443_vm2, %v5268_v34, %v608_v57 }
 0x165   : > { %1053 = vrot.lane.b32.xlu1 %v5877_v9, %s4865_s9  ;;  %1051 = vrot.lane.b32.xlu0 %v5880_v12, %s4865_s9 }
 0x166   : > { %4193 = vmatprep.mubr.msk.f32.mxu0 %vm1755_vm10, %v1715_v16 }
 0x167   : > { %v610_v4 = vpop.permute.xlu1 %609  ;;  %v1362_v3 = vpop.permute.xlu0 %1361 }
 0x168   : > { %v1716_v24 = vsel %vm1702_vm9, %v1679_v7, %v1362_v3  ;;  %v1459_v55 = vsel %vm1443_vm2, %v4790_v0, %v610_v4  ;;  %v545_v7 = vrot.slane %v5921_v14, 2 }
 0x169   : > { %1161 = vrot.lane.b32.xlu1 %v5717_v26, %s4866_s22  ;;  %1159 = vrot.lane.b32.xlu0 %v5700_v30, %s4866_s22  ;;  %v5907_v26 = vsel %vm478_vm1, %v539_v19, %v540_v10  ;;  %v542_v30 = vrot.slane %v295_v21, 2  ;;  %v438_v21 = vrot.slane %v5921_v14, 1 }
 0x16a   : > { %4194 = vmatmul.mubr.msk.f32.gmra.mrb[12].mxu0 %vm1755_vm10, %v1716_v24  ;;  %v5975_v24 = vld [vmem:[%s7929_s2] ss:$0 sm:$0xff] }
 0x16b   : > { %v718_v31 = vpop.permute.xlu1 %717  ;;  %v716_v32 = vpop.permute.xlu0 %715  ;;  %v5914_v38 = vsel %vm478_vm1, %v540_v10, %v542_v30  ;;  %v5951_v6 = vsel %vm371_vm0, %v437_v62, %v438_v21  ;;  %v5983_v10 = vsel %vm478_vm1, %v544_v23, %v545_v7 }
 0x16c   : > { %v1495_v2 = vsel %vm1480_vm3, %v1458_v46, %v716_v32  ;;  %v1496_v42 = vsel %vm1480_vm3, %v1459_v55, %v718_v31  ;;  %v547_v31 = vrot.slane %v298_v60, 2  ;;  %v299_v46 = vld [vmem:[%s4925_s25 + $0x150] sm:$0xff]  ;;  %v4791_v60 = vld [vmem:[%s4925_s25 + $0xc0] sm:$0xff] }
 0x16d   : > { %1269 = vrot.lane.b32.xlu1 %v5839_v27, %s4867_s7  ;;  %1267 = vrot.lane.b32.xlu0 %v5831_v11, %s4867_s7 }
 0x16f   : > { %v826_v25 = vpop.permute.xlu1 %825  ;;  %v824_v33 = vpop.permute.xlu0 %823 }
 0x170   : > { %v1532_v34 = vsel %vm1517_vm4, %v1495_v2, %v824_v33  ;;  %v1533_v28 = vsel %vm1517_vm4, %v1496_v42, %v826_v25  ;;  %v301_v2 = vld [vmem:[%s4925_s25 + $0x160] sm:$0x3] }
 0x171   : > { %623 = vrot.lane.b32.xlu1 %v5849_v50, %s4862_s27  ;;  %1375 = vrot.lane.b32.xlu0 %v5907_v26, %s4868_s11 }
 0x173   : > { %v934_v37 = vpop.permute.xlu1 %933  ;;  %v932_v58 = vpop.permute.xlu0 %931 }
 0x174   : > { %v1569_v45 = vsel %vm1554_vm5, %v1532_v34, %v932_v58  ;;  %v1570_v29 = vsel %vm1554_vm5, %v1533_v28, %v934_v37  ;;  %v5990_v58 = vsel %vm478_vm1, %v545_v7, %v547_v31  ;;  %v445_v34 = vrot.slane %v301_v2, 1 }
 0x175   : > { %625 = vrot.lane.b32.xlu1 %v5846_v49, %s4862_s27  ;;  %1377 = vrot.lane.b32.xlu0 %v5914_v38, %s4868_s11 }
 0x177   : > { %v1042_v43 = vpop.permute.xlu1 %1041  ;;  %v1040_v54 = vpop.permute.xlu0 %1039 }
 0x178   : > { %v1606_v5 = vsel %vm1591_vm6, %v1569_v45, %v1040_v54  ;;  %v1607_v47 = vsel %vm1591_vm6, %v1570_v29, %v1042_v43 }
 0x179   : > { %733 = vrot.lane.b32.xlu1 %v5921_v14, %s4861_s26  ;;  %731 = vrot.lane.b32.xlu0 %v296_v39, %s4861_s26 }
 0x17b   : > { %v1150_v51 = vpop.permute.xlu1 %1149  ;;  %v1148_v52 = vpop.permute.xlu0 %1147 }
 0x17c   : > { %v1644_v57 = vsel %vm1628_vm7, %v1607_v47, %v1150_v51 }
 0x17d   : > { %841 = vrot.lane.b32.xlu1 %v5787_v41, %s4863_s28  ;;  %839 = vrot.lane.b32.xlu0 %v5790_v35, %s4863_s28  ;;  %v1643_v41 = vsel %vm1628_vm7, %v1606_v5, %v1148_v52  ;;  %v5948_v35 = vsel %vm371_vm0, %v438_v21, %v440_v44 }
 0x17f   : > { %v1258_v20 = vpop.permute.xlu1 %1257  ;;  %v1256_v63 = vpop.permute.xlu0 %1255 }
 0x180   : > { %v1680_v8 = vsel %vm1665_vm8, %v1643_v41, %v1256_v63  ;;  %v1681_v13 = vsel %vm1665_vm8, %v1644_v57, %v1258_v20  ;;  %v442_v20 = vrot.slane %v299_v46, 1 }
 0x181   : > { %949 = vrot.lane.b32.xlu1 %v5877_v9, %s4864_s29  ;;  %947 = vrot.lane.b32.xlu0 %v5880_v12, %s4864_s29 }
 0x183   : > { %v612_v18 = vpop.permute.xlu1 %611  ;;  %v1364_v56 = vpop.permute.xlu0 %1363 }
 0x184   : > { %v1717_v1 = vsel %vm1702_vm9, %v1680_v8, %v1364_v56  ;;  %v1460_v0 = vsel %vm1443_vm2, %v4791_v60, %v612_v18  ;;  %v6070_v60 = vld [vmem:[%s4925_s25 + $0x170] sm:$0xff] }
 0x185   : > { %1057 = vrot.lane.b32.xlu1 %v5948_v35, %s4865_s9  ;;  %1055 = vrot.lane.b32.xlu0 %v5951_v6, %s4865_s9 }
 0x186   : > { %4196 = vmatprep.mubr.msk.f32.mxu0 %vm1755_vm10, %v1717_v1 }
 0x187   : > { %v614_v15 = vpop.permute.xlu1 %613  ;;  %v1366_v16 = vpop.permute.xlu0 %1365 }
 0x188   : > { %v1718_v17 = vsel %vm1702_vm9, %v1681_v13, %v1366_v16 }
 0x189   : > { %1165 = vrot.lane.b32.xlu1 %v5839_v27, %s4866_s22  ;;  %1163 = vrot.lane.b32.xlu0 %v5831_v11, %s4866_s22 }
 0x18a   : > { %4197 = vmatmul.mubr.msk.f32.gmra.mrb[14].mxu0 %vm1755_vm10, %v1718_v17 }
 0x18b   : > { %v722_v4 = vpop.permute.xlu1 %721  ;;  %v720_v3 = vpop.permute.xlu0 %719 }
 0x18c   : > { %v1497_v44 = vsel %vm1480_vm3, %v1460_v0, %v720_v3 }
 0x18d   : > { %v4177_v19 = vpop.f32.mrb[0].mxu0  ;;  %1273 = vrot.lane.b32.xlu1 %v5914_v38, %s4867_s7  ;;  %1271 = vrot.lane.b32.xlu0 %v5907_v26, %s4867_s7 }
 0x18e   : > { %v1936_v11 = vadd.f32 %v4177_v19, %v5975_v24  ;;  %v1930_v27 = vpop.f32.mrb[1].mxu0 }
 0x18f   : > { %v1931_v32 = vadd.f32 %v5975_v24, %v1930_v27  ;;  %v830_v30 = vpop.permute.xlu1 %829  ;;  %v828_v25 = vpop.permute.xlu0 %827 }
 0x190   : > { %v2110_v33 = vmax.f32 %v1936_v11, 0.0  ;;  %v1534_v63 = vsel %vm1517_vm4, %v1497_v44, %v828_v25  ;;  %v4794_v44 = vld [vmem:[%s4925_s25 + $0xe0] sm:$0xff] }
 0x191   : > { %v2109_v37 = vmax.f32 %v1931_v32, 0.0  ;;  %627 = vrot.lane.b32.xlu1 %v296_v39, %s4862_s27  ;;  %1379 = vrot.lane.b32.xlu0 %v5983_v10, %s4868_s11  ;;  %v5999_v39 = vld [vmem:[%s4925_s25 + $0x158] sm:$0xff] }
 0x192   : > { %2146 = vst [vmem:[#allocation2 + $0x9] sm:$0xff] %v2110_v33  ;;  %v443_v62 = vrot.slane %v5999_v39, 1  ;;  %v550_v3 = vrot.slane %v5999_v39, 2 }
 0x193   : > { %2223 = vst [vmem:[#allocation2 + $0x10] sm:$0x3] %v4870_v22  ;;  %2145 = vst [vmem:[#allocation2 + $0x1] sm:$0xff] %v2109_v37  ;;  %v938_v43 = vpop.permute.xlu1 %937  ;;  %v936_v54 = vpop.permute.xlu0 %935 }
 0x194   : > { %2221 = vst [vmem:[#allocation2] sm:$0xff] %v4870_v22  ;;  %v1571_v41 = vsel %vm1554_vm5, %v1534_v63, %v936_v54  ;;  %v6029_v8 = vsel %vm371_vm0, %v442_v20, %v443_v62  ;;  %v448_v20 = vrot.slane %v6070_v60, 1 }
 0x195   : > { %629 = vrot.lane.b32.xlu1 %v5921_v14, %s4862_s27  ;;  %1381 = vrot.lane.b32.xlu0 %v5990_v58, %s4868_s11  ;;  %v4792_v14 = vld [vmem:[%s4925_s25 + $0xc8] sm:$0xff] }
 0x196   : > { %v1461_v21 = vsel %vm1443_vm2, %v4792_v14, %v614_v15 }
 0x197   : > { %v1046_v51 = vpop.permute.xlu1 %1045  ;;  %v1044_v52 = vpop.permute.xlu0 %1043  ;;  %v1498_v5 = vsel %vm1480_vm3, %v1461_v21, %v722_v4  ;;  %v549_v4 = vrot.slane %v299_v46, 2  ;;  %v6082_v21 = vld [vmem:[%s4925_s25 + $0x178] sm:$0x3] }
 0x198   : > { %v1608_v28 = vsel %vm1591_vm6, %v1571_v41, %v1044_v52  ;;  %v1535_v18 = vsel %vm1517_vm4, %v1498_v5, %v830_v30  ;;  %v450_v5 = vrot.slane %v6082_v21, 1 }
 0x199   : > { %737 = vrot.lane.b32.xlu1 %v5999_v39, %s4861_s26  ;;  %735 = vrot.lane.b32.xlu0 %v299_v46, %s4861_s26  ;;  %v1572_v47 = vsel %vm1554_vm5, %v1535_v18, %v938_v43  ;;  %v6056_v32 = vsel %vm478_vm1, %v549_v4, %v550_v3 }
 0x19a   : > { %v1609_v13 = vsel %vm1591_vm6, %v1572_v47, %v1046_v51 }
 0x19b   : > { %v1154_v22 = vpop.permute.xlu1 %1153  ;;  %v1152_v55 = vpop.permute.xlu0 %1151 }
 0x19c   : > { %v1646_v15 = vsel %vm1628_vm7, %v1609_v13, %v1154_v22  ;;  %v6106_v13 = vsel %vm371_vm0, %v448_v20, %v450_v5 }
 0x19d   : > { %845 = vrot.lane.b32.xlu1 %v5877_v9, %s4863_s28  ;;  %843 = vrot.lane.b32.xlu0 %v5880_v12, %s4863_s28  ;;  %v1645_v9 = vsel %vm1628_vm7, %v1608_v28, %v1152_v55  ;;  %v6026_v12 = vsel %vm371_vm0, %v443_v62, %v445_v34  ;;  %v4793_v55 = vld [vmem:[%s4925_s25 + $0xd8] sm:$0xff] }
 0x19f   : > { %v1262_v42 = vpop.permute.xlu1 %1261  ;;  %v1260_v45 = vpop.permute.xlu0 %1259 }
 0x1a0   : > { %v1682_v56 = vsel %vm1665_vm8, %v1645_v9, %v1260_v45  ;;  %v1683_v16 = vsel %vm1665_vm8, %v1646_v15, %v1262_v42 }
 0x1a1   : > { %953 = vrot.lane.b32.xlu1 %v5948_v35, %s4864_s29  ;;  %951 = vrot.lane.b32.xlu0 %v5951_v6, %s4864_s29 }
 0x1a3   : > { %v616_v29 = vpop.permute.xlu1 %615  ;;  %v1368_v1 = vpop.permute.xlu0 %1367 }
 0x1a4   : > { %v1719_v57 = vsel %vm1702_vm9, %v1682_v56, %v1368_v1 }
 0x1a5   : > { %1061 = vrot.lane.b32.xlu1 %v6026_v12, %s4865_s9  ;;  %1059 = vrot.lane.b32.xlu0 %v6029_v8, %s4865_s9 }
 0x1a6   : > { %4199 = vmatprep.mubr.msk.f32.mxu0 %vm1755_vm10, %v1719_v57 }
 0x1a7   : > { %v618_v17 = vpop.permute.xlu1 %617  ;;  %v1370_v23 = vpop.permute.xlu0 %1369 }
 0x1a8   : > { %v1720_v7 = vsel %vm1702_vm9, %v1683_v16, %v1370_v23  ;;  %v1463_v62 = vsel %vm1443_vm2, %v4794_v44, %v618_v17  ;;  %v2230_v16 = vld [vmem:[#allocation2 + $0x10] sm:$0x3] }
 0x1a9   : > { %1169 = vrot.lane.b32.xlu1 %v5914_v38, %s4866_s22  ;;  %1167 = vrot.lane.b32.xlu0 %v5907_v26, %s4866_s22  ;;  %v552_v26 = vrot.slane %v301_v2, 2  ;;  %v1462_v2 = vsel %vm1443_vm2, %v4793_v55, %v616_v29 }
 0x1aa   : > { %4200 = vmatmul.mubr.msk.f32.gmra.mrb[16].mxu0 %vm1755_vm10, %v1720_v7 }
 0x1ab   : > { %v726_v19 = vpop.permute.xlu1 %725  ;;  %v724_v11 = vpop.permute.xlu0 %723  ;;  %v6063_v54 = vsel %vm478_vm1, %v550_v3, %v552_v26 }
 0x1ac   : > { %v1499_v63 = vsel %vm1480_vm3, %v1462_v2, %v724_v11  ;;  %v1500_v56 = vsel %vm1480_vm3, %v1463_v62, %v726_v19 }
 0x1ad   : > { %v4180_v27 = vpop.f32.mrb[2].mxu0  ;;  %1277 = vrot.lane.b32.xlu1 %v5990_v58, %s4867_s7  ;;  %1275 = vrot.lane.b32.xlu0 %v5983_v10, %s4867_s7 }
 0x1ae   : > { %v1946_v31 = vadd.f32 %v4180_v27, %v5975_v24  ;;  %v1940_v38 = vpop.f32.mrb[3].mxu0  ;;  %v2333_v27 = vrot.slane %v2230_v16, 1 }
 0x1af   : > { %v1941_v30 = vadd.f32 %v5975_v24, %v1940_v38  ;;  %v834_v25 = vpop.permute.xlu1 %833  ;;  %v832_v33 = vpop.permute.xlu0 %831 }
 0x1b0   : > { %v2112_v37 = vmax.f32 %v1946_v31, 0.0  ;;  %v1536_v28 = vsel %vm1517_vm4, %v1499_v63, %v832_v33  ;;  %v1537_v17 = vsel %vm1517_vm4, %v1500_v56, %v834_v25  ;;  %v6168_v63 = vld [vmem:[%s4925_s25 + $0x188] sm:$0xff] }
 0x1b1   : > { %v2111_v43 = vmax.f32 %v1941_v30, 0.0  ;;  %631 = vrot.lane.b32.xlu1 %v299_v46, %s4862_s27  ;;  %1383 = vrot.lane.b32.xlu0 %v6056_v32, %s4868_s11  ;;  %v6073_v46 = vld [vmem:[%s4925_s25 + $0x168] sm:$0xff] }
 0x1b2   : > { %2148 = vst [vmem:[#allocation2 + $0x21] sm:$0xff] %v2112_v37  ;;  %v447_v41 = vrot.slane %v6073_v46, 1 }
 0x1b3   : > { %2147 = vst [vmem:[#allocation2 + $0x19] sm:$0xff] %v2111_v43  ;;  %v942_v51 = vpop.permute.xlu1 %941  ;;  %v940_v52 = vpop.permute.xlu0 %939  ;;  %v2334_v43 = vsel %vm371_vm0, %v5814_v36, %v2333_v27 }
 0x1b4   : > { %v6109_v15 = vsel %vm371_vm0, %v447_v41, %v448_v20  ;;  %v1574_v3 = vsel %vm1554_vm5, %v1537_v17, %v942_v51 }
 0x1b5   : > { %633 = vrot.lane.b32.xlu1 %v5999_v39, %s4862_s27  ;;  %1385 = vrot.lane.b32.xlu0 %v6063_v54, %s4868_s11 }
 0x1b7   : > { %v1050_v0 = vpop.permute.xlu1 %1049  ;;  %v1048_v22 = vpop.permute.xlu0 %1047 }
 0x1b8   : > { %v1611_v11 = vsel %vm1591_vm6, %v1574_v3, %v1050_v0  ;;  %v555_v0 = vrot.slane %v6070_v60, 2 }
 0x1b9   : > { %741 = vrot.lane.b32.xlu1 %v6070_v60, %s4861_s26  ;;  %739 = vrot.lane.b32.xlu0 %v6073_v46, %s4861_s26 }
 0x1ba   : > { %v2231_v33 = vld [vmem:[#allocation2 + $0x18] sm:$0xff]  ;;  %v6124_v37 = vld [vmem:[#allocation2 + $0x20] sm:$0xff] }
 0x1bb   : > { %v1158_v14 = vpop.permute.xlu1 %1157  ;;  %v1156_v39 = vpop.permute.xlu0 %1155  ;;  %v2335_v2 = vrot.slane %v2231_v33, 1 }
 0x1bc   : > { %v1648_v31 = vsel %vm1628_vm7, %v1611_v11, %v1158_v14  ;;  %v557_v14 = vrot.slane %v6082_v21, 2 }
 0x1bd   : > { %v4183_v34 = vpop.f32.mrb[4].mxu0  ;;  %849 = vrot.lane.b32.xlu1 %v5948_v35, %s4863_s28  ;;  %847 = vrot.lane.b32.xlu0 %v5951_v6, %s4863_s28  ;;  %v1573_v6 = vsel %vm1554_vm5, %v1536_v28, %v940_v52  ;;  %v554_v52 = vrot.slane %v6073_v46, 2  ;;  %v6180_v28 = vld [vmem:[%s4925_s25 + $0x190] sm:$0x3] }
 0x1be   : > { %v1956_v42 = vadd.f32 %v4183_v34, %v5975_v24  ;;  %v1950_v45 = vpop.f32.mrb[5].mxu0  ;;  %v1610_v1 = vsel %vm1591_vm6, %v1573_v6, %v1048_v22  ;;  %v6161_v21 = vsel %vm478_vm1, %v555_v0, %v557_v14 }
 0x1bf   : > { %v1951_v9 = vadd.f32 %v5975_v24, %v1950_v45  ;;  %v1266_v18 = vpop.permute.xlu1 %1265  ;;  %v1264_v35 = vpop.permute.xlu0 %1263  ;;  %v1647_v57 = vsel %vm1628_vm7, %v1610_v1, %v1156_v39 }
 0x1c0   : > { %v2114_v29 = vmax.f32 %v1956_v42, 0.0  ;;  %v1684_v23 = vsel %vm1665_vm8, %v1647_v57, %v1264_v35  ;;  %v1685_v38 = vsel %vm1665_vm8, %v1648_v31, %v1266_v18  ;;  %v6171_v42 = vld [vmem:[%s4925_s25 + $0x180] sm:$0xff]  ;;  %v453_v35 = vrot.slane %v6168_v63, 1 }
 0x1c1   : > { %v2113_v47 = vmax.f32 %v1951_v9, 0.0  ;;  %957 = vrot.lane.b32.xlu1 %v6026_v12, %s4864_s29  ;;  %955 = vrot.lane.b32.xlu0 %v6029_v8, %s4864_s29  ;;  %v452_v1 = vrot.slane %v6171_v42, 1 }
 0x1c2   : > { %2150 = vst [vmem:[#allocation2 + $0x39] sm:$0xff] %v2114_v29  ;;  %v455_v29 = vrot.slane %v6180_v28, 1 }
 0x1c3   : > { %2149 = vst [vmem:[#allocation2 + $0x31] sm:$0xff] %v2113_v47  ;;  %v620_v7 = vpop.permute.xlu1 %619  ;;  %v1372_v4 = vpop.permute.xlu0 %1371 }
 0x1c4   : > { %v1721_v19 = vsel %vm1702_vm9, %v1684_v23, %v1372_v4  ;;  %v1464_v5 = vsel %vm1443_vm2, %v5587_v59, %v620_v7  ;;  %v6204_v3 = vsel %vm371_vm0, %v453_v35, %v455_v29  ;;  %v6281_v29 = vld [vmem:[%s4925_s25 + $0x1a8] sm:$0x3] }
 0x1c5   : > { %1065 = vrot.lane.b32.xlu1 %v6106_v13, %s4865_s9  ;;  %1063 = vrot.lane.b32.xlu0 %v6109_v15, %s4865_s9 }
 0x1c6   : > { %4202 = vmatprep.mubr.msk.f32.mxu0 %vm1755_vm10, %v1721_v19  ;;  %v6207_v19 = vsel %vm371_vm0, %v452_v1, %v453_v35  ;;  %v6272_v35 = vld [vmem:[%s4925_s25 + $0x198] sm:$0xff] }
 0x1c7   : > { %v622_v26 = vpop.permute.xlu1 %621  ;;  %v1374_v30 = vpop.permute.xlu0 %1373 }
 0x1c8   : > { %v1722_v25 = vsel %vm1702_vm9, %v1685_v38, %v1374_v30  ;;  %v1465_v9 = vsel %vm1443_vm2, %v5584_v48, %v622_v26 }
 0x1c9   : > { %1173 = vrot.lane.b32.xlu1 %v5990_v58, %s4866_s22  ;;  %1171 = vrot.lane.b32.xlu0 %v5983_v10, %s4866_s22  ;;  %v2336_v58 = vrot.slane %v6124_v37, 1  ;;  %v6146_v10 = vsel %vm478_vm1, %v554_v52, %v555_v0 }
 0x1ca   : > { %4203 = vmatmul.mubr.msk.f32.gmra.mrb[18].mxu0 %vm1755_vm10, %v1722_v25  ;;  %v6133_v51 = vld [vmem:[#allocation2 + $0x30] sm:$0xff]  ;;  %v6143_v36 = vld [vmem:[#allocation2 + $0x38] sm:$0xff]  ;;  %v2233_v25 = vld [vmem:[#allocation2 + $0x28] sm:$0x3] }
 0x1cb   : > { %3029 = vmatmul.mubr.f32.vlgmr.msra.gmra.mrb[0].mxu1 %v6133_v51  ;;  %v730_v22 = vpop.permute.xlu1 %729  ;;  %v728_v55 = vpop.permute.xlu0 %727  ;;  %v6153_v44 = vsel %vm371_vm0, %v2335_v2, %v2336_v58 }
 0x1cc   : > { %3033 = vmatprep.mubr.f32.mxu1 %v2334_v43  ;;  %v1501_v56 = vsel %vm1480_vm3, %v1464_v5, %v728_v55  ;;  %v1502_v16 = vsel %vm1480_vm3, %v1465_v9, %v730_v22  ;;  %v2338_v55 = vrot.slane %v2233_v25, 1 }
 0x1cd   : > { %1281 = vrot.lane.b32.xlu1 %v6063_v54, %s4867_s7  ;;  %1279 = vrot.lane.b32.xlu0 %v6056_v32, %s4867_s7 }
 0x1cf   : > { %3034 = vmatmul.mubr.f32.gmra.mrb[2].mxu1 %v6143_v36  ;;  %v838_v39 = vpop.permute.xlu1 %837  ;;  %v836_v62 = vpop.permute.xlu0 %835 }
 0x1d0   : > { %3038 = vmatprep.mubr.f32.mxu1 %v6153_v44  ;;  %v1538_v48 = vsel %vm1517_vm4, %v1501_v56, %v836_v62  ;;  %v1539_v11 = vsel %vm1517_vm4, %v1502_v16, %v838_v39  ;;  %v559_v39 = vrot.slane %v6171_v42, 2  ;;  %v560_v62 = vrot.slane %v6168_v63, 2 }
 0x1d1   : > { %635 = vrot.lane.b32.xlu1 %v6073_v46, %s4862_s27  ;;  %1387 = vrot.lane.b32.xlu0 %v6146_v10, %s4868_s11  ;;  %v460_v16 = vrot.slane %v6281_v29, 1 }
 0x1d2   : > { %v6247_v37 = vsel %vm478_vm1, %v559_v39, %v560_v62 }
 0x1d3   : > { %v946_v34 = vpop.permute.xlu1 %945  ;;  %v944_v20 = vpop.permute.xlu0 %943 }
 0x1d4   : > { %v1576_v26 = vsel %vm1554_vm5, %v1539_v11, %v946_v34 }
 0x1d5   : > { %637 = vrot.lane.b32.xlu1 %v6070_v60, %s4862_s27  ;;  %1389 = vrot.lane.b32.xlu0 %v6161_v21, %s4868_s11 }
 0x1d7   : > { %v1054_v46 = vpop.permute.xlu1 %1053  ;;  %v1052_v45 = vpop.permute.xlu0 %1051 }
 0x1d8   : > { %v1613_v33 = vsel %vm1591_vm6, %v1576_v26, %v1054_v46  ;;  %v2340_v46 = vrot.slane %v6133_v51, 1 }
 0x1d9   : > { %745 = vrot.lane.b32.xlu1 %v6168_v63, %s4861_s26  ;;  %743 = vrot.lane.b32.xlu0 %v6171_v42, %s4861_s26 }
 0x1db   : > { %v1162_v41 = vpop.permute.xlu1 %1161  ;;  %v1160_v60 = vpop.permute.xlu0 %1159 }
 0x1dc   : > { %v1650_v43 = vsel %vm1628_vm7, %v1613_v33, %v1162_v41 }
 0x1dd   : > { %v4186_v18 = vpop.f32.mrb[6].mxu0  ;;  %853 = vrot.lane.b32.xlu1 %v6026_v12, %s4863_s28  ;;  %851 = vrot.lane.b32.xlu0 %v6029_v8, %s4863_s28  ;;  %v1575_v8 = vsel %vm1554_vm5, %v1538_v48, %v944_v20  ;;  %v6235_v20 = vsel %vm371_vm0, %v2336_v58, %v2338_v55  ;;  %v562_v58 = vrot.slane %v6180_v28, 2 }
 0x1de   : > { %v1966_v59 = vadd.f32 %v4186_v18, %v5975_v24  ;;  %v1960_v6 = vpop.f32.mrb[7].mxu0  ;;  %v1612_v23 = vsel %vm1591_vm6, %v1575_v8, %v1052_v45  ;;  %v6269_v18 = vld [vmem:[%s4925_s25 + $0x1a0] sm:$0xff]  ;;  %v457_v8 = vrot.slane %v6272_v35, 1 }
 0x1df   : > { %v1961_v47 = vadd.f32 %v5975_v24, %v1960_v6  ;;  %v1270_v57 = vpop.permute.xlu1 %1269  ;;  %v1268_v12 = vpop.permute.xlu0 %1267  ;;  %v1649_v4 = vsel %vm1628_vm7, %v1612_v23, %v1160_v60  ;;  %v6262_v60 = vsel %vm478_vm1, %v560_v62, %v562_v58  ;;  %v2588_v58 = vld [vmem:[%s7930_s3] sm:$0xff] }
 0x1e0   : > { %v2116_v17 = vmax.f32 %v1966_v59, 0.0  ;;  %v1686_v27 = vsel %vm1665_vm8, %v1649_v4, %v1268_v12  ;;  %v1687_v52 = vsel %vm1665_vm8, %v1650_v43, %v1270_v57 }
 0x1e1   : > { %v2115_v7 = vmax.f32 %v1961_v47, 0.0  ;;  %961 = vrot.lane.b32.xlu1 %v6106_v13, %s4864_s29  ;;  %959 = vrot.lane.b32.xlu0 %v6109_v15, %s4864_s29  ;;  %v458_v47 = vrot.slane %v6269_v18, 1 }
 0x1e2   : > { %2152 = vst [vmem:[#allocation2 + $0x51] sm:$0xff] %v2116_v17 }
 0x1e3   : > { %2151 = vst [vmem:[#allocation2 + $0x49] sm:$0xff] %v2115_v7  ;;  %v624_v31 = vpop.permute.xlu1 %623  ;;  %v1376_v38 = vpop.permute.xlu0 %1375  ;;  %v6308_v26 = vsel %vm371_vm0, %v457_v8, %v458_v47 }
 0x1e4   : > { %v1723_v30 = vsel %vm1702_vm9, %v1686_v27, %v1376_v38  ;;  %v1466_v59 = vsel %vm1443_vm2, %v5734_v61, %v624_v31  ;;  %v6305_v38 = vsel %vm371_vm0, %v458_v47, %v460_v16 }
 0x1e5   : > { %1069 = vrot.lane.b32.xlu1 %v6204_v3, %s4865_s9  ;;  %1067 = vrot.lane.b32.xlu0 %v6207_v19, %s4865_s9 }
 0x1e6   : > { %4205 = vmatprep.mubr.msk.f32.mxu0 %vm1755_vm10, %v1723_v30 }
 0x1e7   : > { %v626_v0 = vpop.permute.xlu1 %625  ;;  %v1378_v22 = vpop.permute.xlu0 %1377 }
 0x1e8   : > { %v1724_v2 = vsel %vm1702_vm9, %v1687_v52, %v1378_v22  ;;  %v1467_v1 = vsel %vm1443_vm2, %v5731_v53, %v626_v0  ;;  %v2236_v22 = vld [vmem:[#allocation2 + $0x40] sm:$0x3] }
 0x1e9   : > { %1177 = vrot.lane.b32.xlu1 %v6063_v54, %s4866_s22  ;;  %1175 = vrot.lane.b32.xlu0 %v6056_v32, %s4866_s22  ;;  %v2341_v32 = vrot.slane %v6143_v36, 1  ;;  %v2590_v36 = vld [vmem:[%s7930_s3 + $0x10] sm:$0xff] }
 0x1ea   : > { %4206 = vmatmul.mubr.msk.f32.gmra.mrb[20].mxu0 %vm1755_vm10, %v1724_v2  ;;  %v6227_v14 = vld [vmem:[#allocation2 + $0x48] sm:$0xff]  ;;  %v6244_v45 = vld [vmem:[#allocation2 + $0x50] sm:$0xff] }
 0x1eb   : > { %3039 = vmatmul.mubr.f32.gmra.mrb[4].mxu1 %v6227_v14  ;;  %v734_v34 = vpop.permute.xlu1 %733  ;;  %v732_v54 = vpop.permute.xlu0 %731  ;;  %v6254_v5 = vsel %vm371_vm0, %v2340_v46, %v2341_v32 }
 0x1ec   : > { %3043 = vmatprep.mubr.f32.mxu1 %v6235_v20  ;;  %v1503_v57 = vsel %vm1480_vm3, %v1466_v59, %v732_v54  ;;  %v1504_v7 = vsel %vm1480_vm3, %v1467_v1, %v734_v34  ;;  %v2343_v54 = vrot.slane %v2236_v22, 1  ;;  %v2345_v59 = vrot.slane %v6227_v14, 1  ;;  %v6427_v22 = vld [vmem:[%s4925_s25 + $0x1c0] sm:$0x3] }
 0x1ed   : > { %1285 = vrot.lane.b32.xlu1 %v6161_v21, %s4867_s7  ;;  %1283 = vrot.lane.b32.xlu0 %v6146_v10, %s4867_s7  ;;  %v567_v1 = vrot.slane %v6281_v29, 2  ;;  %v2592_v29 = vld [vmem:[%s7930_s3 + $0x20] sm:$0xff] }
 0x1ef   : > { %3044 = vmatmul.mubr.f32.gmra.mrb[6].mxu1 %v6244_v45  ;;  %v842_v51 = vpop.permute.xlu1 %841  ;;  %v840_v41 = vpop.permute.xlu0 %839 }
 0x1f0   : > { %3048 = vmatprep.mubr.f32.mxu1 %v6254_v5  ;;  %v1540_v53 = vsel %vm1517_vm4, %v1503_v57, %v840_v41  ;;  %v1541_v30 = vsel %vm1517_vm4, %v1504_v7, %v842_v51  ;;  %v2589_v51 = vld [vmem:[%s7930_s3 + $0x8] sm:$0xff]  ;;  %v6406_v7 = vld [vmem:[%s4925_s25 + $0x1b8] sm:$0xff] }
 0x1f1   : > { %639 = vrot.lane.b32.xlu1 %v6171_v42, %s4862_s27  ;;  %1391 = vrot.lane.b32.xlu0 %v6247_v37, %s4868_s11 }
 0x1f3   : > { %v950_v28 = vpop.permute.xlu1 %949  ;;  %v948_v9 = vpop.permute.xlu0 %947 }
 0x1f4   : > { %v1578_v52 = vsel %vm1554_vm5, %v1541_v30, %v950_v28  ;;  %v564_v28 = vrot.slane %v6272_v35, 2  ;;  %v2597_v30 = vld [vmem:[%s7930_s3 + $0x48] sm:$0xff] }
 0x1f5   : > { %641 = vrot.lane.b32.xlu1 %v6168_v63, %s4862_s27  ;;  %1393 = vrot.lane.b32.xlu0 %v6262_v60, %s4868_s11 }
 0x1f7   : > { %v1058_v42 = vpop.permute.xlu1 %1057  ;;  %v1056_v56 = vpop.permute.xlu0 %1055 }
 0x1f8   : > { %v1615_v55 = vsel %vm1591_vm6, %v1578_v52, %v1058_v42  ;;  %v6348_v42 = vsel %vm371_vm0, %v2341_v32, %v2343_v54  ;;  %v2591_v32 = vld [vmem:[%s7930_s3 + $0x18] sm:$0xff] }
 0x1f9   : > { %749 = vrot.lane.b32.xlu1 %v6269_v18, %s4861_s26  ;;  %747 = vrot.lane.b32.xlu0 %v6272_v35, %s4861_s26 }
 0x1fb   : > { %v1166_v6 = vpop.permute.xlu1 %1165  ;;  %v1164_v63 = vpop.permute.xlu0 %1163 }
 0x1fc   : > { %v1652_v2 = vsel %vm1628_vm7, %v1615_v55, %v1166_v6  ;;  %v2346_v6 = vrot.slane %v6244_v45, 1  ;;  %v2606_v45 = vld [vmem:[%s7930_s3 + $0x90] sm:$0xff] }
 0x1fd   : > { %v4189_v48 = vpop.f32.mrb[8].mxu0  ;;  %857 = vrot.lane.b32.xlu1 %v6106_v13, %s4863_s28  ;;  %855 = vrot.lane.b32.xlu0 %v6109_v15, %s4863_s28  ;;  %v1577_v15 = vsel %vm1554_vm5, %v1540_v53, %v948_v9  ;;  %v565_v9 = vrot.slane %v6269_v18, 2 }
 0x1fe   : > { %v1976_v61 = vadd.f32 %v4189_v48, %v5975_v24  ;;  %v1970_v12 = vpop.f32.mrb[9].mxu0  ;;  %v1614_v11 = vsel %vm1591_vm6, %v1577_v15, %v1056_v56  ;;  %v4329_v48 = vpack.c.bf16 %v2591_v32, %v2590_v36  ;;  %v6376_v57 = vsel %vm371_vm0, %v2345_v59, %v2346_v6  ;;  %v6409_v15 = vld [vmem:[%s4925_s25 + $0x1b0] sm:$0xff] }
 0x1ff   : > { %v1971_v17 = vadd.f32 %v5975_v24, %v1970_v12  ;;  %v1274_v23 = vpop.permute.xlu1 %1273  ;;  %v1272_v13 = vpop.permute.xlu0 %1271  ;;  %v1651_v31 = vsel %vm1628_vm7, %v1614_v11, %v1164_v63  ;;  %v6366_v63 = vsel %vm478_vm1, %v564_v28, %v565_v9  ;;  %v2593_v12 = vld [vmem:[%s7930_s3 + $0x28] sm:$0xff]  ;;  %v6390_v16 = vsel %vm478_vm1, %v565_v9, %v567_v1 }
 0x200   : > { %v2118_v4 = vmax.f32 %v1976_v61, 0.0  ;;  %v1688_v25 = vsel %vm1665_vm8, %v1651_v31, %v1272_v13  ;;  %v1689_v39 = vsel %vm1665_vm8, %v1652_v2, %v1274_v23  ;;  %v4332_v8 = vpack.c.bf16 %v2593_v12, %v2592_v29  ;;  %v2594_v23 = vld [vmem:[%s7930_s3 + $0x30] sm:$0xff]  ;;  %v2595_v13 = vld [vmem:[%s7930_s3 + $0x38] sm:$0xff]  ;;  %v2596_v31 = vld [vmem:[%s7930_s3 + $0x40] sm:$0xff] }
 0x201   : > { %v2117_v27 = vmax.f32 %v1971_v17, 0.0  ;;  %965 = vrot.lane.b32.xlu1 %v6204_v3, %s4864_s29  ;;  %963 = vrot.lane.b32.xlu0 %v6207_v19, %s4864_s29  ;;  %v466_v2 = vrot.slane %v6406_v7, 1 }
 0x202   : > { %2154 = vst [vmem:[#allocation2 + $0x69] sm:$0xff] %v2118_v4  ;;  %v4335_v4 = vpack.c.bf16 %v2595_v13, %v2594_v23 }
 0x203   : > { %2153 = vst [vmem:[#allocation2 + $0x61] sm:$0xff] %v2117_v27  ;;  %v6312_v33 = vpop.permute.xlu1 %627  ;;  %v1380_v43 = vpop.permute.xlu0 %1379 }
 0x204   : > { %v1725_v0 = vsel %vm1702_vm9, %v1688_v25, %v1380_v43  ;;  %v4338_v25 = vpack.c.bf16 %v2597_v30, %v2596_v31  ;;  %v1468_v43 = vsel %vm1443_vm2, %v5849_v50, %v6312_v33  ;;  %v2598_v50 = vld [vmem:[%s7930_s3 + $0x50] sm:$0xff]  ;;  %v2599_v33 = vld [vmem:[%s7930_s3 + $0x58] sm:$0xff] }
 0x205   : > { %1073 = vrot.lane.b32.xlu1 %v6305_v38, %s4865_s9  ;;  %1071 = vrot.lane.b32.xlu0 %v6308_v26, %s4865_s9 }
 0x206   : > { %4208 = vmatprep.mubr.msk.f32.mxu0 %vm1755_vm10, %v1725_v0 }
 0x207   : > { %v6324_v62 = vpop.permute.xlu1 %629  ;;  %v1382_v34 = vpop.permute.xlu0 %1381 }
 0x208   : > { %v1726_v46 = vsel %vm1702_vm9, %v1689_v39, %v1382_v34  ;;  %v1469_v55 = vsel %vm1443_vm2, %v5846_v49, %v6324_v62  ;;  %v465_v39 = vrot.slane %v6409_v15, 1 }
 0x209   : > { %1181 = vrot.lane.b32.xlu1 %v6161_v21, %s4866_s22  ;;  %1179 = vrot.lane.b32.xlu0 %v6146_v10, %s4866_s22  ;;  %v4326_v21 = vpack.c.bf16 %v2589_v51, %v2588_v58 }
 0x20a   : > { %4209 = vmatmul.mubr.msk.f32.gmra.mrb[22].mxu0 %vm1755_vm10, %v1726_v46  ;;  %v6338_v41 = vld [vmem:[#allocation2 + $0x60] sm:$0xff]  ;;  %v6363_v14 = vld [vmem:[#allocation2 + $0x68] sm:$0xff]  ;;  %v468_v46 = vrot.slane %v6427_v22, 1 }
 0x20b   : > { %3049 = vmatmul.mubr.f32.gmra.mrb[8].mxu1 %v6338_v41  ;;  %v6343_v10 = vpop.permute.xlu1 %737  ;;  %v736_v56 = vpop.permute.xlu0 %735  ;;  %4327 = vmatpush1.bf16.msra.mxu0 %v4326_v21 }
 0x20c   : > { %3053 = vmatprep.mubr.f32.mxu1 %v6348_v42  ;;  %4328 = vmatprep.subr.bf16.mxu0 %v7934_v40  ;;  %v1505_v49 = vsel %vm1480_vm3, %v1468_v43, %v736_v56  ;;  %v1506_v9 = vsel %vm1480_vm3, %v1469_v55, %v6343_v10  ;;  %v2601_v10 = vld [vmem:[%s7930_s3 + $0x68] sm:$0xff]  ;;  %v6466_v1 = vsel %vm371_vm0, %v466_v2, %v468_v46 }
 0x20d   : > { %1289 = vrot.lane.b32.xlu1 %v6262_v60, %s4867_s7  ;;  %1287 = vrot.lane.b32.xlu0 %v6247_v37, %s4867_s7 }
 0x20f   : > { %3054 = vmatmul.mubr.f32.gmra.mrb[10].mxu1 %v6363_v14  ;;  %v6371_v47 = vpop.permute.xlu1 %845  ;;  %v844_v61 = vpop.permute.xlu0 %843  ;;  %4330 = vmatpush1.bf16.msra.mxu0 %v4329_v48  ;;  %v6469_v48 = vsel %vm371_vm0, %v465_v39, %v466_v2  ;;  %v2605_v2 = vld [vmem:[%s7930_s3 + $0x88] sm:$0xff]  ;;  %v570_v39 = vrot.slane %v6406_v7, 2 }
 0x210   : > { %3058 = vmatprep.mubr.f32.mxu1 %v6376_v57  ;;  %4331 = vmatprep.subr.bf16.mxu0 %v7934_v40  ;;  %v1543_v29 = vsel %vm1517_vm4, %v1506_v9, %v6371_v47  ;;  %v2602_v47 = vld [vmem:[%s7930_s3 + $0x70] sm:$0xff]  ;;  %v6563_v9 = vld [vmem:[%s4925_s25 + $0x1c8] sm:$0xff] }
 0x211   : > { %643 = vrot.lane.b32.xlu1 %v6272_v35, %s4862_s27  ;;  %1395 = vrot.lane.b32.xlu0 %v6366_v63, %s4868_s11 }
 0x213   : > { %v6393_v53 = vpop.permute.xlu1 %953  ;;  %v952_v17 = vpop.permute.xlu0 %951  ;;  %4333 = vmatpush1.bf16.msra.mxu0 %v4332_v8 }
 0x214   : > { %4334 = vmatprep.subr.bf16.mxu0 %v7934_v40  ;;  %v1580_v23 = vsel %vm1554_vm5, %v1543_v29, %v6393_v53  ;;  %v2603_v53 = vld [vmem:[%s7930_s3 + $0x78] sm:$0xff] }
 0x215   : > { %645 = vrot.lane.b32.xlu1 %v6269_v18, %s4862_s27  ;;  %1397 = vrot.lane.b32.xlu0 %v6390_v16, %s4868_s11 }
 0x217   : > { %v1062_v11 = vpop.permute.xlu1 %1061  ;;  %v1060_v27 = vpop.permute.xlu0 %1059  ;;  %4336 = vmatpush1.bf16.msra.mxu0 %v4335_v4  ;;  %v2239_v4 = vld [vmem:[#allocation2 + $0x58] sm:$0x3] }
 0x218   : > { %4337 = vmatprep.subr.bf16.mxu0 %v7934_v40 }
 0x219   : > { %753 = vrot.lane.b32.xlu1 %v6406_v7, %s4861_s26  ;;  %751 = vrot.lane.b32.xlu0 %v6409_v15, %s4861_s26 }
 0x21b   : > { %v1170_v52 = vpop.permute.xlu1 %1169  ;;  %v1168_v0 = vpop.permute.xlu0 %1167  ;;  %4339 = vmatpush1.bf16.msra.mxu0 %v4338_v25 }
 0x21c   : > { %4340 = vmatprep.subr.bf16.mxu0 %v7934_v40 }
 0x21d   : > { %v4192_v34 = vpop.f32.mrb[10].mxu0  ;;  %861 = vrot.lane.b32.xlu1 %v6204_v3, %s4863_s28  ;;  %859 = vrot.lane.b32.xlu0 %v6207_v19, %s4863_s28  ;;  %v4341_v3 = vpack.c.bf16 %v2599_v33, %v2598_v50  ;;  %v1542_v19 = vsel %vm1517_vm4, %v1505_v49, %v844_v61 }
 0x21e   : > { %v1986_v62 = vadd.f32 %v4192_v34, %v5975_v24  ;;  %v1980_v54 = vpop.f32.mrb[11].mxu0  ;;  %v1579_v21 = vsel %vm1554_vm5, %v1542_v19, %v952_v17  ;;  %v569_v34 = vrot.slane %v6409_v15, 2 }
 0x21f   : > { %v1981_v58 = vadd.f32 %v5975_v24, %v1980_v54  ;;  %v1278_v51 = vpop.permute.xlu1 %1277  ;;  %v1276_v28 = vpop.permute.xlu0 %1275  ;;  %4342 = vmatpush1.bf16.msra.mxu0 %v4341_v3  ;;  %v1616_v59 = vsel %vm1591_vm6, %v1579_v21, %v1060_v27  ;;  %v2600_v24 = vld [vmem:[%s7930_s3 + $0x60] sm:$0xff]  ;;  %v1617_v27 = vsel %vm1591_vm6, %v1580_v23, %v1062_v11  ;;  %v4347_v11 = vpack.c.bf16 %v2603_v53, %v2602_v47  ;;  %v6601_v53 = vld [vmem:[%s4925_s25 + $0x1d8] sm:$0x3] }
 0x220   : > { %v2120_v56 = vmax.f32 %v1986_v62, 0.0  ;;  %v1653_v32 = vsel %vm1628_vm7, %v1616_v59, %v1168_v0  ;;  %4343 = vmatprep.subr.bf16.mxu0 %v7934_v40  ;;  %v4344_v61 = vpack.c.bf16 %v2601_v10, %v2600_v24  ;;  %v1654_v31 = vsel %vm1628_vm7, %v1617_v27, %v1170_v52  ;;  %v2604_v52 = vld [vmem:[%s7930_s3 + $0x80] sm:$0xff]  ;;  %v2610_v24 = vld [vmem:[%s7930_s3 + $0xb0] sm:$0xff] }
 0x221   : > { %v2119_v36 = vmax.f32 %v1981_v58, 0.0  ;;  %969 = vrot.lane.b32.xlu1 %v6305_v38, %s4864_s29  ;;  %967 = vrot.lane.b32.xlu0 %v6308_v26, %s4864_s29  ;;  %v1690_v12 = vsel %vm1665_vm8, %v1653_v32, %v1276_v28  ;;  %v1691_v30 = vsel %vm1665_vm8, %v1654_v31, %v1278_v51  ;;  %v2348_v0 = vrot.slane %v2239_v4, 1  ;;  %v2608_v51 = vld [vmem:[%s7930_s3 + $0xa0] sm:$0xff]  ;;  %v2609_v28 = vld [vmem:[%s7930_s3 + $0xa8] sm:$0xff] }
 0x222   : > { %2156 = vst [vmem:[#allocation2 + $0x81] sm:$0xff] %v2120_v56  ;;  %v2350_v62 = vrot.slane %v6338_v41, 1  ;;  %v2351_v54 = vrot.slane %v6363_v14, 1  ;;  %v2607_v41 = vld [vmem:[%s7930_s3 + $0x98] sm:$0xff]  ;;  %v6540_v46 = vsel %vm478_vm1, %v569_v34, %v570_v39  ;;  %v572_v21 = vrot.slane %v6427_v22, 2  ;;  %v6580_v10 = vld [vmem:[%s4925_s25 + $0x1d0] sm:$0xff] }
 0x223   : > { %2155 = vst [vmem:[#allocation2 + $0x79] sm:$0xff] %v2119_v36  ;;  %v6475_v8 = vpop.permute.xlu1 %631  ;;  %v1384_v17 = vpop.permute.xlu0 %1383  ;;  %4345 = vmatpush1.bf16.msra.mxu0 %v4344_v61  ;;  %v6520_v33 = vsel %vm371_vm0, %v2346_v6, %v2348_v0  ;;  %v4356_v56 = vpack.c.bf16 %v2609_v28, %v2608_v51  ;;  %v2611_v22 = vld [vmem:[%s7930_s3 + $0xb8] sm:$0xff]  ;;  %v4796_v31 = vld [vmem:[%s4925_s25 + $0x140] sm:$0xff] }
 0x224   : > { %v1727_v13 = vsel %vm1702_vm9, %v1690_v12, %v1384_v17  ;;  %4346 = vmatprep.subr.bf16.mxu0 %v7934_v40  ;;  %v6549_v19 = vsel %vm371_vm0, %v2350_v62, %v2351_v54  ;;  %v6583_v32 = vsel %vm478_vm1, %v570_v39, %v572_v21  ;;  %v4359_v61 = vpack.c.bf16 %v2611_v22, %v2610_v24  ;;  %v2612_v12 = vld [vmem:[%s7930_s3 + $0xc0] sm:$0xff]  ;;  %v2613_v17 = vld [vmem:[%s7930_s3 + $0xc8] sm:$0xff] }
 0x225   : > { %1077 = vrot.lane.b32.xlu1 %v6466_v1, %s4865_s9  ;;  %1075 = vrot.lane.b32.xlu0 %v6469_v48, %s4865_s9  ;;  %v4362_v23 = vpack.c.bf16 %v2613_v17, %v2612_v12  ;;  %v2242_v17 = vld [vmem:[#allocation2 + $0x70] sm:$0x3] }
 0x226   : > { %4211 = vmatprep.mubr.msk.f32.mxu0 %vm1755_vm10, %v1727_v13  ;;  %v4795_v13 = vld [vmem:[%s4925_s25 + $0x138] sm:$0xff] }
 0x227   : > { %v6495_v25 = vpop.permute.xlu1 %633  ;;  %v1386_v43 = vpop.permute.xlu0 %1385  ;;  %4348 = vmatpush1.bf16.msra.mxu0 %v4347_v11  ;;  %v1470_v4 = vsel %vm1443_vm2, %v4795_v13, %v6475_v8  ;;  %v2614_v8 = vld [vmem:[%s7930_s3 + $0xd0] sm:$0xff]  ;;  %v2619_v13 = vld [vmem:[%s7930_s3 + $0xf8] sm:$0xff] }
 0x228   : > { %v1728_v55 = vsel %vm1702_vm9, %v1691_v30, %v1386_v43  ;;  %4349 = vmatprep.subr.bf16.mxu0 %v7934_v40  ;;  %v1471_v11 = vsel %vm1443_vm2, %v4796_v31, %v6495_v25  ;;  %v473_v30 = vrot.slane %v6563_v9, 1  ;;  %v474_v43 = vrot.slane %v6580_v10, 1 }
 0x229   : > { %1185 = vrot.lane.b32.xlu1 %v6262_v60, %s4866_s22  ;;  %1183 = vrot.lane.b32.xlu0 %v6247_v37, %s4866_s22  ;;  %v4350_v60 = vpack.c.bf16 %v2605_v2, %v2604_v52  ;;  %v6623_v52 = vld [vmem:[%s7929_s2] ss:$0 sm:$0xff] }
 0x22a   : > { %4212 = vmatmul.mubr.msk.f32.gmra.mrb[24].mxu0 %vm1755_vm10, %v1728_v55  ;;  %v6511_v50 = vld [vmem:[#allocation2 + $0x78] sm:$0xff]  ;;  %v6537_v6 = vld [vmem:[#allocation2 + $0x80] sm:$0xff] }
 0x22b   : > { %3059 = vmatmul.mubr.f32.gmra.mrb[12].mxu1 %v6511_v50  ;;  %v6515_v37 = vpop.permute.xlu1 %741  ;;  %v6522_v49 = vpop.permute.xlu0 %739  ;;  %4351 = vmatpush1.bf16.msra.mxu0 %v4350_v60  ;;  %v2615_v55 = vld [vmem:[%s7930_s3 + $0xd8] sm:$0xff] }
 0x22c   : > { %3063 = vmatprep.mubr.f32.mxu1 %v6520_v33  ;;  %4352 = vmatprep.subr.bf16.mxu0 %v7934_v40  ;;  %v1507_v25 = vsel %vm1480_vm3, %v1470_v4, %v6522_v49  ;;  %v4365_v39 = vpack.c.bf16 %v2615_v55, %v2614_v8  ;;  %v1508_v49 = vsel %vm1480_vm3, %v1471_v11, %v6515_v37  ;;  %v2617_v37 = vld [vmem:[%s7930_s3 + $0xe8] sm:$0xff]  ;;  %v2353_v11 = vrot.slane %v2242_v17, 1 }
 0x22d   : > { %647 = vrot.lane.b32.xlu1 %v6409_v15, %s4862_s27  ;;  %1291 = vrot.lane.b32.xlu0 %v6366_v63, %s4867_s7  ;;  %v4353_v15 = vpack.c.bf16 %v2607_v41, %v2606_v45  ;;  %v577_v8 = vrot.slane %v6601_v53, 2 }
 0x22f   : > { %3064 = vmatmul.mubr.f32.gmra.mrb[14].mxu1 %v6537_v6  ;;  %v6544_v3 = vpop.permute.xlu1 %849  ;;  %v848_v58 = vpop.permute.xlu0 %847  ;;  %4354 = vmatpush1.bf16.msra.mxu0 %v4353_v15 }
 0x230   : > { %3068 = vmatprep.mubr.f32.mxu1 %v6549_v19  ;;  %4355 = vmatprep.subr.bf16.mxu0 %v7934_v40  ;;  %v1544_v34 = vsel %vm1517_vm4, %v1507_v25, %v848_v58  ;;  %v2616_v58 = vld [vmem:[%s7930_s3 + $0xe0] sm:$0xff] }
 0x231   : > { %1399 = vrot.lane.b32.xlu1 %v6540_v46, %s4868_s11  ;;  %1293 = vrot.lane.b32.xlu0 %v6390_v16, %s4867_s7 }
 0x233   : > { %v6567_v59 = vpop.permute.xlu1 %957  ;;  %v956_v36 = vpop.permute.xlu0 %955  ;;  %4357 = vmatpush1.bf16.msra.mxu0 %v4356_v56 }
 0x234   : > { %4358 = vmatprep.subr.bf16.mxu0 %v7934_v40  ;;  %v1581_v41 = vsel %vm1554_vm5, %v1544_v34, %v956_v36  ;;  %v475_v36 = vsel %vm371_vm0, %v473_v30, %v474_v43  ;;  %v4798_v34 = vld [vmem:[%s4925_s25 + $0x150] sm:$0xff] }
 0x235   : > { %755 = vrot.lane.b32.xlu1 %v6563_v9, %s4861_s26  ;;  %649 = vrot.lane.b32.xlu0 %v6406_v7, %s4862_s27 }
 0x237   : > { %v1066_v7 = vpop.permute.xlu1 %1065  ;;  %v1064_v29 = vpop.permute.xlu0 %1063  ;;  %4360 = vmatpush1.bf16.msra.mxu0 %v4359_v61 }
 0x238   : > { %4361 = vmatprep.subr.bf16.mxu0 %v7934_v40  ;;  %v1618_v51 = vsel %vm1591_vm6, %v1581_v41, %v1064_v29 }
 0x239   : > { %757 = vrot.lane.b32.xlu1 %v6580_v10, %s4861_s26  ;;  %1401 = vrot.lane.b32.xlu0 %v6583_v32, %s4868_s11 }
 0x23b   : > { %v1174_v27 = vpop.permute.xlu1 %1173  ;;  %v1172_v47 = vpop.permute.xlu0 %1171  ;;  %4363 = vmatpush1.bf16.msra.mxu0 %v4362_v23 }
 0x23c   : > { %4364 = vmatprep.subr.bf16.mxu0 %v7934_v40  ;;  %v1655_v21 = vsel %vm1628_vm7, %v1618_v51, %v1172_v47 }
 0x23d   : > { %v4195_v0 = vpop.f32.mrb[12].mxu0  ;;  %865 = vrot.lane.b32.xlu1 %v6305_v38, %s4863_s28  ;;  %863 = vrot.lane.b32.xlu0 %v6308_v26, %s4863_s28  ;;  %v476_v26 = vrot.slane %v6601_v53, 1 }
 0x23e   : > { %v1996_v38 = vadd.f32 %v6623_v52, %v4195_v0  ;;  %v1990_v2 = vpop.f32.mrb[13].mxu0 }
 0x23f   : > { %v1991_v60 = vadd.f32 %v6623_v52, %v1990_v2  ;;  %v1282_v62 = vpop.permute.xlu1 %1281  ;;  %v1280_v45 = vpop.permute.xlu0 %1279  ;;  %4366 = vmatpush1.bf16.msra.mxu0 %v4365_v39  ;;  %v477_v56 = vsel %vm371_vm0, %v474_v43, %v476_v26  ;;  %v575_v43 = vrot.slane %v6580_v10, 2  ;;  %v2356_v10 = vrot.slane %v6537_v6, 1 }
 0x240   : > { %v2122_v15 = vmax.f32 %v1996_v38, 0.0  ;;  %4367 = vmatprep.subr.bf16.mxu0 %v7934_v40  ;;  %v1692_v24 = vsel %vm1665_vm8, %v1655_v21, %v1280_v45 }
 0x241   : > { %v2121_v28 = vmax.f32 %v1991_v60, 0.0  ;;  %973 = vrot.lane.b32.xlu1 %v6466_v1, %s4864_s29  ;;  %971 = vrot.lane.b32.xlu0 %v6469_v48, %s4864_s29  ;;  %v4368_v1 = vpack.c.bf16 %v2617_v37, %v2616_v58  ;;  %v1545_v48 = vsel %vm1517_vm4, %v1508_v49, %v6544_v3  ;;  %v2618_v3 = vld [vmem:[%s7930_s3 + $0xf0] sm:$0xff]  ;;  %v578_v14 = vsel %vm478_vm1, %v575_v43, %v577_v8  ;;  %v4799_v49 = vld [vmem:[%s4925_s25 + $0x158] sm:$0xff]  ;;  %s4063_s29 = sshll.u32 %s8024_s18, 8 }
 0x242   : > { %2158 = vst [vmem:[#allocation2 + $0x99] sm:$0xff] %v2122_v15  ;;  %v1582_v29 = vsel %vm1554_vm5, %v1545_v48, %v6567_v59  ;;  %v4371_v4 = vpack.c.bf16 %v2619_v13, %v2618_v3  ;;  %s7831_s23 = scalar_lea.vmem %s7932_s5, %s4063_s29 }
 0x243   : > { %2157 = vst [vmem:[#allocation2 + $0x91] sm:$0xff] %v2121_v28  ;;  %v636_v22 = vpop.permute.xlu1 %635  ;;  %v1388_v61 = vpop.permute.xlu0 %1387  ;;  %4369 = vmatpush1.bf16.msra.mxu0 %v4368_v1  ;;  %v1619_v23 = vsel %vm1591_vm6, %v1582_v29, %v1066_v7 }
 0x244   : > { %v1729_v12 = vsel %vm1702_vm9, %v1692_v24, %v1388_v61  ;;  %v1656_v59 = vsel %vm1628_vm7, %v1619_v23, %v1174_v27  ;;  %4370 = vmatprep.subr.bf16.mxu0 %v7934_v40  ;;  %v574_v27 = vrot.slane %v6563_v9, 2  ;;  %v2355_v9 = vrot.slane %v6511_v50, 1 }
 0x245   : > { %1081 = vrot.lane.b32.xlu1 %v477_v56, %s4865_s9  ;;  %1079 = vrot.lane.b32.xlu0 %v475_v36, %s4865_s9  ;;  %v1693_v7 = vsel %vm1665_vm8, %v1656_v59, %v1282_v62  ;;  %v1472_v60 = vsel %vm1443_vm2, %v4798_v34, %v636_v22 }
 0x246   : > { %4214 = vmatprep.mubr.msk.f32.mxu0 %vm1755_vm10, %v1729_v12  ;;  %v6698_v38 = vsel %vm371_vm0, %v2355_v9, %v2356_v10 }
 0x247   : > { %v638_v47 = vpop.permute.xlu1 %637  ;;  %v1390_v31 = vpop.permute.xlu0 %1389  ;;  %4372 = vmatpush1.bf16.msra.mxu0 %v4371_v4  ;;  %v2245_v4 = vld [vmem:[#allocation2 + $0x88] sm:$0x3] }
 0x248   : > { %v1730_v30 = vsel %vm1702_vm9, %v1693_v7, %v1390_v31  ;;  %4469 = vmatprep.subr.bf16.mxu0 %v7934_v40  ;;  %v1473_v41 = vsel %vm1443_vm2, %v4799_v49, %v638_v47 }
 0x249   : > { %1189 = vrot.lane.b32.xlu1 %v6390_v16, %s4866_s22  ;;  %1187 = vrot.lane.b32.xlu0 %v6366_v63, %s4866_s22  ;;  %v6683_v16 = vsel %vm371_vm0, %v2351_v54, %v2353_v11  ;;  %v576_v54 = vsel %vm478_vm1, %v574_v27, %v575_v43  ;;  %v2358_v27 = vrot.slane %v2245_v4, 1 }
 0x24a   : > { %4215 = vmatmul.mubr.msk.f32.gmra.mrb[26].mxu0 %vm1755_vm10, %v1730_v30  ;;  %v6675_v0 = vld [vmem:[#allocation2 + $0x90] sm:$0xff]  ;;  %v6692_v53 = vld [vmem:[#allocation2 + $0x98] sm:$0xff] }
 0x24b   : > { %3069 = vmatmul.mubr.f32.gmra.mrb[16].mxu1 %v6675_v0  ;;  %v746_v55 = vpop.permute.xlu1 %745  ;;  %v744_v63 = vpop.permute.xlu0 %743 }
 0x24c   : > { %3073 = vmatprep.mubr.f32.mxu1 %v6683_v16  ;;  %v1509_v51 = vsel %vm1480_vm3, %v1472_v60, %v744_v63  ;;  %v1510_v1 = vsel %vm1480_vm3, %v1473_v41, %v746_v55  ;;  %v6729_v63 = vsel %vm371_vm0, %v2356_v10, %v2358_v27  ;;  %v4800_v60 = vld [vmem:[%s4925_s25 + $0x168] sm:$0xff]  ;;  %v4801_v41 = vld [vmem:[%s4925_s25 + $0x170] sm:$0xff] }
 0x24d   : > { %1297 = vrot.lane.b32.xlu1 %v6583_v32, %s4867_s7  ;;  %1295 = vrot.lane.b32.xlu0 %v6540_v46, %s4867_s7 }
 0x24f   : > { %3074 = vmatmul.mubr.f32.gmra.mrb[18].mxu1 %v6692_v53  ;;  %v854_v25 = vpop.permute.xlu1 %853  ;;  %v852_v2 = vpop.permute.xlu0 %851 }
 0x250   : > { %3078 = vmatprep.mubr.f32.mxu1 %v6698_v38  ;;  %v1546_v37 = vsel %vm1517_vm4, %v1509_v51, %v852_v2  ;;  %v1547_v12 = vsel %vm1517_vm4, %v1510_v1, %v854_v25 }
 0x251   : > { %1405 = vrot.lane.b32.xlu1 %v578_v14, %s4868_s11  ;;  %1403 = vrot.lane.b32.xlu0 %v576_v54, %s4868_s11  ;;  %v2360_v14 = vrot.slane %v6675_v0, 1  ;;  %v2361_v54 = vrot.slane %v6692_v53, 1 }
 0x253   : > { %v962_v46 = vpop.permute.xlu1 %961  ;;  %v960_v32 = vpop.permute.xlu0 %959 }
 0x254   : > { %v1583_v48 = vsel %vm1554_vm5, %v1546_v37, %v960_v32  ;;  %v1584_v13 = vsel %vm1554_vm5, %v1547_v12, %v962_v46  ;;  %v6738_v46 = vsel %vm371_vm0, %v2360_v14, %v2361_v54 }
 0x257   : > { %v1070_v26 = vpop.permute.xlu1 %1069  ;;  %v1068_v39 = vpop.permute.xlu0 %1067 }
 0x258   : > { %v1620_v22 = vsel %vm1591_vm6, %v1583_v48, %v1068_v39  ;;  %v1621_v7 = vsel %vm1591_vm6, %v1584_v13, %v1070_v26 }
 0x25b   : > { %v1178_v62 = vpop.permute.xlu1 %1177  ;;  %v1176_v45 = vpop.permute.xlu0 %1175 }
 0x25c   : > { %v1657_v29 = vsel %vm1628_vm7, %v1620_v22, %v1176_v45  ;;  %v1658_v47 = vsel %vm1628_vm7, %v1621_v7, %v1178_v62  ;;  %v2248_v7 = vld [vmem:[#allocation2 + $0xa0] sm:$0x3] }
 0x25d   : > { %v4198_v15 = vpop.f32.mrb[14].mxu0 }
 0x25e   : > { %v2006_v28 = vadd.f32 %v6623_v52, %v4198_v15  ;;  %v2000_v58 = vpop.f32.mrb[15].mxu0 }
 0x25f   : > { %v2001_v21 = vadd.f32 %v6623_v52, %v2000_v58  ;;  %v1286_v56 = vpop.permute.xlu1 %1285  ;;  %v1284_v36 = vpop.permute.xlu0 %1283 }
 0x260   : > { %v2124_v24 = vmax.f32 %v2006_v28, 0.0  ;;  %v1694_v17 = vsel %vm1665_vm8, %v1657_v29, %v1284_v36  ;;  %v1695_v31 = vsel %vm1665_vm8, %v1658_v47, %v1286_v56 }
 0x261   : > { %v2123_v61 = vmax.f32 %v2001_v21, 0.0 }
 0x262   : > { %2160 = vst [vmem:[#allocation2 + $0xb1] sm:$0xff] %v2124_v24 }
 0x263   : > { %2159 = vst [vmem:[#allocation2 + $0xa9] sm:$0xff] %v2123_v61  ;;  %v640_v23 = vpop.permute.xlu1 %639  ;;  %v1392_v3 = vpop.permute.xlu0 %1391 }
 0x264   : > { %v1731_v59 = vsel %vm1702_vm9, %v1694_v17, %v1392_v3  ;;  %v1474_v62 = vsel %vm1443_vm2, %v4800_v60, %v640_v23 }
 0x265   : > { %4217 = vmatprep.mubr.msk.f32.mxu0 %vm1755_vm10, %v1731_v59 }
 0x267   : > { %v642_v11 = vpop.permute.xlu1 %641  ;;  %v1394_v30 = vpop.permute.xlu0 %1393 }
 0x268   : > { %v1732_v43 = vsel %vm1702_vm9, %v1695_v31, %v1394_v30  ;;  %v1475_v15 = vsel %vm1443_vm2, %v4801_v41, %v642_v11 }
 0x269   : > { %4218 = vmatmul.mubr.msk.f32.gmra.mrb[28].mxu0 %vm1755_vm10, %v1732_v43  ;;  %v2363_v43 = vrot.slane %v2248_v7, 1 }
 0x26a   : > { %v6725_v8 = vld [vmem:[#allocation2 + $0xa8] sm:$0xff]  ;;  %v6734_v25 = vld [vmem:[#allocation2 + $0xb0] sm:$0xff] }
 0x26b   : > { %3079 = vmatmul.mubr.f32.gmra.mrb[20].mxu1 %v6725_v8  ;;  %v750_v55 = vpop.permute.xlu1 %749  ;;  %v748_v9 = vpop.permute.xlu0 %747 }
 0x26c   : > { %3083 = vmatprep.mubr.f32.mxu1 %v6729_v63  ;;  %v1511_v28 = vsel %vm1480_vm3, %v1474_v62, %v748_v9  ;;  %v1512_v48 = vsel %vm1480_vm3, %v1475_v15, %v750_v55  ;;  %v4802_v15 = vld [vmem:[%s4925_s25 + $0x180] sm:$0xff] }
 0x26f   : > { %3084 = vmatmul.mubr.f32.gmra.mrb[22].mxu1 %v6734_v25  ;;  %v858_v2 = vpop.permute.xlu1 %857  ;;  %v856_v32 = vpop.permute.xlu0 %855 }
 0x270   : > { %3088 = vmatprep.mubr.f32.mxu1 %v6738_v46  ;;  %v1548_v21 = vsel %vm1517_vm4, %v1511_v28, %v856_v32  ;;  %v1549_v17 = vsel %vm1517_vm4, %v1512_v48, %v858_v2  ;;  %v6767_v2 = vsel %vm371_vm0, %v2361_v54, %v2363_v43 }
 0x273   : > { %v966_v10 = vpop.permute.xlu1 %965  ;;  %v964_v26 = vpop.permute.xlu0 %963 }
 0x274   : > { %v1585_v24 = vsel %vm1554_vm5, %v1548_v21, %v964_v26  ;;  %v1586_v59 = vsel %vm1554_vm5, %v1549_v17, %v966_v10  ;;  %v2365_v10 = vrot.slane %v6725_v8, 1  ;;  %v2366_v26 = vrot.slane %v6734_v25, 1 }
 0x276   : > { %v6776_v60 = vsel %vm371_vm0, %v2365_v10, %v2366_v26 }
 0x277   : > { %v1074_v39 = vpop.permute.xlu1 %1073  ;;  %v1072_v34 = vpop.permute.xlu0 %1071 }
 0x278   : > { %v1622_v61 = vsel %vm1591_vm6, %v1585_v24, %v1072_v34  ;;  %v1623_v47 = vsel %vm1591_vm6, %v1586_v59, %v1074_v39 }
 0x27b   : > { %v1182_v45 = vpop.permute.xlu1 %1181  ;;  %v1180_v49 = vpop.permute.xlu0 %1179 }
 0x27c   : > { %v1659_v12 = vsel %vm1628_vm7, %v1622_v61, %v1180_v49  ;;  %v1660_v31 = vsel %vm1628_vm7, %v1623_v47, %v1182_v45 }
 0x27d   : > { %v4201_v51 = vpop.f32.mrb[16].mxu0 }
 0x27e   : > { %v2016_v58 = vadd.f32 %v6623_v52, %v4201_v51  ;;  %v2010_v37 = vpop.f32.mrb[17].mxu0 }
 0x27f   : > { %v2011_v56 = vadd.f32 %v6623_v52, %v2010_v37  ;;  %v1290_v36 = vpop.permute.xlu1 %1289  ;;  %v1288_v1 = vpop.permute.xlu0 %1287 }
 0x280   : > { %v2126_v22 = vmax.f32 %v2016_v58, 0.0  ;;  %v1696_v23 = vsel %vm1665_vm8, %v1659_v12, %v1288_v1  ;;  %v1697_v11 = vsel %vm1665_vm8, %v1660_v31, %v1290_v36  ;;  %v4803_v12 = vld [vmem:[%s4925_s25 + $0x188] sm:$0xff] }
 0x281   : > { %v2125_v29 = vmax.f32 %v2011_v56, 0.0 }
 0x282   : > { %2162 = vst [vmem:[#allocation2 + $0xc9] sm:$0xff] %v2126_v22 }
 0x283   : > { %2161 = vst [vmem:[#allocation2 + $0xc1] sm:$0xff] %v2125_v29  ;;  %v644_v3 = vpop.permute.xlu1 %643  ;;  %v1396_v13 = vpop.permute.xlu0 %1395 }
 0x284   : > { %v1733_v4 = vsel %vm1702_vm9, %v1696_v23, %v1396_v13  ;;  %v1476_v51 = vsel %vm1443_vm2, %v4802_v15, %v644_v3 }
 0x285   : > { %4220 = vmatprep.mubr.msk.f32.mxu0 %vm1755_vm10, %v1733_v4 }
 0x287   : > { %v646_v30 = vpop.permute.xlu1 %645  ;;  %v1398_v27 = vpop.permute.xlu0 %1397 }
 0x288   : > { %v1734_v55 = vsel %vm1702_vm9, %v1697_v11, %v1398_v27  ;;  %v1477_v17 = vsel %vm1443_vm2, %v4803_v12, %v646_v30  ;;  %v2251_v11 = vld [vmem:[#allocation2 + $0xb8] sm:$0x3] }
 0x289   : > { %4221 = vmatmul.mubr.msk.f32.gmra.mrb[30].mxu0 %vm1755_vm10, %v1734_v55  ;;  %v2368_v55 = vrot.slane %v2251_v11, 1 }
 0x28a   : > { %v6763_v9 = vld [vmem:[#allocation2 + $0xc0] sm:$0xff]  ;;  %v6772_v39 = vld [vmem:[#allocation2 + $0xc8] sm:$0xff] }
 0x28b   : > { %3089 = vmatmul.mubr.f32.gmra.mrb[24].mxu1 %v6763_v9  ;;  %v754_v14 = vpop.permute.xlu1 %753  ;;  %v752_v32 = vpop.permute.xlu0 %751  ;;  %v6803_v15 = vsel %vm371_vm0, %v2366_v26, %v2368_v55 }
 0x28c   : > { %3093 = vmatprep.mubr.f32.mxu1 %v6767_v2  ;;  %v1513_v21 = vsel %vm1480_vm3, %v1476_v51, %v752_v32  ;;  %v1514_v47 = vsel %vm1480_vm3, %v1477_v17, %v754_v14  ;;  %v2370_v51 = vrot.slane %v6763_v9, 1 }
 0x28f   : > { %3094 = vmatmul.mubr.f32.gmra.mrb[26].mxu1 %v6772_v39  ;;  %v862_v34 = vpop.permute.xlu1 %861  ;;  %v860_v62 = vpop.permute.xlu0 %859 }
 0x290   : > { %3098 = vmatprep.mubr.f32.mxu1 %v6776_v60  ;;  %v1550_v1 = vsel %vm1517_vm4, %v1513_v21, %v860_v62  ;;  %v1551_v30 = vsel %vm1517_vm4, %v1514_v47, %v862_v34  ;;  %v2652_v21 = vld [vmem:[%s7930_s3 + $0x200] sm:$0xff] }
 0x293   : > { %v970_v54 = vpop.permute.xlu1 %969  ;;  %v968_v45 = vpop.permute.xlu0 %967 }
 0x294   : > { %v1587_v61 = vsel %vm1554_vm5, %v1550_v1, %v968_v45  ;;  %v1588_v32 = vsel %vm1554_vm5, %v1551_v30, %v970_v54 }
 0x297   : > { %v1078_v49 = vpop.permute.xlu1 %1077  ;;  %v1076_v41 = vpop.permute.xlu0 %1075 }
 0x298   : > { %v1624_v23 = vsel %vm1591_vm6, %v1587_v61, %v1076_v41  ;;  %v1625_v10 = vsel %vm1591_vm6, %v1588_v32, %v1078_v49 }
 0x29b   : > { %v1186_v28 = vpop.permute.xlu1 %1185  ;;  %v1184_v58 = vpop.permute.xlu0 %1183 }
 0x29c   : > { %v1661_v13 = vsel %vm1628_vm7, %v1624_v23, %v1184_v58  ;;  %v1662_v62 = vsel %vm1628_vm7, %v1625_v10, %v1186_v28  ;;  %v2371_v58 = vrot.slane %v6772_v39, 1 }
 0x29d   : > { %v4204_v37 = vpop.f32.mrb[18].mxu0 }
 0x29e   : > { %v2026_v56 = vadd.f32 %v6623_v52, %v4204_v37  ;;  %v2020_v36 = vpop.f32.mrb[19].mxu0  ;;  %v6816_v26 = vsel %vm371_vm0, %v2370_v51, %v2371_v58  ;;  %v2656_v51 = vld [vmem:[%s7930_s3 + $0x220] sm:$0xff] }
 0x29f   : > { %v2021_v48 = vadd.f32 %v6623_v52, %v2020_v36  ;;  %v648_v24 = vpop.permute.xlu1 %647  ;;  %v1292_v22 = vpop.permute.xlu0 %1291  ;;  %v2654_v36 = vld [vmem:[%s7930_s3 + $0x210] sm:$0xff] }
 0x2a0   : > { %v2128_v29 = vmax.f32 %v2026_v56, 0.0  ;;  %v1698_v59 = vsel %vm1665_vm8, %v1661_v13, %v1292_v22  ;;  %v2653_v56 = vld [vmem:[%s7930_s3 + $0x208] sm:$0xff]  ;;  %v1478_v23 = vsel %vm1443_vm2, %v6272_v35, %v648_v24 }
 0x2a1   : > { %v2127_v3 = vmax.f32 %v2021_v48, 0.0  ;;  %v4422_v1 = vpack.c.bf16 %v2653_v56, %v2652_v21  ;;  %v2655_v48 = vld [vmem:[%s7930_s3 + $0x218] sm:$0xff] }
 0x2a2   : > { %2164 = vst [vmem:[#allocation2 + $0xe1] sm:$0xff] %v2128_v29  ;;  %v4425_v29 = vpack.c.bf16 %v2655_v48, %v2654_v36  ;;  %v2659_v48 = vld [vmem:[%s7930_s3 + $0x238] sm:$0xff] }
 0x2a3   : > { %2163 = vst [vmem:[#allocation2 + $0xd9] sm:$0xff] %v2127_v3  ;;  %v1400_v4 = vpop.permute.xlu1 %1399  ;;  %v1294_v7 = vpop.permute.xlu0 %1293  ;;  %4423 = vmatpush1.bf16.msra.mxu1 %v4422_v1 }
 0x2a4   : > { %v1735_v31 = vsel %vm1702_vm9, %v1698_v59, %v1400_v4  ;;  %v1699_v14 = vsel %vm1665_vm8, %v1662_v62, %v1294_v7  ;;  %4424 = vmatprep.subr.bf16.mxu1 %v7934_v40 }
 0x2a5   : > { %4223 = vmatprep.mubr.msk.f32.mxu0 %vm1755_vm10, %v1735_v31 }
 0x2a7   : > { %v756_v27 = vpop.permute.xlu1 %755  ;;  %v650_v43 = vpop.permute.xlu0 %649  ;;  %4426 = vmatpush1.bf16.msra.mxu1 %v4425_v29  ;;  %v2254_v29 = vld [vmem:[#allocation2 + $0xd0] sm:$0x3] }
 0x2a8   : > { %4427 = vmatprep.subr.bf16.mxu1 %v7934_v40  ;;  %v1479_v59 = vsel %vm1443_vm2, %v6269_v18, %v650_v43  ;;  %v1515_v7 = vsel %vm1480_vm3, %v1478_v23, %v756_v27  ;;  %v2373_v23 = vrot.slane %v2254_v29, 1 }
 0x2aa   : > { %v6798_v45 = vld [vmem:[#allocation2 + $0xd8] sm:$0xff]  ;;  %v6810_v49 = vld [vmem:[#allocation2 + $0xe0] sm:$0xff] }
 0x2ab   : > { %3099 = vmatmul.mubr.f32.gmra.mrb[28].mxu1 %v6798_v45  ;;  %v758_v41 = vpop.permute.xlu1 %757  ;;  %v1402_v34 = vpop.permute.xlu0 %1401 }
 0x2ac   : > { %3103 = vmatprep.mubr.f32.mxu1 %v6803_v15  ;;  %v1736_v54 = vsel %vm1702_vm9, %v1699_v14, %v1402_v34  ;;  %v1516_v47 = vsel %vm1480_vm3, %v1479_v59, %v758_v41  ;;  %v6878_v59 = vld [vmem:[#allocation2 + $0x20] sm:$0xff] }
 0x2ad   : > { %4224 = vmatmul.mubr.msk.f32.gmra.mrb[32].mxu0 %vm1755_vm10, %v1736_v54  ;;  %v2657_v54 = vld [vmem:[%s7930_s3 + $0x228] sm:$0xff] }
 0x2ae   : > { %v4428_v1 = vpack.c.bf16 %v2657_v54, %v2656_v51  ;;  %v6938_v51 = vld [vmem:[#allocation2 + $0x48] sm:$0xff]  ;;  %v6945_v54 = vld [vmem:[#allocation2 + $0x50] sm:$0xff] }
 0x2af   : > { %3104 = vmatmul.mubr.f32.gmra.mrb[30].mxu1 %v6810_v49  ;;  %v866_v28 = vpop.permute.xlu1 %865  ;;  %v864_v37 = vpop.permute.xlu0 %863 }
 0x2b0   : > { %3108 = vmatprep.mubr.f32.mxu1 %v6816_v26  ;;  %v1553_v30 = vsel %vm1517_vm4, %v1516_v47, %v866_v28  ;;  %v1552_v55 = vsel %vm1517_vm4, %v1515_v7, %v864_v37  ;;  %v2658_v28 = vld [vmem:[%s7930_s3 + $0x230] sm:$0xff]  ;;  %4429 = vmatpush1.bf16.msra.mxu1 %v4428_v1  ;;  %v2375_v7 = vrot.slane %v6798_v45, 1  ;;  %v2376_v47 = vrot.slane %v6810_v49, 1 }
 0x2b1   : > { %4430 = vmatprep.subr.bf16.mxu1 %v7934_v40 }
 0x2b3   : > { %v974_v22 = vpop.permute.xlu1 %973  ;;  %v972_v61 = vpop.permute.xlu0 %971 }
 0x2b4   : > { %v1590_v10 = vsel %vm1554_vm5, %v1553_v30, %v974_v22  ;;  %v1589_v18 = vsel %vm1554_vm5, %v1552_v55, %v972_v61  ;;  %v2660_v30 = vld [vmem:[%s7930_s3 + $0x240] sm:$0xff]  ;;  %v2661_v55 = vld [vmem:[%s7930_s3 + $0x248] sm:$0xff] }
 0x2b7   : > { %v1082_v12 = vpop.permute.xlu1 %1081  ;;  %v1080_v17 = vpop.permute.xlu0 %1079 }
 0x2b8   : > { %v1627_v27 = vsel %vm1591_vm6, %v1590_v10, %v1082_v12  ;;  %v1626_v62 = vsel %vm1591_vm6, %v1589_v18, %v1080_v17  ;;  %v4431_v12 = vpack.c.bf16 %v2659_v48, %v2658_v28  ;;  %v6868_v17 = vld [vmem:[#allocation2 + $0x18] sm:$0xff]  ;;  %v2662_v10 = vld [vmem:[%s7930_s3 + $0x250] sm:$0xff]  ;;  %v6957_v48 = vld [vmem:[#allocation2 + $0x60] sm:$0xff] }
 0x2b9   : > { %v2663_v18 = vld [vmem:[%s7930_s3 + $0x258] sm:$0xff] }
 0x2ba   : > { %4432 = vmatpush1.bf16.msra.mxu1 %v4431_v12  ;;  %v2257_v12 = vld [vmem:[#allocation2 + $0xe8] sm:$0x3] }
 0x2bb   : > { %v1190_v3 = vpop.permute.xlu1 %1189  ;;  %v1188_v13 = vpop.permute.xlu0 %1187  ;;  %4433 = vmatprep.subr.bf16.mxu1 %v7934_v40 }
 0x2bc   : > { %v1664_v41 = vsel %vm1628_vm7, %v1627_v27, %v1190_v3  ;;  %v1663_v34 = vsel %vm1628_vm7, %v1626_v62, %v1188_v13  ;;  %v6871_v3 = vld [vmem:[#allocation2] sm:$0xff]  ;;  %v2686_v27 = vld [vmem:[%s7930_s3 + $0x310] sm:$0xff]  ;;  %v2687_v62 = vld [vmem:[%s7930_s3 + $0x318] sm:$0xff] }
 0x2bd   : > { %v4207_v4 = vpop.f32.mrb[20].mxu0 }
 0x2be   : > { %v2036_v31 = vadd.f32 %v6623_v52, %v4207_v4  ;;  %v2030_v11 = vpop.f32.mrb[21].mxu0  ;;  %v6884_v4 = vsel %vm371_vm0, %v2371_v58, %v2373_v23  ;;  %v6899_v58 = vsel %vm371_vm0, %v2375_v7, %v2376_v47  ;;  %v2664_v23 = vld [vmem:[%s7930_s3 + $0x260] sm:$0xff]  ;;  %v2665_v7 = vld [vmem:[%s7930_s3 + $0x268] sm:$0xff] }
 0x2bf   : > { %v2031_v32 = vadd.f32 %v6623_v52, %v2030_v11  ;;  %v1298_v35 = vpop.permute.xlu1 %1297  ;;  %v1296_v24 = vpop.permute.xlu0 %1295  ;;  %v6893_v11 = vld [vmem:[#allocation2 + $0x30] sm:$0xff] }
 0x2c0   : > { %v2130_v43 = vmax.f32 %v2036_v31, 0.0  ;;  %v1701_v37 = vsel %vm1665_vm8, %v1664_v41, %v1298_v35  ;;  %v1700_v21 = vsel %vm1665_vm8, %v1663_v34, %v1296_v24  ;;  %v4434_v35 = vpack.c.bf16 %v2661_v55, %v2660_v30  ;;  %v2685_v24 = vld [vmem:[%s7930_s3 + $0x308] sm:$0xff]  ;;  %v6929_v41 = vld [vmem:[#allocation2 + $0x38] sm:$0xff]  ;;  %v2690_v30 = vld [vmem:[%s7930_s3 + $0x330] sm:$0xff] }
 0x2c1   : > { %v2129_v14 = vmax.f32 %v2031_v32, 0.0  ;;  %v2684_v32 = vld [vmem:[%s7930_s3 + $0x300] sm:$0xff]  ;;  %v6933_v34 = vpack.c.bf16 %v2687_v62, %v2686_v27  ;;  %v6974_v55 = vld [vmem:[#allocation2 + $0x68] sm:$0xff] }
 0x2c2   : > { %2166 = vst [vmem:[#allocation2 + $0xf9] sm:$0xff] %v2130_v43  ;;  %v6920_v43 = vpack.c.bf16 %v2685_v24, %v2684_v32  ;;  %4435 = vmatpush1.bf16.msra.mxu1 %v4434_v35  ;;  %v4440_v32 = vpack.c.bf16 %v2665_v7, %v2664_v23  ;;  %v2691_v35 = vld [vmem:[%s7930_s3 + $0x338] sm:$0xff]  ;;  %v2666_v24 = vld [vmem:[%s7930_s3 + $0x270] sm:$0xff]  ;;  %v2692_v62 = vld [vmem:[%s7930_s3 + $0x340] sm:$0xff] }
 0x2c3   : > { %2165 = vst [vmem:[#allocation2 + $0xf1] sm:$0xff] %v2129_v14  ;;  %v1406_v56 = vpop.permute.xlu1 %1405  ;;  %v1404_v36 = vpop.permute.xlu0 %1403  ;;  %v4437_v14 = vpack.c.bf16 %v2663_v18, %v2662_v10  ;;  %4436 = vmatprep.subr.bf16.mxu1 %v7934_v40  ;;  %v2667_v10 = vld [vmem:[%s7930_s3 + $0x278] sm:$0xff]  ;;  %v6986_v18 = vpack.c.bf16 %v2691_v35, %v2690_v30 }
 0x2c4   : > { %v1738_v22 = vsel %vm1702_vm9, %v1701_v37, %v1406_v56  ;;  %v1737_v61 = vsel %vm1702_vm9, %v1700_v21, %v1404_v36  ;;  %v2688_v56 = vld [vmem:[%s7930_s3 + $0x320] sm:$0xff]  ;;  %v2689_v36 = vld [vmem:[%s7930_s3 + $0x328] sm:$0xff]  ;;  %v4443_v27 = vpack.c.bf16 %v2667_v10, %v2666_v24 }
 0x2c5   : > { %4226 = vmatprep.mubr.msk.f32.mxu0 %vm1755_vm10, %v1737_v61  ;;  %v2696_v10 = vld [vmem:[%s7930_s3 + $0x360] sm:$0xff] }
 0x2c6   : > { %4227 = vmatmul.mubr.msk.f32.gmra.mrb[34].mxu0 %vm1755_vm10, %v1738_v22  ;;  %4438 = vmatpush1.bf16.msra.mxu1 %v4437_v14  ;;  %v6960_v22 = vpack.c.bf16 %v2689_v36, %v2688_v56  ;;  %v2693_v14 = vld [vmem:[%s7930_s3 + $0x348] sm:$0xff] }
 0x2c7   : > { %2803 = vmatprep.mubr.f32.mxu0 %v6868_v17  ;;  %4439 = vmatprep.subr.bf16.mxu1 %v7934_v40 }
 0x2ca   : > { %2804 = vmatmul.mubr.f32.vlgmr.msra.gmra.mrb[36].mxu0 %v6871_v3  ;;  %v6874_v13 = vld [vmem:[#allocation2 + $0xf0] sm:$0xff]  ;;  %v6890_v31 = vld [vmem:[#allocation2 + $0xf8] sm:$0xff]  ;;  %4441 = vmatpush1.bf16.msra.mxu1 %v4440_v32 }
 0x2cb   : > { %3109 = vmatmul.mubr.f32.gmra.mrb[32].mxu1 %v6874_v13  ;;  %2808 = vmatprep.mubr.f32.mxu0 %v6878_v59  ;;  %v7933_v23 = vrot.slane %v6890_v31, 1 }
 0x2cc   : > { %3113 = vmatprep.mubr.f32.mxu1 %v6884_v4  ;;  %4471 = vmatpush1.bf16.msra.mxu0 %v6920_v43 }
 0x2cd   : > { %4472 = vmatprep.subr.bf16.mxu0 %v7934_v40  ;;  %4442 = vmatprep.subr.bf16.mxu1 %v7934_v40 }
 0x2ce   : > { %2809 = vmatmul.mubr.f32.gmra.mrb[38].mxu0 %v6871_v3  ;;  %4444 = vmatpush1.bf16.msra.mxu1 %v4443_v27  ;;  %v2697_v27 = vld [vmem:[%s7930_s3 + $0x368] sm:$0xff] }
 0x2cf   : > { %3114 = vmatmul.mubr.f32.gmra.mrb[34].mxu1 %v6890_v31  ;;  %2813 = vmatprep.mubr.f32.mxu0 %v6893_v11 }
 0x2d0   : > { %3118 = vmatprep.mubr.f32.mxu1 %v6899_v58  ;;  %4474 = vmatpush1.bf16.msra.mxu0 %v6933_v34 }
 0x2d1   : > { %4475 = vmatprep.subr.bf16.mxu0 %v7934_v40  ;;  %4445 = vmatprep.subr.bf16.mxu1 %v7934_v40 }
 0x2d2   : > { %2814 = vmatmul.mubr.f32.gmra.mrb[40].mxu0 %v6868_v17 }
 0x2d3   : > { %2818 = vmatprep.mubr.f32.mxu0 %v6929_v41 }
 0x2d4   : > { %4477 = vmatpush1.bf16.msra.mxu0 %v6960_v22 }
 0x2d5   : > { %4478 = vmatprep.subr.bf16.mxu0 %v7934_v40 }
 0x2d6   : > { %2819 = vmatmul.mubr.f32.gmra.mrb[42].mxu0 %v6878_v59 }
 0x2d7   : > { %2823 = vmatprep.mubr.f32.mxu0 %v6938_v51 }
 0x2d8   : > { %4480 = vmatpush1.bf16.msra.mxu0 %v6986_v18 }
 0x2d9   : > { %4481 = vmatprep.subr.bf16.mxu0 %v7934_v40 }
 0x2da   : > { %2824 = vmatmul.mubr.f32.gmra.mrb[44].mxu0 %v6893_v11 }
 0x2db   : > { %2828 = vmatprep.mubr.f32.mxu0 %v6945_v54 }
 0x2dd   : > { %v4210_v28 = vpop.f32.mrb[22].mxu0 }
 0x2de   : > { %v2046_v37 = vadd.f32 %v6623_v52, %v4210_v28  ;;  %v2040_v21 = vpop.f32.mrb[23].mxu0  ;;  %2829 = vmatmul.mubr.f32.gmra.mrb[46].mxu0 %v6929_v41  ;;  %v2378_v28 = vrot.slane %v2257_v12, 1  ;;  %v2380_v12 = vrot.slane %v6874_v13, 1 }
 0x2df   : > { %v2041_v1 = vadd.f32 %v6623_v52, %v2040_v21  ;;  %2833 = vmatprep.mubr.f32.mxu0 %v6957_v48 }
 0x2e0   : > { %v2132_v61 = vmax.f32 %v2046_v37, 0.0  ;;  %v6999_v37 = vpack.c.bf16 %v2693_v14, %v2692_v62  ;;  %v7009_v36 = vsel %vm371_vm0, %v2376_v47, %v2378_v28  ;;  %v2695_v47 = vld [vmem:[%s7930_s3 + $0x358] sm:$0xff]  ;;  %v7050_v62 = vsel %vm371_vm0, %v2380_v12, %v7933_v23  ;;  %v2668_v14 = vld [vmem:[%s7930_s3 + $0x280] sm:$0xff]  ;;  %v2669_v28 = vld [vmem:[%s7930_s3 + $0x288] sm:$0xff] }
 0x2e1   : > { %v2131_v29 = vmax.f32 %v2041_v1, 0.0  ;;  %7971 = vst [vmem:[#allocation5_spill] sm:$0xff] %v7050_v62  ;;  %v2670_v12 = vld [vmem:[%s7930_s3 + $0x290] sm:$0xff] }
 0x2e2   : > { %2168 = vst [vmem:[#allocation2 + $0x111] sm:$0xff] %v2132_v61  ;;  %2834 = vmatmul.mubr.f32.gmra.mrb[48].mxu0 %v6938_v51  ;;  %v2694_v61 = vld [vmem:[%s7930_s3 + $0x350] sm:$0xff] }
 0x2e3   : > { %2167 = vst [vmem:[#allocation2 + $0x109] sm:$0xff] %v2131_v29  ;;  %2838 = vmatprep.mubr.f32.mxu0 %v6974_v55  ;;  %4483 = vmatpush1.bf16.msra.mxu0 %v6999_v37  ;;  %v7029_v32 = vpack.c.bf16 %v2695_v47, %v2694_v61  ;;  %v4446_v61 = vpack.c.bf16 %v2669_v28, %v2668_v14  ;;  %v2671_v47 = vld [vmem:[%s7930_s3 + $0x298] sm:$0xff]  ;;  %v2700_v14 = vld [vmem:[%s7930_s3 + $0x380] sm:$0xff] }
 0x2e4   : > { %4484 = vmatprep.subr.bf16.mxu0 %v7934_v40 }
 0x2e5   : > { %4447 = vmatpush1.bf16.msra.mxu1 %v4446_v61  ;;  %v2702_v61 = vld [vmem:[%s7930_s3 + $0x390] sm:$0xff] }
 0x2e6   : > { %2839 = vmatmul.mubr.f32.gmra.mrb[50].mxu0 %v6945_v54  ;;  %4448 = vmatprep.subr.bf16.mxu1 %v7934_v40 }
 0x2e7   : > { %2843 = vmatprep.mubr.f32.mxu0 %v6511_v50  ;;  %4486 = vmatpush1.bf16.msra.mxu0 %v7029_v32 }
 0x2e8   : > { %4487 = vmatprep.subr.bf16.mxu0 %v7934_v40 }
 0x2e9   : > { %v7001_v21 = vld [vmem:[#allocation2 + $0x118] sm:$0x3] }
 0x2ea   : > { %2844 = vmatmul.mubr.f32.gmra.mrb[52].mxu0 %v6957_v48  ;;  %v7004_v56 = vld [vmem:[#allocation2 + $0x108] sm:$0xff]  ;;  %v7011_v1 = vld [vmem:[#allocation2 + $0x110] sm:$0xff]  ;;  %v2520_v29 = vrot.slane %v7001_v21, 2 }
 0x2eb   : > { %3119 = vmatmul.mubr.f32.gmra.mrb[36].mxu1 %v7004_v56  ;;  %2848 = vmatprep.mubr.f32.mxu0 %v6537_v6  ;;  %v2517_v7 = vrot.slane %v7004_v56, 2  ;;  %v2518_v30 = vrot.slane %v7011_v1, 2 }
 0x2ec   : > { %3123 = vmatprep.mubr.f32.mxu1 %v7009_v36 }
 0x2ed   : > { %v7033_v35 = vsel %vm478_vm1, %v2517_v7, %v2518_v30  ;;  %v7036_v24 = vsel %vm478_vm1, %v2518_v30, %v2520_v29  ;;  %v7060_v29 = vpack.c.bf16 %v2697_v27, %v2696_v10  ;;  %v2698_v7 = vld [vmem:[%s7930_s3 + $0x370] sm:$0xff]  ;;  %v2699_v30 = vld [vmem:[%s7930_s3 + $0x378] sm:$0xff]  ;;  %v4449_v10 = vpack.c.bf16 %v2671_v47, %v2670_v12 }
 0x2ee   : > { %7969 = vst [vmem:[#allocation3_spill] sm:$0xff] %v7033_v35  ;;  %7970 = vst [vmem:[#allocation4_spill] sm:$0xff] %v7036_v24  ;;  %2849 = vmatmul.mubr.f32.gmra.mrb[54].mxu0 %v6974_v55  ;;  %v7079_v27 = vpack.c.bf16 %v2699_v30, %v2698_v7  ;;  %v2703_v12 = vld [vmem:[%s7930_s3 + $0x398] sm:$0xff]  ;;  %v7975_v35 = vmov 0.0|0.0  }
 0x2ef   : > { %3124 = vmatmul.mubr.f32.gmra.mrb[38].mxu1 %v7011_v1  ;;  %2853 = vmatprep.mubr.f32.mxu0 %v6675_v0 }
 0x2f0   : > { %3128 = vmatprep.mubr.f32.mxu1 %v7050_v62  ;;  %4489 = vmatpush1.bf16.msra.mxu0 %v7060_v29  ;;  %v2676_v62 = vld [vmem:[%s7930_s3 + $0x2c0] sm:$0xff] }
 0x2f1   : > { %4490 = vmatprep.subr.bf16.mxu0 %v7934_v40  ;;  %4450 = vmatpush1.bf16.msra.mxu1 %v4449_v10  ;;  %v2704_v10 = vld [vmem:[%s7930_s3 + $0x3a0] sm:$0xff] }
 0x2f2   : > { %2854 = vmatmul.mubr.f32.gmra.mrb[56].mxu0 %v6511_v50  ;;  %v2701_v50 = vld [vmem:[%s7930_s3 + $0x388] sm:$0xff]  ;;  %4451 = vmatprep.subr.bf16.mxu1 %v7934_v40 }
 0x2f3   : > { %2858 = vmatprep.mubr.f32.mxu0 %v6692_v53  ;;  %v7092_v28 = vpack.c.bf16 %v2701_v50, %v2700_v14 }
 0x2f4   : > { %4492 = vmatpush1.bf16.msra.mxu0 %v7079_v27 }
 0x2f5   : > { %4493 = vmatprep.subr.bf16.mxu0 %v7934_v40 }
 0x2f6   : > { %2859 = vmatmul.mubr.f32.gmra.mrb[58].mxu0 %v6537_v6  ;;  %v7104_v6 = vpack.c.bf16 %v2703_v12, %v2702_v61 }
 0x2f7   : > { %2863 = vmatprep.mubr.f32.mxu0 %v6725_v8 }
 0x2f8   : > { %4495 = vmatpush1.bf16.msra.mxu0 %v7092_v28 }
 0x2f9   : > { %4496 = vmatprep.subr.bf16.mxu0 %v7934_v40 }
 0x2fa   : > { %2864 = vmatmul.mubr.f32.gmra.mrb[60].mxu0 %v6675_v0  ;;  %v2705_v0 = vld [vmem:[%s7930_s3 + $0x3a8] sm:$0xff] }
 0x2fb   : > { %2868 = vmatprep.mubr.f32.mxu0 %v6734_v25  ;;  %v7118_v61 = vpack.c.bf16 %v2705_v0, %v2704_v10 }
 0x2fc   : > { %4498 = vmatpush1.bf16.msra.mxu0 %v7104_v6 }
 0x2fd   : > { %v4213_v47 = vpop.f32.mrb[24].mxu0  ;;  %4499 = vmatprep.subr.bf16.mxu0 %v7934_v40 }
 0x2fe   : > { %v2056_v7 = vadd.f32 %v6623_v52, %v4213_v47  ;;  %v2050_v30 = vpop.f32.mrb[25].mxu0  ;;  %2869 = vmatmul.mubr.f32.gmra.mrb[62].mxu0 %v6692_v53  ;;  %v2706_v53 = vld [vmem:[%s7930_s3 + $0x3b0] sm:$0xff]  ;;  %v7129_v47 = vld [vmem:[#allocation2 + $0x100] sm:$0x3] }
 0x2ff   : > { %v2051_v14 = vadd.f32 %v6623_v52, %v2050_v30  ;;  %2873 = vmatprep.mubr.f32.mxu0 %v6763_v9  ;;  %v2707_v52 = vld [vmem:[%s7930_s3 + $0x3b8] sm:$0xff]  ;;  %7972 = vst [vmem:[#allocation6_spill] sm:$0xff] %v7129_v47  ;;  %v2673_v30 = vld [vmem:[%s7930_s3 + $0x2a8] sm:$0xff]  ;;  %v2383_v10 = vrot.slane %v7129_v47, 1 }
 0x300   : > { %v2134_v50 = vmax.f32 %v2056_v7, 0.0  ;;  %4501 = vmatpush1.bf16.msra.mxu0 %v7118_v61  ;;  %v7132_v7 = vpack.c.bf16 %v2707_v52, %v2706_v53 }
 0x301   : > { %v2133_v12 = vmax.f32 %v2051_v14, 0.0  ;;  %4502 = vmatprep.subr.bf16.mxu0 %v7934_v40  ;;  %v2674_v14 = vld [vmem:[%s7930_s3 + $0x2b0] sm:$0xff] }
 0x302   : > { %2170 = vst [vmem:[#allocation2 + $0x129] sm:$0xff] %v2134_v50  ;;  %2874 = vmatmul.mubr.f32.gmra.mrb[64].mxu0 %v6725_v8  ;;  %v2672_v8 = vld [vmem:[%s7930_s3 + $0x2a0] sm:$0xff]  ;;  %v2675_v50 = vld [vmem:[%s7930_s3 + $0x2b8] sm:$0xff] }
 0x303   : > { %2169 = vst [vmem:[#allocation2 + $0x121] sm:$0xff] %v2133_v12  ;;  %2878 = vmatprep.mubr.f32.mxu0 %v6772_v39  ;;  %v4452_v0 = vpack.c.bf16 %v2673_v30, %v2672_v8  ;;  %v2708_v12 = vld [vmem:[%s7930_s3 + $0x3c0] sm:$0xff]  ;;  %v4455_v53 = vpack.c.bf16 %v2675_v50, %v2674_v14  ;;  %v2710_v30 = vld [vmem:[%s7930_s3 + $0x3d0] sm:$0xff] }
 0x304   : > { %4504 = vmatpush1.bf16.msra.mxu0 %v7132_v7 }
 0x305   : > { %4453 = vmatpush1.bf16.msra.mxu1 %v4452_v0  ;;  %4505 = vmatprep.subr.bf16.mxu0 %v7934_v40  ;;  %v7973_v0 = vrot.slane %v6890_v31, 1 }
 0x306   : > { %2879 = vmatmul.mubr.f32.gmra.mrb[66].mxu0 %v6734_v25  ;;  %v2709_v25 = vld [vmem:[%s7930_s3 + $0x3c8] sm:$0xff]  ;;  %4454 = vmatprep.subr.bf16.mxu1 %v7934_v40 }
 0x307   : > { %2883 = vmatprep.mubr.f32.mxu0 %v6798_v45  ;;  %v7161_v8 = vpack.c.bf16 %v2709_v25, %v2708_v12  ;;  %v7172_v14 = vsel %vm371_vm0, %v7973_v0, %v2383_v10  ;;  %v2711_v12 = vld [vmem:[%s7930_s3 + $0x3d8] sm:$0xff]  ;;  %v2677_v40 = vld [vmem:[%s7930_s3 + $0x2c8] sm:$0xff] }
 0x308   : > { %7974 = vst [vmem:[#allocation7_spill] sm:$0xff] %v7172_v14  ;;  %v7188_v0 = vpack.c.bf16 %v2711_v12, %v2710_v30  ;;  %v2712_v30 = vld [vmem:[%s7930_s3 + $0x3e0] sm:$0xff]  ;;  %v2713_v12 = vld [vmem:[%s7930_s3 + $0x3e8] sm:$0xff] }
 0x309   : > { %v7157_v52 = vld [vmem:[#allocation2 + $0x130] sm:$0x3]  ;;  %4456 = vmatpush1.bf16.msra.mxu1 %v4455_v53  ;;  %4507 = vmatpush1.bf16.msra.mxu0 %v7161_v8  ;;  %v4458_v53 = vpack.c.bf16 %v2677_v40, %v2676_v62  ;;  %v7220_v40 = vpack.c.bf16 %v2713_v12, %v2712_v30  ;;  %v2681_v12 = vld [vmem:[%s7930_s3 + $0x2e8] sm:$0xff] }
 0x30a   : > { %2884 = vmatmul.mubr.f32.gmra.mrb[68].mxu0 %v6763_v9  ;;  %v7167_v23 = vld [vmem:[#allocation2 + $0x120] sm:$0xff]  ;;  %v7174_v50 = vld [vmem:[#allocation2 + $0x128] sm:$0xff]  ;;  %v2525_v25 = vrot.slane %v7157_v52, 2  ;;  %v2385_v9 = vrot.slane %v7004_v56, 1  ;;  %4457 = vmatprep.subr.bf16.mxu1 %v7975_v35  ;;  %v2678_v62 = vld [vmem:[%s7930_s3 + $0x2d0] sm:$0xff] }
 0x30b   : > { %3129 = vmatmul.mubr.f32.gmra.mrb[40].mxu1 %v7167_v23  ;;  %2888 = vmatprep.mubr.f32.mxu0 %v6810_v49  ;;  %v2522_v24 = vrot.slane %v7167_v23, 2  ;;  %v2523_v10 = vrot.slane %v7174_v50, 2 }
 0x30c   : > { %3133 = vmatprep.mubr.f32.mxu1 %v7172_v14  ;;  %4508 = vmatprep.subr.bf16.mxu0 %v7975_v35 }
 0x30d   : > { %v7198_v47 = vsel %vm478_vm1, %v2522_v24, %v2523_v10  ;;  %v7209_v14 = vsel %vm478_vm1, %v2523_v10, %v2525_v25  ;;  %4459 = vmatpush1.bf16.msra.mxu1 %v4458_v53  ;;  %4510 = vmatpush1.bf16.msra.mxu0 %v7188_v0  ;;  %v2679_v25 = vld [vmem:[%s7930_s3 + $0x2d8] sm:$0xff] }
 0x30e   : > { %7976 = vst [vmem:[#allocation8_spill] sm:$0xff] %v7198_v47  ;;  %2889 = vmatmul.mubr.f32.gmra.mrb[70].mxu0 %v6772_v39  ;;  %7977 = vst [vmem:[#allocation9_spill] sm:$0xff] %v7209_v14  ;;  %v7978_v39 = vrot.slane %v7011_v1, 1  ;;  %4460 = vmatprep.subr.bf16.mxu1 %v7975_v35  ;;  %v2715_v10 = vld [vmem:[%s7930_s3 + $0x3f8] sm:$0xff]  ;;  %v4461_v53 = vpack.c.bf16 %v2679_v25, %v2678_v62 }
 0x30f   : > { %3134 = vmatmul.mubr.f32.gmra.mrb[42].mxu1 %v7174_v50  ;;  %2893 = vmatprep.mubr.f32.mxu0 %v6874_v13  ;;  %v2683_v62 = vld [vmem:[%s7930_s3 + $0x2f8] sm:$0xff] }
 0x310   : > { %v7216_v24 = vsel %vm371_vm0, %v2385_v9, %v7978_v39  ;;  %4511 = vmatprep.subr.bf16.mxu0 %v7975_v35  ;;  %v2714_v9 = vld [vmem:[%s7930_s3 + $0x3f0] sm:$0xff] }
 0x311   : > { %7979 = vst [vmem:[#allocation10_spill] sm:$0xff] %v7216_v24  ;;  %3138 = vmatprep.mubr.f32.mxu1 %v7216_v24  ;;  %4462 = vmatpush1.bf16.msra.mxu1 %v4461_v53  ;;  %v7239_v30 = vpack.c.bf16 %v2715_v10, %v2714_v9  ;;  %v7264_v10 = vld [vmem:[%s7929_s2] ss:$0 sm:$0xff] }
 0x312   : > { %2894 = vmatmul.mubr.f32.gmra.mrb[72].mxu0 %v6798_v45  ;;  %4463 = vmatprep.subr.bf16.mxu1 %v7975_v35  ;;  %v2680_v45 = vld [vmem:[%s7930_s3 + $0x2e0] sm:$0xff] }
 0x313   : > { %2898 = vmatprep.mubr.f32.mxu0 %v6890_v31  ;;  %4513 = vmatpush1.bf16.msra.mxu0 %v7220_v40  ;;  %7980 = vst [vmem:[#allocation11_spill] sm:$0xff] %v7239_v30  ;;  %v4464_v39 = vpack.c.bf16 %v2681_v12, %v2680_v45 }
 0x314   : > { %4514 = vmatprep.subr.bf16.mxu0 %v7975_v35 }
 0x315   : > { %4465 = vmatpush1.bf16.msra.mxu1 %v4464_v39 }
 0x316   : > { %2899 = vmatmul.mubr.f32.gmra.mrb[74].mxu0 %v6810_v49  ;;  %4466 = vmatprep.subr.bf16.mxu1 %v7975_v35  ;;  %v2682_v49 = vld [vmem:[%s7930_s3 + $0x2f0] sm:$0xff] }
 0x317   : > { %2903 = vmatprep.mubr.f32.mxu0 %v7004_v56  ;;  %4516 = vmatpush1.bf16.msra.mxu0 %v7239_v30  ;;  %v4467_v25 = vpack.c.bf16 %v2683_v62, %v2682_v49  ;;  %v2388_v49 = vrot.slane %v7001_v21, 1 }
 0x319   : > { %4468 = vmatpush1.bf16.msra.mxu1 %v4467_v25  ;;  %v7981_v25 = vrot.slane %v7011_v1, 1 }
 0x31a   : > { %2904 = vmatmul.mubr.f32.gmra.mrb[76].mxu0 %v6874_v13  ;;  %4549 = vmatprep.subr.bf16.mxu1 %v7975_v35 }
 0x31b   : > { %2908 = vmatprep.mubr.f32.mxu0 %v7011_v1 }
 0x31d   : > { %v4216_v9 = vpop.f32.mrb[26].mxu0 }
 0x31e   : > { %v2066_v13 = vadd.f32 %v7264_v10, %v4216_v9  ;;  %v2060_v53 = vpop.f32.mrb[27].mxu0  ;;  %2909 = vmatmul.mubr.f32.gmra.mrb[78].mxu0 %v6890_v31  ;;  %v7280_v9 = vsel %vm371_vm0, %v7981_v25, %v2388_v49 }
 0x31f   : > { %v2061_v45 = vadd.f32 %v7264_v10, %v2060_v53  ;;  %2913 = vmatprep.mubr.f32.mxu0 %v7167_v23  ;;  %7982 = vst [vmem:[#allocation12_spill] sm:$0xff] %v7280_v9 }
 0x320   : > { %v2136_v12 = vmax.f32 %v2066_v13, 0.0 }
 0x321   : > { %v2135_v39 = vmax.f32 %v2061_v45, 0.0  ;;  %v2391_v45 = vrot.slane %v7174_v50, 1 }
 0x322   : > { %2172 = vst [vmem:[#allocation2 + $0x141] sm:$0xff] %v2136_v12  ;;  %2914 = vmatmul.mubr.f32.gmra.mrb[80].mxu0 %v7004_v56  ;;  %v2390_v56 = vrot.slane %v7167_v23, 1 }
 0x323   : > { %2171 = vst [vmem:[#allocation2 + $0x139] sm:$0xff] %v2135_v39  ;;  %2918 = vmatprep.mubr.f32.mxu0 %v7174_v50 }
 0x324   : > { %v7299_v49 = vsel %vm371_vm0, %v2390_v56, %v2391_v45  ;;  %v2716_v56 = vld [vmem:[%s7930_s3 + $0x400] sm:$0xff] }
 0x325   : > { %7985 = vst [vmem:[#allocation15_spill] sm:$0xff] %v7299_v49 }
 0x326   : > { %2919 = vmatmul.mubr.f32.gmra.mrb[82].mxu0 %v7011_v1 }
 0x329   : > { %v7275_v62 = vld [vmem:[#allocation2 + $0x148] sm:$0x3] }
 0x32a   : > { %v2267_v31 = vld [vmem:[#allocation2 + $0x138] sm:$0xff]  ;;  %v7282_v13 = vld [vmem:[#allocation2 + $0x140] sm:$0xff]  ;;  %v2530_v53 = vrot.slane %v7275_v62, 2 }
 0x32b   : > { %2923 = vmatprep.mubr.f32.mxu0 %v2267_v31  ;;  %3139 = vmatmul.mubr.f32.gmra.mrb[44].mxu1 %v2267_v31  ;;  %v2527_v12 = vrot.slane %v2267_v31, 2  ;;  %v2528_v21 = vrot.slane %v7282_v13, 2 }
 0x32c   : > { %2924 = vmatmul.mubr.f32.gmra.mrb[84].mxu0 %v7167_v23  ;;  %3143 = vmatprep.mubr.f32.mxu1 %v7280_v9 }
 0x32d   : > { %2928 = vmatprep.mubr.f32.mxu0 %v7282_v13  ;;  %v7292_v1 = vsel %vm478_vm1, %v2527_v12, %v2528_v21  ;;  %v7295_v39 = vsel %vm478_vm1, %v2528_v21, %v2530_v53  ;;  %v2393_v53 = vrot.slane %v7157_v52, 1  ;;  %v2395_v52 = vrot.slane %v2267_v31, 1 }
 0x32e   : > { %7983 = vst [vmem:[#allocation13_spill] sm:$0xff] %v7292_v1  ;;  %7984 = vst [vmem:[#allocation14_spill] sm:$0xff] %v7295_v39 }
 0x32f   : > { %3144 = vmatmul.mubr.f32.gmra.mrb[46].mxu1 %v7282_v13 }
 0x330   : > { %2929 = vmatmul.mubr.f32.gmra.mrb[86].mxu0 %v7174_v50  ;;  %3148 = vmatprep.mubr.f32.mxu1 %v7299_v49  ;;  %v2717_v50 = vld [vmem:[%s7930_s3 + $0x408] sm:$0xff] }
 0x331   : > { %v7312_v21 = vpack.c.bf16 %v2717_v50, %v2716_v56 }
 0x333   : > { %4518 = vmatprep.subr.bf16.mxu0 %v7312_v21 }
 0x33c   : > { %v4219_v23 = vpop.f32.mrb[28].mxu0 }
 0x33d   : > { %v2076_v25 = vadd.f32 %v7264_v10, %v4219_v23  ;;  %v2070_v14 = vpop.f32.mrb[29].mxu0 }
 0x33e   : > { %v2071_v47 = vadd.f32 %v7264_v10, %v2070_v14  ;;  %v7315_v14 = vsel %vm371_vm0, %v2391_v45, %v2393_v53 }
 0x33f   : > { %v2138_v12 = vmax.f32 %v2076_v25, 0.0  ;;  %7986 = vst [vmem:[#allocation16_spill] sm:$0xff] %v7315_v14  ;;  %v2396_v25 = vrot.slane %v7282_v13, 1 }
 0x340   : > { %v2137_v1 = vmax.f32 %v2071_v47, 0.0 }
 0x341   : > { %2174 = vst [vmem:[#allocation2 + $0x159] sm:$0xff] %v2138_v12  ;;  %v7327_v53 = vsel %vm371_vm0, %v2395_v52, %v2396_v25 }
 0x342   : > { %2173 = vst [vmem:[#allocation2 + $0x151] sm:$0xff] %v2137_v1  ;;  %7989 = vst [vmem:[#allocation19_spill] sm:$0xff] %v7327_v53 }
 0x348   : > { %v2272_v23 = vld [vmem:[#allocation2 + $0x160] sm:$0x3] }
 0x349   : > { %v2270_v39 = vld [vmem:[#allocation2 + $0x150] sm:$0xff]  ;;  %v2271_v47 = vld [vmem:[#allocation2 + $0x158] sm:$0xff]  ;;  %v2535_v1 = vrot.slane %v2272_v23, 2 }
 0x34a   : > { %2933 = vmatprep.mubr.f32.mxu0 %v2270_v39  ;;  %3149 = vmatmul.mubr.f32.gmra.mrb[48].mxu1 %v2270_v39  ;;  %v2532_v12 = vrot.slane %v2270_v39, 2  ;;  %v2533_v49 = vrot.slane %v2271_v47, 2 }
 0x34b   : > { %2934 = vmatmul.mubr.f32.gmra.mrb[88].mxu0 %v2267_v31  ;;  %3153 = vmatprep.mubr.f32.mxu1 %v7315_v14 }
 0x34c   : > { %2938 = vmatprep.mubr.f32.mxu0 %v2271_v47  ;;  %v7321_v56 = vsel %vm478_vm1, %v2532_v12, %v2533_v49  ;;  %v7324_v45 = vsel %vm478_vm1, %v2533_v49, %v2535_v1  ;;  %v2398_v49 = vrot.slane %v7275_v62, 1 }
 0x34d   : > { %7987 = vst [vmem:[#allocation17_spill] sm:$0xff] %v7321_v56  ;;  %7988 = vst [vmem:[#allocation18_spill] sm:$0xff] %v7324_v45 }
 0x34e   : > { %3154 = vmatmul.mubr.f32.gmra.mrb[50].mxu1 %v2271_v47  ;;  %v7337_v45 = vsel %vm371_vm0, %v2396_v25, %v2398_v49 }
 0x34f   : > { %2939 = vmatmul.mubr.f32.gmra.mrb[90].mxu0 %v7282_v13  ;;  %3158 = vmatprep.mubr.f32.mxu1 %v7327_v53  ;;  %7990 = vst [vmem:[#allocation20_spill] sm:$0xff] %v7337_v45  ;;  %v2401_v53 = vrot.slane %v2271_v47, 1 }
 0x35c   : > { %v4222_v50 = vpop.f32.mrb[30].mxu0 }
 0x35d   : > { %v2086_v31 = vadd.f32 %v7264_v10, %v4222_v50  ;;  %v2080_v9 = vpop.f32.mrb[31].mxu0  ;;  %v2400_v50 = vrot.slane %v2270_v39, 1 }
 0x35e   : > { %v2081_v14 = vadd.f32 %v7264_v10, %v2080_v9 }
 0x35f   : > { %v2140_v24 = vmax.f32 %v2086_v31, 0.0 }
 0x360   : > { %v2139_v12 = vmax.f32 %v2081_v14, 0.0  ;;  %v7348_v14 = vsel %vm371_vm0, %v2400_v50, %v2401_v53 }
 0x361   : > { %2176 = vst [vmem:[#allocation2 + $0x171] sm:$0xff] %v2140_v24  ;;  %7993 = vst [vmem:[#allocation23_spill] sm:$0xff] %v7348_v14 }
 0x362   : > { %2175 = vst [vmem:[#allocation2 + $0x169] sm:$0xff] %v2139_v12 }
 0x368   : > { %v7334_v1 = vld [vmem:[#allocation2 + $0x178] sm:$0x3] }
 0x369   : > { %v2273_v52 = vld [vmem:[#allocation2 + $0x168] sm:$0xff]  ;;  %v2274_v13 = vld [vmem:[#allocation2 + $0x170] sm:$0xff]  ;;  %v2540_v56 = vrot.slane %v7334_v1, 2 }
 0x36a   : > { %2943 = vmatprep.mubr.f32.mxu0 %v2273_v52  ;;  %3159 = vmatmul.mubr.f32.gmra.mrb[52].mxu1 %v2273_v52  ;;  %v2537_v9 = vrot.slane %v2273_v52, 2  ;;  %v2538_v31 = vrot.slane %v2274_v13, 2 }
 0x36b   : > { %2944 = vmatmul.mubr.f32.gmra.mrb[92].mxu0 %v2270_v39  ;;  %3163 = vmatprep.mubr.f32.mxu1 %v7337_v45 }
 0x36c   : > { %2948 = vmatprep.mubr.f32.mxu0 %v2274_v13  ;;  %v7342_v24 = vsel %vm478_vm1, %v2537_v9, %v2538_v31  ;;  %v7345_v62 = vsel %vm478_vm1, %v2538_v31, %v2540_v56  ;;  %v2403_v9 = vrot.slane %v2272_v23, 1  ;;  %v2468_v23 = vrot.slane %v6878_v59, 2 }
 0x36d   : > { %7991 = vst [vmem:[#allocation21_spill] sm:$0xff] %v7342_v24  ;;  %7992 = vst [vmem:[#allocation22_spill] sm:$0xff] %v7345_v62  ;;  %v2406_v62 = vrot.slane %v2274_v13, 1  ;;  %v2408_v59 = vrot.slane %v7334_v1, 1 }
 0x36e   : > { %3164 = vmatmul.mubr.f32.gmra.mrb[54].mxu1 %v2274_v13  ;;  %v7354_v31 = vsel %vm371_vm0, %v2401_v53, %v2403_v9 }
 0x36f   : > { %2949 = vmatmul.mubr.f32.gmra.mrb[94].mxu0 %v2271_v47  ;;  %3168 = vmatprep.mubr.f32.mxu1 %v7348_v14  ;;  %v2405_v47 = vrot.slane %v2273_v52, 1  ;;  %v7390_v1 = vsel %vm371_vm0, %v2406_v62, %v2408_v59 }
 0x380   : > { %v4225_v25 = vpop.f32.mrb[32].mxu0 }
 0x381   : > { %v2096_v12 = vadd.f32 %v7264_v10, %v4225_v25  ;;  %v2090_v39 = vpop.f32.mrb[33].mxu0 }
 0x382   : > { %v2091_v49 = vadd.f32 %v7264_v10, %v2090_v39 }
 0x383   : > { %v2142_v45 = vmax.f32 %v2096_v12, 0.0 }
 0x384   : > { %v2141_v30 = vmax.f32 %v2091_v49, 0.0  ;;  %v4814_v49 = vld [vmem:[#allocation2 + $0x28] sm:$0x3] }
 0x385   : > { %2178 = vst [vmem:[#allocation2 + $0x189] sm:$0xff] %v2142_v45  ;;  %v2462_v45 = vrot.slane %v6871_v3, 2  ;;  %v2470_v9 = vrot.slane %v4814_v49, 2  ;;  %v2472_v49 = vrot.slane %v6893_v11, 2 }
 0x386   : > { %2177 = vst [vmem:[#allocation2 + $0x181] sm:$0xff] %v2141_v30  ;;  %v2467_v30 = vrot.slane %v6868_v17, 2  ;;  %v7377_v17 = vsel %vm371_vm0, %v2405_v47, %v2406_v62 }
 0x38d   : > { %v2276_v56 = vld [vmem:[#allocation2 + $0x180] sm:$0xff]  ;;  %v7356_v50 = vld [vmem:[#allocation2 + $0x188] sm:$0xff] }
 0x38e   : > { %2953 = vmatprep.mubr.f32.mxu0 %v2276_v56  ;;  %3169 = vmatmul.mubr.f32.gmra.mrb[56].mxu1 %v2276_v56  ;;  %v2574_v24 = vrot.slane %v2276_v56, 2  ;;  %v7966_v25 = vrot.slane %v7356_v50, 2  ;;  %v2445_v14 = vrot.slane %v2276_v56, 1  ;;  %v7967_v12 = vrot.slane %v7356_v50, 1  ;;  %v4815_v56 = vld [vmem:[#allocation2 + $0x10] sm:$0x3] }
 0x38f   : > { %2954 = vmatmul.mubr.f32.gmra.mrb[96].mxu0 %v2273_v52  ;;  %3173 = vmatprep.mubr.f32.mxu1 %v7354_v31  ;;  %v2718_v52 = vld [vmem:[%s7930_s3 + $0x410] sm:$0xff]  ;;  %v2465_v47 = vrot.slane %v4815_v56, 2 }
 0x390   : > { %2958 = vmatprep.mubr.f32.mxu0 %v7356_v50  ;;  %v7368_v53 = vsel %vm478_vm1, %v2574_v24, %v7966_v25  ;;  %v7373_v39 = vsel %vm371_vm0, %v2445_v14, %v7967_v12  ;;  %v2719_v24 = vld [vmem:[%s7930_s3 + $0x418] sm:$0xff]  ;;  %v2469_v14 = vsel %vm478_vm1, %v2467_v30, %v2468_v23  ;;  %v2720_v12 = vld [vmem:[%s7930_s3 + $0x420] sm:$0xff]  ;;  %v2471_v30 = vsel %vm478_vm1, %v2468_v23, %v2470_v9 }
 0x391   : > { %7994 = vst [vmem:[#allocation24_spill] sm:$0xff] %v7368_v53  ;;  %v4521_v25 = vpack.c.bf16 %v2719_v24, %v2718_v52  ;;  %v2473_v52 = vrot.slane %v6929_v41, 2  ;;  %v2466_v62 = vsel %vm478_vm1, %v2462_v45, %v2465_v47  ;;  %v4816_v41 = vld [vmem:[#allocation2 + $0x40] sm:$0x3] }
 0x392   : > { %3174 = vmatmul.mubr.f32.gmra.mrb[58].mxu1 %v7356_v50  ;;  %v2475_v23 = vrot.slane %v4816_v41, 2  ;;  %v2482_v41 = vrot.slane %v6957_v48, 2 }
 0x393   : > { %2959 = vmatmul.mubr.f32.gmra.mrb[98].mxu0 %v2274_v13  ;;  %3178 = vmatprep.mubr.f32.mxu1 %v7377_v17  ;;  %v2721_v13 = vld [vmem:[%s7930_s3 + $0x428] sm:$0xff]  ;;  %v7407_v11 = vsel %vm478_vm1, %v2472_v49, %v2473_v52  ;;  %v2478_v49 = vrot.slane %v6945_v54, 2 }
 0x394   : > { %3478 = vmatprep.mubr.f32.mxu0 %v2469_v14  ;;  %v4525_v24 = vpack.c.bf16 %v2721_v13, %v2720_v12  ;;  %v2723_v12 = vld [vmem:[%s7930_s3 + $0x438] sm:$0xff]  ;;  %v7422_v47 = vsel %vm478_vm1, %v2473_v52, %v2475_v23  ;;  %v2477_v13 = vrot.slane %v6938_v51, 2  ;;  %v2483_v23 = vrot.slane %v6974_v55, 2 }
 0x396   : > { %3179 = vmatmul.mubr.f32.gmra.mrb[60].mxu1 %v6871_v3  ;;  %v7440_v54 = vsel %vm478_vm1, %v2477_v13, %v2478_v49 }
 0x397   : > { %3479 = vmatmul.mubr.f32.vlgmr.msra.gmra.mrb[100].mxu0 %v2462_v45  ;;  %3183 = vmatprep.mubr.f32.mxu1 %v7390_v1 }
 0x398   : > { %3483 = vmatprep.mubr.f32.mxu0 %v2471_v30  ;;  %4520 = vmatpush3.bf16.msra.mxu0 %v7312_v21  ;;  %v2722_v21 = vld [vmem:[%s7930_s3 + $0x430] sm:$0xff] }
 0x399   : > { %v4228_v59 = vpop.f32.mrb[34].mxu0  ;;  %4522 = vmatprep.subr.bf16.mxu0 %v4521_v25  ;;  %v4529_v9 = vpack.c.bf16 %v2723_v12, %v2722_v21  ;;  %v7476_v12 = vsel %vm478_vm1, %v2482_v41, %v2483_v23 }
 0x39a   : > { %v2106_v56 = vadd.f32 %v7264_v10, %v4228_v59  ;;  %v2100_v53 = vpop.f32.mrb[35].mxu0  ;;  %3184 = vmatmul.mubr.f32.gmra.mrb[62].mxu1 %v6871_v3  ;;  %v2727_v59 = vld [vmem:[%s7930_s3 + $0x458] sm:$0xff] }
 0x39b   : > { %3484 = vmatmul.mubr.f32.gmra.mrb[102].mxu0 %v2466_v62  ;;  %3253 = vmatprep.mubr.f32.mxu1 %v6254_v5  ;;  %v2726_v62 = vld [vmem:[%s7930_s3 + $0x450] sm:$0xff] }
 0x39c   : > { %v2144_v10 = vmax.f32 %v2106_v56, 0.0  ;;  %3488 = vmatprep.mubr.f32.mxu0 %v7407_v11  ;;  %4524 = vmatpush3.bf16.msra.mxu0 %v4521_v25  ;;  %v2724_v25 = vld [vmem:[%s7930_s3 + $0x440] sm:$0xff] }
 0x39d   : > { %v7417_v45 = vpop.f32.mrb[36].mxu0  ;;  %4526 = vmatprep.subr.bf16.mxu0 %v4525_v24 }
 0x39e   : > { %2180 = vst [vmem:[#allocation2 + $0x1a1] sm:$0xff] %v2144_v10  ;;  %v2807_v53 = vpop.f32.mrb[37].mxu0  ;;  %3254 = vmatmul.mubr.f32.vlgmr.msra.gmra.mrb[0].mxu1 %v6153_v44  ;;  %v2725_v44 = vld [vmem:[%s7930_s3 + $0x448] sm:$0xff]  ;;  %v4818_v10 = vld [vmem:[#allocation2 + $0x70] sm:$0x3] }
 0x39f   : > { %2227 = vst [vmem:[#allocation2 + $0x1a8] sm:$0x3] %v6871_v3  ;;  %3489 = vmatmul.mubr.f32.gmra.mrb[104].mxu0 %v2469_v14  ;;  %4565 = vmatpush1.bf16.msra.mxu1 %v6920_v43  ;;  %v4533_v43 = vpack.c.bf16 %v2725_v44, %v2724_v25  ;;  %v4817_v14 = vld [vmem:[#allocation2 + $0x58] sm:$0x3]  ;;  %v2485_v53 = vrot.slane %v4818_v10, 2 }
 0x3a0   : > { %3493 = vmatprep.mubr.f32.mxu0 %v7422_v47  ;;  %3258 = vmatprep.mubr.f32.mxu1 %v6348_v42  ;;  %v2480_v52 = vrot.slane %v4817_v14, 2  ;;  %v4819_v44 = vld [vmem:[#allocation2 + $0x78] sm:$0xff] }
 0x3a1   : > { %v7435_v3 = vpop.f32.mrb[38].mxu0  ;;  %4550 = vmatprep.subr.bf16.mxu1 %v7975_v35  ;;  %4528 = vmatpush3.bf16.msra.mxu0 %v4525_v24  ;;  %v4537_v24 = vpack.c.bf16 %v2727_v59, %v2726_v62  ;;  %v7493_v25 = vsel %vm478_vm1, %v2483_v23, %v2485_v53  ;;  %v4821_v62 = vld [vmem:[#allocation2 + $0x88] sm:$0x3]  ;;  %v4823_v23 = vld [vmem:[#allocation2 + $0x98] sm:$0xff] }
 0x3a2   : > { %v2812_v51 = vpop.f32.mrb[39].mxu0  ;;  %3259 = vmatmul.mubr.f32.gmra.mrb[2].mxu1 %v6235_v20  ;;  %4530 = vmatprep.subr.bf16.mxu0 %v4529_v9  ;;  %v7457_v56 = vsel %vm478_vm1, %v2478_v49, %v2480_v52  ;;  %v2490_v59 = vrot.slane %v4821_v62, 2  ;;  %v4825_v53 = vld [vmem:[#allocation2 + $0xa8] sm:$0xff] }
 0x3a3   : > { %3494 = vmatmul.mubr.f32.gmra.mrb[106].mxu0 %v2471_v30  ;;  %3263 = vmatprep.mubr.f32.mxu1 %v6376_v57  ;;  %v2487_v51 = vrot.slane %v4819_v44, 2  ;;  %v4827_v44 = vld [vmem:[#allocation2 + $0xb8] sm:$0x3]  ;;  %v4829_v62 = vld [vmem:[#allocation2 + $0xc8] sm:$0xff] }
 0x3a4   : > { %3498 = vmatprep.mubr.f32.mxu0 %v7440_v54  ;;  %4566 = vmatpush1.bf16.msra.mxu1 %v6933_v34  ;;  %v2728_v34 = vld [vmem:[%s7930_s3 + $0x460] sm:$0xff] }
 0x3a5   : > { %v7451_v20 = vpop.f32.mrb[40].mxu0  ;;  %4551 = vmatprep.subr.bf16.mxu1 %v7975_v35  ;;  %4532 = vmatpush3.bf16.msra.mxu0 %v4529_v9  ;;  %v2731_v9 = vld [vmem:[%s7930_s3 + $0x478] sm:$0xff] }
 0x3a6   : > { %v2817_v30 = vpop.f32.mrb[41].mxu0  ;;  %3264 = vmatmul.mubr.f32.gmra.mrb[4].mxu1 %v6254_v5  ;;  %4534 = vmatprep.subr.bf16.mxu0 %v4533_v43  ;;  %v2729_v5 = vld [vmem:[%s7930_s3 + $0x468] sm:$0xff] }
 0x3a7   : > { %3499 = vmatmul.mubr.f32.gmra.mrb[108].mxu0 %v7407_v11  ;;  %3268 = vmatprep.mubr.f32.mxu1 %v6520_v33  ;;  %v4541_v55 = vpack.c.bf16 %v2729_v5, %v2728_v34  ;;  %v2493_v34 = vrot.slane %v4823_v23, 2 }
 0x3a8   : > { %3503 = vmatprep.mubr.f32.mxu0 %v7457_v56  ;;  %4567 = vmatpush1.bf16.msra.mxu1 %v6960_v22  ;;  %v2730_v22 = vld [vmem:[%s7930_s3 + $0x470] sm:$0xff] }
 0x3a9   : > { %v7470_v21 = vpop.f32.mrb[42].mxu0  ;;  %4552 = vmatprep.subr.bf16.mxu1 %v7975_v35  ;;  %4536 = vmatpush3.bf16.msra.mxu0 %v4533_v43  ;;  %v4545_v49 = vpack.c.bf16 %v2731_v9, %v2730_v22  ;;  %v4820_v43 = vld [vmem:[#allocation2 + $0x80] sm:$0xff]  ;;  %v2497_v22 = vrot.slane %v4825_v53, 2  ;;  %v4826_v9 = vld [vmem:[#allocation2 + $0xb0] sm:$0xff]  ;;  %v4833_v53 = vld [vmem:[#allocation2 + $0xe8] sm:$0x3] }
 0x3aa   : > { %v2822_v48 = vpop.f32.mrb[43].mxu0  ;;  %3269 = vmatmul.mubr.f32.gmra.mrb[6].mxu1 %v6348_v42  ;;  %4538 = vmatprep.subr.bf16.mxu0 %v4537_v24  ;;  %v2488_v14 = vrot.slane %v4820_v43, 2 }
 0x3ab   : > { %3504 = vmatmul.mubr.f32.gmra.mrb[110].mxu0 %v7422_v47  ;;  %3273 = vmatprep.mubr.f32.mxu1 %v6549_v19  ;;  %v4824_v48 = vld [vmem:[#allocation2 + $0xa0] sm:$0x3] }
 0x3ac   : > { %3508 = vmatprep.mubr.f32.mxu0 %v7476_v12  ;;  %4568 = vmatpush1.bf16.msra.mxu1 %v6986_v18  ;;  %v7504_v52 = vsel %vm478_vm1, %v2487_v51, %v2488_v14  ;;  %v7515_v30 = vsel %vm478_vm1, %v2488_v14, %v2490_v59  ;;  %v2500_v51 = vrot.slane %v4827_v44, 2  ;;  %v4828_v14 = vld [vmem:[#allocation2 + $0xc0] sm:$0xff]  ;;  %v2503_v59 = vrot.slane %v4829_v62, 2  ;;  %v4835_v44 = vld [vmem:[#allocation2 + $0xf8] sm:$0xff] }
 0x3ad   : > { %v7487_v42 = vpop.f32.mrb[44].mxu0  ;;  %4553 = vmatprep.subr.bf16.mxu1 %v7975_v35  ;;  %4540 = vmatpush3.bf16.msra.mxu0 %v4537_v24  ;;  %v4822_v24 = vld [vmem:[#allocation2 + $0x90] sm:$0xff]  ;;  %v7996_v62 = vld [vmem:[#allocation5_spill] sm:$0xff] }
 0x3ae   : > { %v2827_v13 = vpop.f32.mrb[45].mxu0  ;;  %3274 = vmatmul.mubr.f32.gmra.mrb[8].mxu1 %v6376_v57  ;;  %4542 = vmatprep.subr.bf16.mxu0 %v4541_v55  ;;  %v2492_v41 = vrot.slane %v4822_v24, 2  ;;  %v4830_v24 = vld [vmem:[#allocation2 + $0xd0] sm:$0x3] }
 0x3af   : > { %3509 = vmatmul.mubr.f32.gmra.mrb[112].mxu0 %v7440_v54  ;;  %3278 = vmatprep.mubr.f32.mxu1 %v6683_v16  ;;  %v2498_v13 = vrot.slane %v4826_v9, 2 }
 0x3b0   : > { %3513 = vmatprep.mubr.f32.mxu0 %v7493_v25  ;;  %4569 = vmatpush1.bf16.msra.mxu1 %v6999_v37  ;;  %v7526_v5 = vsel %vm478_vm1, %v2492_v41, %v2493_v34  ;;  %v2505_v41 = vrot.slane %v4830_v24, 2 }
 0x3b1   : > { %v7498_v18 = vpop.f32.mrb[46].mxu0  ;;  %4554 = vmatprep.subr.bf16.mxu1 %v7975_v35  ;;  %4544 = vmatpush3.bf16.msra.mxu0 %v4541_v55  ;;  %v2495_v55 = vrot.slane %v4824_v48, 2  ;;  %v4832_v48 = vld [vmem:[#allocation2 + $0xe0] sm:$0xff] }
 0x3b2   : > { %v2832_v57 = vpop.f32.mrb[47].mxu0  ;;  %3279 = vmatmul.mubr.f32.gmra.mrb[10].mxu1 %v6520_v33  ;;  %4546 = vmatprep.subr.bf16.mxu0 %v4545_v49 }
 0x3b3   : > { %3514 = vmatmul.mubr.f32.gmra.mrb[114].mxu0 %v7457_v56  ;;  %3283 = vmatprep.mubr.f32.mxu1 %v6698_v38  ;;  %v2502_v57 = vrot.slane %v4828_v14, 2  ;;  %v7995_v14 = vld [vmem:[#allocation6_spill] sm:$0xff] }
 0x3b4   : > { %3518 = vmatprep.mubr.f32.mxu0 %v7504_v52  ;;  %4570 = vmatpush1.bf16.msra.mxu1 %v7029_v32 }
 0x3b5   : > { %v7509_v37 = vpop.f32.mrb[48].mxu0  ;;  %4555 = vmatprep.subr.bf16.mxu1 %v7975_v35  ;;  %4548 = vmatpush3.bf16.msra.mxu0 %v4545_v49  ;;  %v7548_v49 = vsel %vm478_vm1, %v2497_v22, %v2498_v13  ;;  %v2510_v22 = vrot.slane %v4833_v53, 2 }
 0x3b6   : > { %v2837_v33 = vpop.f32.mrb[49].mxu0  ;;  %3284 = vmatmul.mubr.f32.gmra.mrb[12].mxu1 %v6549_v19 }
 0x3b7   : > { %3519 = vmatmul.mubr.f32.gmra.mrb[116].mxu0 %v7476_v12  ;;  %3288 = vmatprep.mubr.f32.mxu1 %v6729_v63  ;;  %v7570_v33 = vsel %vm478_vm1, %v2502_v57, %v2503_v59  ;;  %v2515_v57 = vrot.slane %v7995_v14, 2 }
 0x3b8   : > { %3523 = vmatprep.mubr.f32.mxu0 %v7515_v30  ;;  %4571 = vmatpush1.bf16.msra.mxu1 %v7060_v29 }
 0x3b9   : > { %v7520_v32 = vpop.f32.mrb[50].mxu0  ;;  %4556 = vmatprep.subr.bf16.mxu1 %v7975_v35 }
 0x3ba   : > { %v2842_v19 = vpop.f32.mrb[51].mxu0  ;;  %3289 = vmatmul.mubr.f32.gmra.mrb[14].mxu1 %v6683_v16  ;;  %v7537_v16 = vsel %vm478_vm1, %v2493_v34, %v2495_v55  ;;  %v4831_v34 = vld [vmem:[#allocation2 + $0xd8] sm:$0xff]  ;;  %v2508_v55 = vrot.slane %v4832_v48, 2 }
 0x3bb   : > { %3524 = vmatmul.mubr.f32.gmra.mrb[118].mxu0 %v7493_v25  ;;  %3293 = vmatprep.mubr.f32.mxu1 %v6738_v46  ;;  %v2507_v19 = vrot.slane %v4831_v34, 2 }
 0x3bc   : > { %3528 = vmatprep.mubr.f32.mxu0 %v7526_v5  ;;  %4572 = vmatpush1.bf16.msra.mxu1 %v7079_v27 }
 0x3bd   : > { %v7531_v29 = vpop.f32.mrb[52].mxu0  ;;  %4557 = vmatprep.subr.bf16.mxu1 %v7975_v35 }
 0x3be   : > { %v2847_v10 = vpop.f32.mrb[53].mxu0  ;;  %3294 = vmatmul.mubr.f32.gmra.mrb[16].mxu1 %v6698_v38 }
 0x3bf   : > { %3529 = vmatmul.mubr.f32.gmra.mrb[120].mxu0 %v7504_v52  ;;  %3298 = vmatprep.mubr.f32.mxu1 %v6767_v2  ;;  %v7592_v10 = vsel %vm478_vm1, %v2507_v19, %v2508_v55  ;;  %v8000_v19 = vld [vmem:[#allocation12_spill] sm:$0xff] }
 0x3c0   : > { %3533 = vmatprep.mubr.f32.mxu0 %v7537_v16  ;;  %4573 = vmatpush1.bf16.msra.mxu1 %v7092_v28 }
 0x3c1   : > { %v7542_v27 = vpop.f32.mrb[54].mxu0  ;;  %4558 = vmatprep.subr.bf16.mxu1 %v7975_v35 }
 0x3c2   : > { %v2852_v38 = vpop.f32.mrb[55].mxu0  ;;  %3299 = vmatmul.mubr.f32.gmra.mrb[18].mxu1 %v6729_v63  ;;  %v7559_v63 = vsel %vm478_vm1, %v2498_v13, %v2500_v51  ;;  %v4834_v13 = vld [vmem:[#allocation2 + $0xf0] sm:$0xff]  ;;  %v2513_v51 = vrot.slane %v4835_v44, 2  ;;  %v8008_v44 = vld [vmem:[#allocation8_spill] sm:$0xff] }
 0x3c3   : > { %3534 = vmatmul.mubr.f32.gmra.mrb[122].mxu0 %v7515_v30  ;;  %3303 = vmatprep.mubr.f32.mxu1 %v6776_v60  ;;  %v2512_v38 = vrot.slane %v4834_v13, 2  ;;  %v8007_v13 = vld [vmem:[#allocation4_spill] sm:$0xff] }
 0x3c4   : > { %3538 = vmatprep.mubr.f32.mxu0 %v7548_v49  ;;  %4574 = vmatpush1.bf16.msra.mxu1 %v7104_v6 }
 0x3c5   : > { %v7553_v28 = vpop.f32.mrb[56].mxu0  ;;  %4559 = vmatprep.subr.bf16.mxu1 %v7975_v35 }
 0x3c6   : > { %v2857_v43 = vpop.f32.mrb[57].mxu0  ;;  %3304 = vmatmul.mubr.f32.gmra.mrb[20].mxu1 %v6738_v46 }
 0x3c7   : > { %3539 = vmatmul.mubr.f32.gmra.mrb[124].mxu0 %v7526_v5  ;;  %3308 = vmatprep.mubr.f32.mxu1 %v6803_v15  ;;  %v7614_v43 = vsel %vm478_vm1, %v2512_v38, %v2513_v51 }
 0x3c8   : > { %3543 = vmatprep.mubr.f32.mxu0 %v7559_v63  ;;  %4575 = vmatpush1.bf16.msra.mxu1 %v7118_v61 }
 0x3c9   : > { %v7564_v6 = vpop.f32.mrb[58].mxu0  ;;  %4560 = vmatprep.subr.bf16.mxu1 %v7975_v35 }
 0x3ca   : > { %v2862_v46 = vpop.f32.mrb[59].mxu0  ;;  %3309 = vmatmul.mubr.f32.gmra.mrb[22].mxu1 %v6767_v2  ;;  %v7581_v2 = vsel %vm478_vm1, %v2503_v59, %v2505_v41  ;;  %v7997_v59 = vld [vmem:[#allocation11_spill] sm:$0xff] }
 0x3cb   : > { %3544 = vmatmul.mubr.f32.gmra.mrb[126].mxu0 %v7537_v16  ;;  %3313 = vmatprep.mubr.f32.mxu1 %v6816_v26 }
 0x3cc   : > { %3548 = vmatprep.mubr.f32.mxu0 %v7570_v33  ;;  %4576 = vmatpush1.bf16.msra.mxu1 %v7132_v7 }
 0x3cd   : > { %v7575_v61 = vpop.f32.mrb[60].mxu0  ;;  %4561 = vmatprep.subr.bf16.mxu1 %v7975_v35 }
 0x3ce   : > { %v2867_v23 = vpop.f32.mrb[61].mxu0  ;;  %3314 = vmatmul.mubr.f32.gmra.mrb[24].mxu1 %v6776_v60 }
 0x3cf   : > { %3549 = vmatmul.mubr.f32.gmra.mrb[128].mxu0 %v7548_v49  ;;  %3318 = vmatprep.mubr.f32.mxu1 %v6884_v4  ;;  %v7999_v23 = vld [vmem:[#allocation10_spill] sm:$0xff] }
 0x3d0   : > { %3553 = vmatprep.mubr.f32.mxu0 %v7581_v2  ;;  %4577 = vmatpush1.bf16.msra.mxu1 %v7161_v8 }
 0x3d1   : > { %v7586_v7 = vpop.f32.mrb[62].mxu0  ;;  %4562 = vmatprep.subr.bf16.mxu1 %v7975_v35 }
 0x3d2   : > { %v2872_v60 = vpop.f32.mrb[63].mxu0  ;;  %3319 = vmatmul.mubr.f32.gmra.mrb[26].mxu1 %v6803_v15  ;;  %v7603_v15 = vsel %vm478_vm1, %v2508_v55, %v2510_v22  ;;  %v8001_v55 = vld [vmem:[#allocation15_spill] sm:$0xff] }
 0x3d3   : > { %3554 = vmatmul.mubr.f32.gmra.mrb[130].mxu0 %v7559_v63  ;;  %3323 = vmatprep.mubr.f32.mxu1 %v6899_v58 }
 0x3d4   : > { %3558 = vmatprep.mubr.f32.mxu0 %v7592_v10  ;;  %4578 = vmatpush1.bf16.msra.mxu1 %v7188_v0 }
 0x3d5   : > { %v7597_v8 = vpop.f32.mrb[64].mxu0  ;;  %4563 = vmatprep.subr.bf16.mxu1 %v7975_v35 }
 0x3d6   : > { %v2877_v9 = vpop.f32.mrb[65].mxu0  ;;  %3324 = vmatmul.mubr.f32.gmra.mrb[28].mxu1 %v6816_v26 }
 0x3d7   : > { %3559 = vmatmul.mubr.f32.gmra.mrb[132].mxu0 %v7570_v33  ;;  %3328 = vmatprep.mubr.f32.mxu1 %v7009_v36 }
 0x3d8   : > { %3563 = vmatprep.mubr.f32.mxu0 %v7603_v15  ;;  %4579 = vmatpush1.bf16.msra.mxu1 %v7220_v40 }
 0x3d9   : > { %v7608_v0 = vpop.f32.mrb[66].mxu0  ;;  %4564 = vmatprep.subr.bf16.mxu1 %v7975_v35  ;;  %v7998_v35 = vld [vmem:[#allocation7_spill] sm:$0xff] }
 0x3da   : > { %v2882_v26 = vpop.f32.mrb[67].mxu0  ;;  %3329 = vmatmul.mubr.f32.gmra.mrb[30].mxu1 %v6884_v4  ;;  %v7625_v4 = vsel %vm478_vm1, %v2513_v51, %v2515_v57  ;;  %v2281_v51 = vld [vmem:[#allocation2 + $0x1a8] sm:$0x3]  ;;  %v8010_v57 = vld [vmem:[#allocation9_spill] sm:$0xff] }
 0x3db   : > { %3564 = vmatmul.mubr.f32.gmra.mrb[134].mxu0 %v7581_v2  ;;  %3333 = vmatprep.mubr.f32.mxu1 %v7996_v62  ;;  %v8009_v26 = vrot.slane %v7356_v50, 1 }
 0x3dc   : > { %3568 = vmatprep.mubr.f32.mxu0 %v7614_v43  ;;  %4580 = vmatpush1.bf16.msra.mxu1 %v7997_v59  ;;  %v8012_v59 = vld [vmem:[#allocation14_spill] sm:$0xff] }
 0x3dd   : > { %v7620_v40 = vpop.f32.mrb[68].mxu0 }
 0x3de   : > { %v2887_v46 = vpop.f32.mrb[69].mxu0  ;;  %3334 = vmatmul.mubr.f32.gmra.mrb[32].mxu1 %v6899_v58 }
 0x3df   : > { %3569 = vmatmul.mubr.f32.gmra.mrb[136].mxu0 %v7592_v10  ;;  %3338 = vmatprep.mubr.f32.mxu1 %v7998_v35  ;;  %v8013_v46 = vld [vmem:[#allocation17_spill] sm:$0xff] }
 0x3e0   : > { %3573 = vmatprep.mubr.f32.mxu0 %v7625_v4 }
 0x3e1   : > { %v7629_v24 = vpop.f32.mrb[70].mxu0 }
 0x3e2   : > { %v2892_v41 = vpop.f32.mrb[71].mxu0  ;;  %3339 = vmatmul.mubr.f32.gmra.mrb[34].mxu1 %v7009_v36 }
 0x3e3   : > { %3574 = vmatmul.mubr.f32.gmra.mrb[138].mxu0 %v7603_v15  ;;  %3343 = vmatprep.mubr.f32.mxu1 %v7999_v23  ;;  %v8015_v41 = vld [vmem:[#allocation21_spill] sm:$0xff] }
 0x3e4   : > { %4261 = vmatprep.mubr.f32.mxu0 %v7407_v11 }
 0x3e5   : > { %v7635_v58 = vpop.f32.mrb[72].mxu0 }
 0x3e6   : > { %v2897_v34 = vpop.f32.mrb[73].mxu0  ;;  %3344 = vmatmul.mubr.f32.gmra.mrb[36].mxu1 %v7996_v62  ;;  %v2458_v62 = vrot.slane %v2281_v51, 1 }
 0x3e7   : > { %4262 = vmatmul.mubr.f32.vlgmr.msra.gmra.mrb[140].mxu0 %v7422_v47  ;;  %3348 = vmatprep.mubr.f32.mxu1 %v8000_v19  ;;  %v8002_v47 = vld [vmem:[#allocation16_spill] sm:$0xff] }
 0x3e8   : > { %4264 = vmatprep.mubr.f32.mxu0 %v7440_v54 }
 0x3e9   : > { %v7641_v48 = vpop.f32.mrb[74].mxu0 }
 0x3ea   : > { %v2902_v36 = vpop.f32.mrb[75].mxu0  ;;  %3349 = vmatmul.mubr.f32.gmra.mrb[38].mxu1 %v7998_v35 }
 0x3eb   : > { %4265 = vmatmul.mubr.f32.gmra.mrb[142].mxu0 %v7457_v56  ;;  %3353 = vmatprep.mubr.f32.mxu1 %v8001_v55  ;;  %v8003_v56 = vld [vmem:[#allocation19_spill] sm:$0xff]  ;;  %v2584_v36 = vrot.slane %v2281_v51, 2 }
 0x3ec   : > { %4267 = vmatprep.mubr.f32.mxu0 %v7476_v12 }
 0x3ed   : > { %v7647_v11 = vpop.f32.mrb[76].mxu0 }
 0x3ee   : > { %v2907_v60 = vpop.f32.mrb[77].mxu0  ;;  %3354 = vmatmul.mubr.f32.gmra.mrb[40].mxu1 %v7999_v23 }
 0x3ef   : > { %4268 = vmatmul.mubr.f32.gmra.mrb[144].mxu0 %v7493_v25  ;;  %3358 = vmatprep.mubr.f32.mxu1 %v8002_v47  ;;  %v8004_v25 = vld [vmem:[#allocation20_spill] sm:$0xff]  ;;  %v8018_v60 = vrot.slane %v7356_v50, 2 }
 0x3f0   : > { %4270 = vmatprep.mubr.f32.mxu0 %v7504_v52 }
 0x3f1   : > { %v7653_v54 = vpop.f32.mrb[78].mxu0 }
 0x3f2   : > { %v2912_v53 = vpop.f32.mrb[79].mxu0  ;;  %3359 = vmatmul.mubr.f32.gmra.mrb[42].mxu1 %v8000_v19  ;;  %v8016_v19 = vld [vmem:[#allocation22_spill] sm:$0xff] }
 0x3f3   : > { %4271 = vmatmul.mubr.f32.gmra.mrb[146].mxu0 %v7515_v30  ;;  %3363 = vmatprep.mubr.f32.mxu1 %v8003_v56  ;;  %v8005_v30 = vld [vmem:[#allocation23_spill] sm:$0xff] }
 0x3f4   : > { %4273 = vmatprep.mubr.f32.mxu0 %v7526_v5 }
 0x3f5   : > { %v7659_v12 = vpop.f32.mrb[80].mxu0 }
 0x3f6   : > { %v2917_v22 = vpop.f32.mrb[81].mxu0  ;;  %3364 = vmatmul.mubr.f32.gmra.mrb[44].mxu1 %v8001_v55 }
 0x3f7   : > { %4274 = vmatmul.mubr.f32.gmra.mrb[148].mxu0 %v7537_v16  ;;  %3368 = vmatprep.mubr.f32.mxu1 %v8004_v25 }
 0x3f8   : > { %4276 = vmatprep.mubr.f32.mxu0 %v7548_v49 }
 0x3f9   : > { %v7665_v52 = vpop.f32.mrb[82].mxu0 }
 0x3fa   : > { %v2922_v9 = vpop.f32.mrb[83].mxu0  ;;  %3369 = vmatmul.mubr.f32.gmra.mrb[46].mxu1 %v8002_v47 }
 0x3fb   : > { %4277 = vmatmul.mubr.f32.gmra.mrb[150].mxu0 %v7559_v63  ;;  %3373 = vmatprep.mubr.f32.mxu1 %v8005_v30 }
 0x3fc   : > { %4279 = vmatprep.mubr.f32.mxu0 %v7570_v33  ;;  %v2278_v33 = vld [vmem:[#allocation2 + $0x190] sm:$0x3] }
 0x3fd   : > { %v2577_v34 = vrot.slane %v2278_v33, 2 }
 0x3fe   : > { %3374 = vmatmul.mubr.f32.gmra.mrb[48].mxu1 %v8003_v56 }
 0x3ff   : > { %v7672_v5 = vpop.f32.mrb[84].mxu0  ;;  %4280 = vmatmul.mubr.f32.gmra.mrb[152].mxu0 %v7581_v2  ;;  %3378 = vmatprep.mubr.f32.mxu1 %v7354_v31  ;;  %v8006_v2 = vld [vmem:[#allocation3_spill] sm:$0xff] }
 0x400   : > { %v2927_v16 = vpop.f32.mrb[85].mxu0  ;;  %4282 = vmatprep.mubr.f32.mxu0 %v7592_v10  ;;  %v2448_v10 = vrot.slane %v2278_v33, 1 }
 0x402   : > { %3379 = vmatmul.mubr.f32.gmra.mrb[50].mxu1 %v8004_v25  ;;  %v2449_v14 = vsel %vm371_vm0, %v8009_v26, %v2448_v10 }
 0x403   : > { %v7678_v49 = vpop.f32.mrb[86].mxu0  ;;  %4283 = vmatmul.mubr.f32.gmra.mrb[154].mxu0 %v7603_v15  ;;  %3383 = vmatprep.mubr.f32.mxu1 %v7377_v17  ;;  %v4836_v15 = vld [vmem:[#allocation2] sm:$0xff] }
 0x404   : > { %v2932_v63 = vpop.f32.mrb[87].mxu0  ;;  %4285 = vmatprep.mubr.f32.mxu0 %v7614_v43  ;;  %v2455_v38 = vrot.slane %v4836_v15, 1  ;;  %v2581_v23 = vrot.slane %v4836_v15, 2 }
 0x406   : > { %3384 = vmatmul.mubr.f32.gmra.mrb[52].mxu1 %v8005_v30  ;;  %v2459_v35 = vsel %vm371_vm0, %v2455_v38, %v2458_v62  ;;  %v2585_v53 = vsel %vm478_vm1, %v2581_v23, %v2584_v36 }
 0x407   : > { %4286 = vmatmul.mubr.f32.gmra.mrb[156].mxu0 %v7625_v4  ;;  %3388 = vmatprep.mubr.f32.mxu1 %v7390_v1 }
 0x408   : > { %4288 = vmatprep.mubr.f32.mxu0 %v8006_v2 }
 0x40a   : > { %3389 = vmatmul.mubr.f32.gmra.mrb[54].mxu1 %v7354_v31  ;;  %v8011_v31 = vld [vmem:[#allocation13_spill] sm:$0xff] }
 0x40b   : > { %4289 = vmatmul.mubr.f32.gmra.mrb[158].mxu0 %v8007_v13  ;;  %3393 = vmatprep.mubr.f32.mxu1 %v7373_v39 }
 0x40c   : > { %4291 = vmatprep.mubr.f32.mxu0 %v8008_v44 }
 0x40e   : > { %3394 = vmatmul.mubr.f32.gmra.mrb[56].mxu1 %v7377_v17  ;;  %v8014_v17 = vld [vmem:[#allocation18_spill] sm:$0xff] }
 0x40f   : > { %4292 = vmatmul.mubr.f32.gmra.mrb[160].mxu0 %v8010_v57  ;;  %3398 = vmatprep.mubr.f32.mxu1 %v2449_v14 }
 0x410   : > { %4294 = vmatprep.mubr.f32.mxu0 %v8011_v31 }
 0x412   : > { %3399 = vmatmul.mubr.f32.gmra.mrb[58].mxu1 %v7390_v1  ;;  %v8017_v1 = vld [vmem:[#allocation24_spill] sm:$0xff] }
 0x413   : > { %4295 = vmatmul.mubr.f32.gmra.mrb[162].mxu0 %v8012_v59  ;;  %3403 = vmatprep.mubr.f32.mxu1 %v2455_v38 }
 0x414   : > { %4297 = vmatprep.mubr.f32.mxu0 %v8013_v46 }
 0x416   : > { %3404 = vmatmul.mubr.f32.gmra.mrb[60].mxu1 %v7373_v39  ;;  %v2578_v39 = vsel %vm478_vm1, %v8018_v60, %v2577_v34 }
 0x417   : > { %4298 = vmatmul.mubr.f32.gmra.mrb[164].mxu0 %v8014_v17  ;;  %3408 = vmatprep.mubr.f32.mxu1 %v2459_v35 }
 0x418   : > { %4300 = vmatprep.mubr.f32.mxu0 %v8015_v41 }
 0x41a   : > { %3409 = vmatmul.mubr.f32.gmra.mrb[62].mxu1 %v2449_v14 }
 0x41b   : > { %4301 = vmatmul.mubr.f32.gmra.mrb[166].mxu0 %v8016_v19  ;;  %3578 = vmatprep.mubr.f32.mxu1 %v8006_v2 }
 0x41c   : > { %4303 = vmatprep.mubr.f32.mxu0 %v8017_v1 }
 0x41e   : > { %v7707_v55 = vpop.f32.mrb[88].mxu0  ;;  %3579 = vmatmul.mubr.f32.vlgmr.msra.gmra.mrb[40].mxu1 %v7614_v43 }
 0x41f   : > { %v2937_v47 = vpop.f32.mrb[89].mxu0  ;;  %4304 = vmatmul.mubr.f32.gmra.mrb[168].mxu0 %v2578_v39  ;;  %3583 = vmatprep.mubr.f32.mxu1 %v8007_v13 }
 0x420   : > { %4306 = vmatprep.mubr.f32.mxu0 %v2581_v23 }
 0x422   : > { %v7715_v56 = vpop.f32.mrb[90].mxu0  ;;  %3584 = vmatmul.mubr.f32.gmra.mrb[42].mxu1 %v7625_v4 }
 0x423   : > { %v2942_v22 = vpop.f32.mrb[91].mxu0  ;;  %3588 = vmatprep.mubr.f32.mxu1 %v8008_v44  ;;  %4307 = vmatmul.mubr.f32.gmra.mrb[170].mxu0 %v2585_v53 }
 0x426   : > { %3589 = vmatmul.mubr.f32.gmra.mrb[44].mxu1 %v8006_v2 }
 0x427   : > { %3593 = vmatprep.mubr.f32.mxu1 %v8010_v57 }
 0x42a   : > { %3594 = vmatmul.mubr.f32.gmra.mrb[46].mxu1 %v8007_v13  ;;  %v7748_v13 = vld [vmem:[%s7931_s4] ss:$0 sm:$0xff] }
 0x42b   : > { %3598 = vmatprep.mubr.f32.mxu1 %v8011_v31  ;;  %v2806_v38 = vadd.f32 %v7748_v13, %v7417_v45  ;;  %v2816_v23 = vadd.f32 %v7748_v13, %v7451_v20  ;;  %v2826_v20 = vadd.f32 %v7748_v13, %v7487_v42  ;;  %v2836_v42 = vadd.f32 %v7748_v13, %v7509_v37 }
 0x42c   : > { %v2846_v37 = vadd.f32 %v7748_v13, %v7531_v29  ;;  %v2856_v29 = vadd.f32 %v7748_v13, %v7553_v28  ;;  %v2866_v28 = vadd.f32 %v7748_v13, %v7575_v61  ;;  %v2876_v61 = vadd.f32 %v7748_v13, %v7597_v8 }
 0x42d   : > { %v2886_v8 = vadd.f32 %v7748_v13, %v7620_v40  ;;  %v2896_v40 = vadd.f32 %v7748_v13, %v7635_v58 }
 0x42e   : > { %3599 = vmatmul.mubr.f32.gmra.mrb[48].mxu1 %v8008_v44 }
 0x42f   : > { %3603 = vmatprep.mubr.f32.mxu1 %v8012_v59 }
 0x432   : > { %3604 = vmatmul.mubr.f32.gmra.mrb[50].mxu1 %v8010_v57 }
 0x433   : > { %3608 = vmatprep.mubr.f32.mxu1 %v8013_v46 }
 0x436   : > { %3609 = vmatmul.mubr.f32.gmra.mrb[52].mxu1 %v8011_v31  ;;  %v2811_v31 = vadd.f32 %v7748_v13, %v7435_v3  ;;  %v2821_v3 = vadd.f32 %v7748_v13, %v7470_v21  ;;  %v2831_v21 = vadd.f32 %v7748_v13, %v7498_v18  ;;  %v2841_v18 = vadd.f32 %v7748_v13, %v7520_v32 }
 0x437   : > { %3613 = vmatprep.mubr.f32.mxu1 %v8014_v17  ;;  %v2851_v32 = vadd.f32 %v7748_v13, %v7542_v27  ;;  %v2861_v27 = vadd.f32 %v7748_v13, %v7564_v6  ;;  %v2871_v6 = vadd.f32 %v7748_v13, %v7586_v7  ;;  %v2881_v7 = vadd.f32 %v7748_v13, %v7608_v0 }
 0x438   : > { %v2891_v0 = vadd.f32 %v7748_v13, %v7629_v24 }
 0x43a   : > { %3614 = vmatmul.mubr.f32.gmra.mrb[54].mxu1 %v8012_v59 }
 0x43b   : > { %3618 = vmatprep.mubr.f32.mxu1 %v8015_v41 }
 0x43e   : > { %v7731_v50 = vpop.f32.mrb[92].mxu0  ;;  %3619 = vmatmul.mubr.f32.gmra.mrb[56].mxu1 %v8013_v46 }
 0x43f   : > { %v2947_v43 = vpop.f32.mrb[93].mxu0  ;;  %3623 = vmatprep.mubr.f32.mxu1 %v8016_v19 }
 0x442   : > { %v7735_v4 = vpop.f32.mrb[94].mxu0  ;;  %3624 = vmatmul.mubr.f32.gmra.mrb[58].mxu1 %v8014_v17 }
 0x443   : > { %v2952_v25 = vpop.f32.mrb[95].mxu0  ;;  %3628 = vmatprep.mubr.f32.mxu1 %v8017_v1 }
 0x446   : > { %3629 = vmatmul.mubr.f32.gmra.mrb[60].mxu1 %v8015_v41 }
 0x447   : > { %3633 = vmatprep.mubr.f32.mxu1 %v2578_v39 }
 0x44a   : > { %3634 = vmatmul.mubr.f32.gmra.mrb[62].mxu1 %v8016_v19 }
 0x462   : > { %v7741_v9 = vpop.f32.mrb[96].mxu0 }
 0x463   : > { %v2957_v30 = vpop.f32.mrb[97].mxu0 }
 0x466   : > { %v7743_v16 = vpop.f32.mrb[98].mxu0 }
 0x467   : > { %v2962_v63 = vpop.f32.mrb[99].mxu0 }
 0x46a   : > { %v3480_v33 = vpop.f32.mrb[100].mxu0 }
 0x46b   : > { %v3482_v2 = vpop.f32.mrb[101].mxu0 }
 0x46e   : > { %v3485_v10 = vpop.f32.mrb[102].mxu0 }
 0x46f   : > { %v3487_v15 = vpop.f32.mrb[103].mxu0 }
 0x471   : > { %v3255_v44 = vpop.f32.mrb[0].mxu1 }
 0x472   : > { %v3490_v51 = vpop.f32.mrb[104].mxu0  ;;  %v4582_v26 = vadd.f32 %v3255_v44, %v2806_v38  ;;  %v3257_v14 = vpop.f32.mrb[1].mxu1 }
 0x473   : > { %v3492_v57 = vpop.f32.mrb[105].mxu0 }
 0x474   : > { %v7754_v62 = vadd.f32 %v4582_v26, %v3480_v33 }
 0x475   : > { %v3260_v59 = vpop.f32.mrb[2].mxu1 }
 0x476   : > { %v3495_v46 = vpop.f32.mrb[106].mxu0  ;;  %v4585_v35 = vadd.f32 %v3260_v59, %v2811_v31  ;;  %v3262_v17 = vpop.f32.mrb[3].mxu1 }
 0x477   : > { %v3497_v41 = vpop.f32.mrb[107].mxu0 }
 0x478   : > { %v7758_v34 = vadd.f32 %v4585_v35, %v3485_v10 }
 0x479   : > { %v3265_v45 = vpop.f32.mrb[4].mxu1 }
 0x47a   : > { %v3500_v19 = vpop.f32.mrb[108].mxu0  ;;  %v4588_v1 = vadd.f32 %v3265_v45, %v2816_v23  ;;  %v3267_v36 = vpop.f32.mrb[5].mxu1 }
 0x47b   : > { %v3502_v60 = vpop.f32.mrb[109].mxu0 }
 0x47c   : > { %v7762_v39 = vadd.f32 %v4588_v1, %v3490_v51 }
 0x47d   : > { %v3270_v47 = vpop.f32.mrb[6].mxu1 }
 0x47e   : > { %v3505_v53 = vpop.f32.mrb[110].mxu0  ;;  %v4591_v22 = vadd.f32 %v3270_v47, %v2821_v3  ;;  %v3272_v43 = vpop.f32.mrb[7].mxu1 }
 0x47f   : > { %v3507_v25 = vpop.f32.mrb[111].mxu0 }
 0x480   : > { %v7766_v30 = vadd.f32 %v4591_v22, %v3495_v46 }
 0x481   : > { %v3275_v63 = vpop.f32.mrb[8].mxu1 }
 0x482   : > { %v3510_v33 = vpop.f32.mrb[112].mxu0  ;;  %v4594_v2 = vadd.f32 %v3275_v63, %v2826_v20  ;;  %v3277_v10 = vpop.f32.mrb[9].mxu1 }
 0x483   : > { %v3512_v15 = vpop.f32.mrb[113].mxu0 }
 0x484   : > { %v7770_v38 = vadd.f32 %v4594_v2, %v3500_v19 }
 0x485   : > { %v3280_v44 = vpop.f32.mrb[10].mxu1 }
 0x486   : > { %v3515_v51 = vpop.f32.mrb[114].mxu0  ;;  %v4597_v26 = vadd.f32 %v3280_v44, %v2831_v21  ;;  %v3282_v14 = vpop.f32.mrb[11].mxu1 }
 0x487   : > { %v3517_v57 = vpop.f32.mrb[115].mxu0 }
 0x488   : > { %v7774_v31 = vadd.f32 %v4597_v26, %v3505_v53 }
 0x489   : > { %v3285_v59 = vpop.f32.mrb[12].mxu1 }
 0x48a   : > { %v3520_v46 = vpop.f32.mrb[116].mxu0  ;;  %v4600_v35 = vadd.f32 %v3285_v59, %v2836_v42  ;;  %v3287_v17 = vpop.f32.mrb[13].mxu1 }
 0x48b   : > { %v3522_v41 = vpop.f32.mrb[117].mxu0 }
 0x48c   : > { %v7778_v23 = vadd.f32 %v4600_v35, %v3510_v33 }
 0x48d   : > { %v3290_v45 = vpop.f32.mrb[14].mxu1 }
 0x48e   : > { %v3525_v19 = vpop.f32.mrb[118].mxu0  ;;  %v4603_v1 = vadd.f32 %v3290_v45, %v2841_v18  ;;  %v3292_v36 = vpop.f32.mrb[15].mxu1 }
 0x48f   : > { %v3527_v60 = vpop.f32.mrb[119].mxu0 }
 0x490   : > { %v7782_v3 = vadd.f32 %v4603_v1, %v3515_v51 }
 0x491   : > { %v3295_v47 = vpop.f32.mrb[16].mxu1 }
 0x492   : > { %v3530_v53 = vpop.f32.mrb[120].mxu0  ;;  %v4606_v22 = vadd.f32 %v3295_v47, %v2846_v37  ;;  %v3297_v43 = vpop.f32.mrb[17].mxu1 }
 0x493   : > { %v3532_v25 = vpop.f32.mrb[121].mxu0 }
 0x494   : > { %v7786_v20 = vadd.f32 %v4606_v22, %v3520_v46 }
 0x495   : > { %v3300_v63 = vpop.f32.mrb[18].mxu1 }
 0x496   : > { %v3535_v33 = vpop.f32.mrb[122].mxu0  ;;  %v4609_v2 = vadd.f32 %v3300_v63, %v2851_v32  ;;  %v3302_v10 = vpop.f32.mrb[19].mxu1 }
 0x497   : > { %v3537_v15 = vpop.f32.mrb[123].mxu0 }
 0x498   : > { %v7790_v21 = vadd.f32 %v4609_v2, %v3525_v19 }
 0x499   : > { %v3305_v44 = vpop.f32.mrb[20].mxu1 }
 0x49a   : > { %v3540_v51 = vpop.f32.mrb[124].mxu0  ;;  %v4612_v26 = vadd.f32 %v3305_v44, %v2856_v29  ;;  %v3307_v14 = vpop.f32.mrb[21].mxu1 }
 0x49b   : > { %v3542_v57 = vpop.f32.mrb[125].mxu0 }
 0x49c   : > { %v7794_v42 = vadd.f32 %v4612_v26, %v3530_v53 }
 0x49d   : > { %v3310_v59 = vpop.f32.mrb[22].mxu1 }
 0x49e   : > { %v3545_v46 = vpop.f32.mrb[126].mxu0  ;;  %v4615_v35 = vadd.f32 %v3310_v59, %v2861_v27  ;;  %v3312_v17 = vpop.f32.mrb[23].mxu1 }
 0x49f   : > { %v3547_v41 = vpop.f32.mrb[127].mxu0 }
 0x4a0   : > { %v7798_v18 = vadd.f32 %v4615_v35, %v3535_v33 }
 0x4a1   : > { %v3315_v45 = vpop.f32.mrb[24].mxu1 }
 0x4a2   : > { %v3550_v19 = vpop.f32.mrb[128].mxu0  ;;  %v4618_v1 = vadd.f32 %v3315_v45, %v2866_v28  ;;  %v3317_v36 = vpop.f32.mrb[25].mxu1 }
 0x4a3   : > { %v3552_v60 = vpop.f32.mrb[129].mxu0 }
 0x4a4   : > { %v7802_v37 = vadd.f32 %v4618_v1, %v3540_v51 }
 0x4a5   : > { %v3320_v47 = vpop.f32.mrb[26].mxu1 }
 0x4a6   : > { %v3555_v53 = vpop.f32.mrb[130].mxu0  ;;  %v4621_v22 = vadd.f32 %v3320_v47, %v2871_v6  ;;  %v3322_v43 = vpop.f32.mrb[27].mxu1 }
 0x4a7   : > { %v3557_v25 = vpop.f32.mrb[131].mxu0 }
 0x4a8   : > { %v7806_v32 = vadd.f32 %v4621_v22, %v3545_v46 }
 0x4a9   : > { %v3325_v63 = vpop.f32.mrb[28].mxu1 }
 0x4aa   : > { %v3560_v33 = vpop.f32.mrb[132].mxu0  ;;  %v4624_v2 = vadd.f32 %v3325_v63, %v2876_v61  ;;  %v3327_v10 = vpop.f32.mrb[29].mxu1  ;;  %v2901_v61 = vadd.f32 %v7748_v13, %v7641_v48 }
 0x4ab   : > { %v3562_v15 = vpop.f32.mrb[133].mxu0 }
 0x4ac   : > { %v7810_v29 = vadd.f32 %v4624_v2, %v3550_v19 }
 0x4ad   : > { %v3330_v44 = vpop.f32.mrb[30].mxu1 }
 0x4ae   : > { %v3565_v51 = vpop.f32.mrb[134].mxu0  ;;  %v4627_v26 = vadd.f32 %v3330_v44, %v2881_v7  ;;  %v3332_v14 = vpop.f32.mrb[31].mxu1 }
 0x4af   : > { %v3567_v57 = vpop.f32.mrb[135].mxu0 }
 0x4b0   : > { %v7814_v27 = vadd.f32 %v4627_v26, %v3555_v53 }
 0x4b1   : > { %v3335_v59 = vpop.f32.mrb[32].mxu1 }
 0x4b2   : > { %v3570_v46 = vpop.f32.mrb[136].mxu0  ;;  %v4630_v35 = vadd.f32 %v3335_v59, %v2886_v8  ;;  %v3337_v17 = vpop.f32.mrb[33].mxu1 }
 0x4b3   : > { %v3572_v41 = vpop.f32.mrb[137].mxu0 }
 0x4b4   : > { %v7818_v28 = vadd.f32 %v4630_v35, %v3560_v33 }
 0x4b5   : > { %v3340_v45 = vpop.f32.mrb[34].mxu1 }
 0x4b6   : > { %v3575_v19 = vpop.f32.mrb[138].mxu0  ;;  %v4633_v1 = vadd.f32 %v3340_v45, %v2891_v0  ;;  %v3342_v36 = vpop.f32.mrb[35].mxu1 }
 0x4b7   : > { %v3577_v60 = vpop.f32.mrb[139].mxu0 }
 0x4b8   : > { %v7822_v6 = vadd.f32 %v4633_v1, %v3565_v51 }
 0x4b9   : > { %v3345_v47 = vpop.f32.mrb[36].mxu1 }
 0x4ba   : > { %v4263_v53 = vpop.f32.mrb[140].mxu0  ;;  %v4636_v22 = vadd.f32 %v3345_v47, %v2896_v40  ;;  %v3347_v43 = vpop.f32.mrb[37].mxu1 }
 0x4bb   : > { %v3711_v25 = vadd.f32 %v7758_v34, %v4263_v53  ;;  %v3705_v24 = vpop.f32.mrb[141].mxu0 }
 0x4bc   : > { %v3706_v58 = vadd.f32 %v7754_v62, %v3705_v24  ;;  %v7834_v63 = vadd.f32 %v4636_v22, %v3570_v46 }
 0x4bd   : > { %v3865_v33 = vmax.f32 %v3711_v25, 0.0  ;;  %v3350_v2 = vpop.f32.mrb[38].mxu1 }
 0x4be   : > { %v3864_v10 = vmax.f32 %v3706_v58, 0.0  ;;  %v4266_v34 = vpop.f32.mrb[142].mxu0  ;;  %v4639_v15 = vadd.f32 %v3350_v2, %v2901_v61  ;;  %v3352_v7 = vpop.f32.mrb[39].mxu1 }
 0x4bf   : > { %3897 = vst [vmem:[%s7831_s23 + $0x8] sm:$0xff] %v3865_v33  ;;  %v3721_v48 = vadd.f32 %v7766_v30, %v4266_v34  ;;  %v3715_v44 = vpop.f32.mrb[143].mxu0 }
 0x4c0   : > { %3896 = vst [vmem:[%s7831_s23] sm:$0xff] %v3864_v10  ;;  %v3716_v51 = vadd.f32 %v7762_v39, %v3715_v44  ;;  %v4640_v62 = vadd.f32 %v4639_v15, %v3575_v19 }
 0x4c1   : > { %v3867_v26 = vmax.f32 %v3721_v48, 0.0 }
 0x4c2   : > { %v3866_v14 = vmax.f32 %v3716_v51, 0.0  ;;  %v4269_v57 = vpop.f32.mrb[144].mxu0 }
 0x4c3   : > { %3899 = vst [vmem:[%s7831_s23 + $0x18] sm:$0xff] %v3867_v26  ;;  %v3731_v8 = vadd.f32 %v7774_v31, %v4269_v57  ;;  %v3725_v59 = vpop.f32.mrb[145].mxu0 }
 0x4c4   : > { %3898 = vst [vmem:[%s7831_s23 + $0x10] sm:$0xff] %v3866_v14  ;;  %v3726_v46 = vadd.f32 %v7770_v38, %v3725_v59 }
 0x4c5   : > { %v3869_v30 = vmax.f32 %v3731_v8, 0.0 }
 0x4c6   : > { %v3868_v35 = vmax.f32 %v3726_v46, 0.0  ;;  %v4272_v17 = vpop.f32.mrb[146].mxu0 }
 0x4c7   : > { %3901 = vst [vmem:[%s7831_s23 + $0x28] sm:$0xff] %v3869_v30  ;;  %v3741_v39 = vadd.f32 %v7782_v3, %v4272_v17  ;;  %v3735_v41 = vpop.f32.mrb[147].mxu0 }
 0x4c8   : > { %3900 = vst [vmem:[%s7831_s23 + $0x20] sm:$0xff] %v3868_v35  ;;  %v3736_v0 = vadd.f32 %v7778_v23, %v3735_v41 }
 0x4c9   : > { %v3871_v45 = vmax.f32 %v3741_v39, 0.0 }
 0x4ca   : > { %v3870_v19 = vmax.f32 %v3736_v0, 0.0  ;;  %v4275_v31 = vpop.f32.mrb[148].mxu0 }
 0x4cb   : > { %3903 = vst [vmem:[%s7831_s23 + $0x38] sm:$0xff] %v3871_v45  ;;  %v3751_v1 = vadd.f32 %v7790_v21, %v4275_v31  ;;  %v3745_v38 = vpop.f32.mrb[149].mxu0 }
 0x4cc   : > { %3902 = vst [vmem:[%s7831_s23 + $0x30] sm:$0xff] %v3870_v19  ;;  %v3746_v36 = vadd.f32 %v7786_v20, %v3745_v38  ;;  %v2911_v19 = vadd.f32 %v7748_v13, %v7653_v54 }
 0x4cd   : > { %v3873_v60 = vmax.f32 %v3751_v1, 0.0 }
 0x4ce   : > { %v3872_v40 = vmax.f32 %v3746_v36, 0.0  ;;  %v4278_v3 = vpop.f32.mrb[150].mxu0 }
 0x4cf   : > { %3905 = vst [vmem:[%s7831_s23 + $0x48] sm:$0xff] %v3873_v60  ;;  %v3761_v47 = vadd.f32 %v7798_v18, %v4278_v3  ;;  %v3755_v23 = vpop.f32.mrb[151].mxu0 }
 0x4d0   : > { %3904 = vst [vmem:[%s7831_s23 + $0x40] sm:$0xff] %v3872_v40  ;;  %v3756_v53 = vadd.f32 %v7794_v42, %v3755_v23 }
 0x4d1   : > { %v3875_v22 = vmax.f32 %v3761_v47, 0.0 }
 0x4d2   : > { %v3874_v43 = vmax.f32 %v3756_v53, 0.0  ;;  %v4281_v21 = vpop.f32.mrb[152].mxu0 }
 0x4d3   : > { %3907 = vst [vmem:[%s7831_s23 + $0x58] sm:$0xff] %v3875_v22  ;;  %v3771_v25 = vadd.f32 %v7806_v32, %v4281_v21  ;;  %v3765_v20 = vpop.f32.mrb[153].mxu0 }
 0x4d4   : > { %3906 = vst [vmem:[%s7831_s23 + $0x50] sm:$0xff] %v3874_v43  ;;  %v3766_v24 = vadd.f32 %v7802_v37, %v3765_v20  ;;  %v2921_v43 = vadd.f32 %v7748_v13, %v7665_v52  ;;  %v2931_v52 = vadd.f32 %v7748_v13, %v7678_v49  ;;  %v2941_v49 = vadd.f32 %v7748_v13, %v7715_v56 }
 0x4d5   : > { %v3877_v61 = vmax.f32 %v3771_v25, 0.0  ;;  %v2951_v56 = vadd.f32 %v7748_v13, %v7735_v4  ;;  %v2961_v4 = vadd.f32 %v7748_v13, %v7743_v16 }
 0x4d6   : > { %v3876_v58 = vmax.f32 %v3766_v24, 0.0  ;;  %v4284_v18 = vpop.f32.mrb[154].mxu0 }
 0x4d7   : > { %3909 = vst [vmem:[%s7831_s23 + $0x68] sm:$0xff] %v3877_v61  ;;  %v3781_v33 = vadd.f32 %v7814_v27, %v4284_v18  ;;  %v3775_v42 = vpop.f32.mrb[155].mxu0 }
 0x4d8   : > { %3908 = vst [vmem:[%s7831_s23 + $0x60] sm:$0xff] %v3876_v58  ;;  %v3776_v2 = vadd.f32 %v7810_v29, %v3775_v42 }
 0x4d9   : > { %v3879_v10 = vmax.f32 %v3781_v33, 0.0 }
 0x4da   : > { %v3878_v34 = vmax.f32 %v3776_v2, 0.0  ;;  %v4287_v32 = vpop.f32.mrb[156].mxu0 }
 0x4db   : > { %3911 = vst [vmem:[%s7831_s23 + $0x78] sm:$0xff] %v3879_v10  ;;  %v3791_v15 = vadd.f32 %v7822_v6, %v4287_v32  ;;  %v3785_v37 = vpop.f32.mrb[157].mxu0 }
 0x4dc   : > { %3910 = vst [vmem:[%s7831_s23 + $0x70] sm:$0xff] %v3878_v34  ;;  %v3786_v7 = vadd.f32 %v7818_v28, %v3785_v37 }
 0x4dd   : > { %v3881_v48 = vmax.f32 %v3791_v15, 0.0 }
 0x4de   : > { %v3880_v44 = vmax.f32 %v3786_v7, 0.0  ;;  %v4290_v27 = vpop.f32.mrb[158].mxu0 }
 0x4df   : > { %3913 = vst [vmem:[%s7831_s23 + $0x88] sm:$0xff] %v3881_v48  ;;  %v3801_v51 = vadd.f32 %v4640_v62, %v4290_v27  ;;  %v3795_v26 = vpop.f32.mrb[159].mxu0  ;;  %v2906_v62 = vadd.f32 %v7748_v13, %v7647_v11  ;;  %v2916_v11 = vadd.f32 %v7748_v13, %v7659_v12  ;;  %v2926_v12 = vadd.f32 %v7748_v13, %v7672_v5 }
 0x4e0   : > { %3912 = vst [vmem:[%s7831_s23 + $0x80] sm:$0xff] %v3880_v44  ;;  %v3796_v29 = vadd.f32 %v7834_v63, %v3795_v26  ;;  %v2936_v5 = vadd.f32 %v7748_v13, %v7707_v55  ;;  %v2946_v55 = vadd.f32 %v7748_v13, %v7731_v50  ;;  %v2956_v50 = vadd.f32 %v7748_v13, %v7741_v9 }
 0x4e1   : > { %v3883_v14 = vmax.f32 %v3801_v51, 0.0 }
 0x4e2   : > { %v3882_v57 = vmax.f32 %v3796_v29, 0.0  ;;  %v4293_v8 = vpop.f32.mrb[160].mxu0 }
 0x4e3   : > { %3915 = vst [vmem:[%s7831_s23 + $0x98] sm:$0xff] %v3883_v14  ;;  %v3805_v59 = vpop.f32.mrb[161].mxu0 }
 0x4e4   : > { %3914 = vst [vmem:[%s7831_s23 + $0x90] sm:$0xff] %v3882_v57 }
 0x4e6   : > { %v4296_v6 = vpop.f32.mrb[162].mxu0 }
 0x4e7   : > { %v3815_v46 = vpop.f32.mrb[163].mxu0 }
 0x4ea   : > { %v4299_v30 = vpop.f32.mrb[164].mxu0 }
 0x4eb   : > { %v3825_v35 = vpop.f32.mrb[165].mxu0 }
 0x4ee   : > { %v4302_v28 = vpop.f32.mrb[166].mxu0 }
 0x4ef   : > { %v3835_v17 = vpop.f32.mrb[167].mxu0 }
 0x4f1   : > { %v3580_v39 = vpop.f32.mrb[40].mxu1 }
 0x4f2   : > { %v7875_v41 = vpop.f32.mrb[168].mxu0  ;;  %v4642_v63 = vadd.f32 %v3580_v39, %v2906_v62  ;;  %v3582_v0 = vpop.f32.mrb[41].mxu1 }
 0x4f3   : > { %v3845_v45 = vpop.f32.mrb[169].mxu0 }
 0x4f4   : > { %v3806_v31 = vadd.f32 %v4642_v63, %v3805_v59 }
 0x4f5   : > { %v3585_v1 = vpop.f32.mrb[42].mxu1 }
 0x4f6   : > { %v3884_v38 = vmax.f32 %v3806_v31, 0.0  ;;  %v4644_v36 = vadd.f32 %v3585_v1, %v2911_v19  ;;  %v3587_v60 = vpop.f32.mrb[43].mxu1  ;;  %v7879_v40 = vpop.f32.mrb[170].mxu0 }
 0x4f7   : > { %v7881_v3 = vpop.f32.mrb[171].mxu0 }
 0x4f8   : > { %3916 = vst [vmem:[%s7831_s23 + $0xa0] sm:$0xff] %v3884_v38  ;;  %v3811_v47 = vadd.f32 %v4644_v36, %v4293_v8 }
 0x4f9   : > { %v3590_v23 = vpop.f32.mrb[44].mxu1 }
 0x4fa   : > { %v3885_v53 = vmax.f32 %v3811_v47, 0.0  ;;  %v4646_v22 = vadd.f32 %v3590_v23, %v2916_v11  ;;  %v3592_v54 = vpop.f32.mrb[45].mxu1 }
 0x4fc   : > { %3917 = vst [vmem:[%s7831_s23 + $0xa8] sm:$0xff] %v3885_v53  ;;  %v3816_v21 = vadd.f32 %v4646_v22, %v3815_v46 }
 0x4fd   : > { %v3595_v25 = vpop.f32.mrb[46].mxu1 }
 0x4fe   : > { %v3886_v20 = vmax.f32 %v3816_v21, 0.0  ;;  %v4648_v24 = vadd.f32 %v3595_v25, %v2921_v43  ;;  %v3597_v61 = vpop.f32.mrb[47].mxu1 }
 0x500   : > { %3918 = vst [vmem:[%s7831_s23 + $0xb0] sm:$0xff] %v3886_v20  ;;  %v3821_v58 = vadd.f32 %v4648_v24, %v4296_v6 }
 0x501   : > { %v3600_v18 = vpop.f32.mrb[48].mxu1 }
 0x502   : > { %v3887_v33 = vmax.f32 %v3821_v58, 0.0  ;;  %v4650_v42 = vadd.f32 %v3600_v18, %v2926_v12  ;;  %v3602_v2 = vpop.f32.mrb[49].mxu1 }
 0x504   : > { %3919 = vst [vmem:[%s7831_s23 + $0xb8] sm:$0xff] %v3887_v33  ;;  %v3826_v10 = vadd.f32 %v4650_v42, %v3825_v35 }
 0x505   : > { %v3605_v34 = vpop.f32.mrb[50].mxu1 }
 0x506   : > { %v3888_v32 = vmax.f32 %v3826_v10, 0.0  ;;  %v4652_v15 = vadd.f32 %v3605_v34, %v2931_v52  ;;  %v3607_v37 = vpop.f32.mrb[51].mxu1 }
 0x508   : > { %3920 = vst [vmem:[%s7831_s23 + $0xc0] sm:$0xff] %v3888_v32  ;;  %v3831_v7 = vadd.f32 %v4652_v15, %v4299_v30 }
 0x509   : > { %v3610_v48 = vpop.f32.mrb[52].mxu1 }
 0x50a   : > { %v3889_v44 = vmax.f32 %v3831_v7, 0.0  ;;  %v4654_v27 = vadd.f32 %v3610_v48, %v2936_v5  ;;  %v3612_v51 = vpop.f32.mrb[53].mxu1 }
 0x50c   : > { %3921 = vst [vmem:[%s7831_s23 + $0xc8] sm:$0xff] %v3889_v44  ;;  %v3836_v26 = vadd.f32 %v4654_v27, %v3835_v17 }
 0x50d   : > { %v3615_v29 = vpop.f32.mrb[54].mxu1 }
 0x50e   : > { %v3890_v14 = vmax.f32 %v3836_v26, 0.0  ;;  %v4656_v57 = vadd.f32 %v3615_v29, %v2941_v49  ;;  %v3617_v8 = vpop.f32.mrb[55].mxu1 }
 0x510   : > { %3922 = vst [vmem:[%s7831_s23 + $0xd0] sm:$0xff] %v3890_v14  ;;  %v3841_v59 = vadd.f32 %v4656_v57, %v4302_v28 }
 0x511   : > { %v3620_v6 = vpop.f32.mrb[56].mxu1 }
 0x512   : > { %v3891_v46 = vmax.f32 %v3841_v59, 0.0  ;;  %v4658_v30 = vadd.f32 %v3620_v6, %v2946_v55  ;;  %v3622_v35 = vpop.f32.mrb[57].mxu1 }
 0x514   : > { %3923 = vst [vmem:[%s7831_s23 + $0xd8] sm:$0xff] %v3891_v46  ;;  %v3846_v17 = vadd.f32 %v4658_v30, %v3845_v45 }
 0x515   : > { %v3625_v62 = vpop.f32.mrb[58].mxu1 }
 0x516   : > { %v3892_v39 = vmax.f32 %v3846_v17, 0.0  ;;  %v4660_v63 = vadd.f32 %v3625_v62, %v2951_v56  ;;  %v3627_v0 = vpop.f32.mrb[59].mxu1 }
 0x518   : > { %3924 = vst [vmem:[%s7831_s23 + $0xe0] sm:$0xff] %v3892_v39  ;;  %v3851_v28 = vadd.f32 %v4660_v63, %v7875_v41 }
 0x519   : > { %v3630_v19 = vpop.f32.mrb[60].mxu1 }
 0x51a   : > { %v3893_v31 = vmax.f32 %v3851_v28, 0.0  ;;  %v4662_v1 = vadd.f32 %v3630_v19, %v2956_v50  ;;  %v3632_v38 = vpop.f32.mrb[61].mxu1 }
 0x51c   : > { %3925 = vst [vmem:[%s7831_s23 + $0xe8] sm:$0xff] %v3893_v31  ;;  %v3856_v45 = vadd.f32 %v4662_v1, %v7881_v3 }
 0x51d   : > { %v3635_v36 = vpop.f32.mrb[62].mxu1 }
 0x51e   : > { %v3894_v60 = vmax.f32 %v3856_v45, 0.0  ;;  %v4664_v11 = vadd.f32 %v3635_v36, %v2961_v4  ;;  %v3637_v47 = vpop.f32.mrb[63].mxu1 }
 0x520   : > { %3926 = vst [vmem:[%s7831_s23 + $0xf0] sm:$0xff] %v3894_v60  ;;  %v3861_v9 = vadd.f32 %v4664_v11, %v7879_v40 }
 0x522   : > { %v3895_v23 = vmax.f32 %v3861_v9, 0.0 }
 0x524   : > { %3927 = vst [vmem:[%s7831_s23 + $0xf8] sm:$0xff] %v3895_v23 }
 0x525 PF: > { %s15_s20 = sadd.s32 1, %s4859_s20   ;;  %s8019_s18 = smov %s4855_s19 }
 0x526   : > { %p12_p5 = scmp.ge.s32.totalorder %s15_s20, 4   ;;  %s8020_s19 = smov %s8022_s21 }
 0x528   :  { %14 = sbr.rel (!%p12_p5) target bundleno = 2 (0x2), region = 75 }

</bundles_post_ra>
